<compile_context>
chip_gen: v6e
topology: v6e:2x2x1
jax: 0.10.0
libtpu: 0.0.40
codegen_flags: <defaults>
</compile_context>

<pallas_src>
import math
import functools

import jax
import jax.numpy as jnp
from jax.experimental import pallas as pl
from jax.experimental.pallas import tpu as pltpu


_PAR = pltpu.CompilerParams(dimension_semantics=("parallel",))


# ----------------------------------------------------------------------------
# In-kernel helper math (pure functions on VMEM values)
# ----------------------------------------------------------------------------

def _layer_norm_val(x, g, b):
    mu = jnp.mean(x, axis=-1, keepdims=True)
    var = jnp.mean(jnp.square(x - mu), axis=-1, keepdims=True)
    return (x - mu) * jax.lax.rsqrt(var + 1e-5) * g + b


def _ffn_val(x, w1, b1, w2, b2):
    h = jnp.dot(x.astype(jnp.bfloat16), w1,
                preferred_element_type=jnp.float32) + b1
    h = jnp.maximum(h, 0.0)
    return jnp.dot(h.astype(jnp.bfloat16), w2,
                   preferred_element_type=jnp.float32) + b2


def _mh_core(q, k, v, mask, nheads):
    """Multi-head attention on (Lq,D)/(Lk,D)/(Lk,D); mask (Lq or 1, Lk) or None."""
    Lq, D = q.shape
    Dh = D // nheads
    scale = 1.0 / math.sqrt(Dh)
    kt = k.T                                   # (D, Lk), one transpose total
    outs = []
    for h in range(nheads):                    # static unroll, lane slices
        lo, hi = h * Dh, (h + 1) * Dh
        s = jnp.dot(q[:, lo:hi], kt[lo:hi, :],
                    preferred_element_type=jnp.float32) * scale
        if mask is not None:
            s = s + mask
        s = s - jnp.max(s, axis=-1, keepdims=True)
        p = jnp.exp(s)
        p = p * pl.reciprocal(jnp.sum(p, axis=-1, keepdims=True), approx=True)
        outs.append(jnp.dot(p, v[:, lo:hi],
                            preferred_element_type=jnp.float32))
    return jnp.concatenate(outs, axis=-1)      # (Lq, D)


def _self_attention(x, mask, wqkv, bqkv, wo, bo, nheads):
    D = x.shape[-1]
    qkv = jnp.dot(x.astype(jnp.bfloat16), wqkv,
                  preferred_element_type=jnp.float32) + bqkv
    q, k, v = qkv[:, :D], qkv[:, D:2 * D], qkv[:, 2 * D:]
    o = _mh_core(q, k, v, mask, nheads)
    return jnp.dot(o.astype(jnp.bfloat16), wo,
                   preferred_element_type=jnp.float32) + bo


def _cross_attention(xq, xkv, mask, wq, bq, wkv, bkv, wo, bo, nheads):
    D = xq.shape[-1]
    q = jnp.dot(xq.astype(jnp.bfloat16), wq,
                preferred_element_type=jnp.float32) + bq
    kv = jnp.dot(xkv.astype(jnp.bfloat16), wkv,
                 preferred_element_type=jnp.float32) + bkv
    k, v = kv[:, :D], kv[:, D:]
    o = _mh_core(q, k, v, mask, nheads)
    return jnp.dot(o.astype(jnp.bfloat16), wo,
                   preferred_element_type=jnp.float32) + bo


def _attn_pool_val(x, w, b, add_mask):
    """Attention pooling over sequence axis of x (L, D) -> (1, D)."""
    s = jnp.dot(x.astype(jnp.bfloat16), w,
                preferred_element_type=jnp.float32) + b       # (L, 1)
    if add_mask is not None:
        s = s + add_mask
    s = s - jnp.max(s, axis=0, keepdims=True)
    p = jnp.exp(s)
    p = p * pl.reciprocal(jnp.sum(p, axis=0, keepdims=True), approx=True)
    return jnp.sum(p * x, axis=0, keepdims=True)              # (1, D)


# ----------------------------------------------------------------------------
# Pallas kernels
# ----------------------------------------------------------------------------

def _linear_kernel(x_ref, w_ref, b_ref, o_ref):
    o_ref[0] = jnp.dot(x_ref[0].astype(jnp.bfloat16), w_ref[...],
                       preferred_element_type=jnp.float32) + b_ref[...]


def _q_layer_kernel(x_ref, mask_ref,
                    wqkv_ref, bqkv_ref, wo_ref, bo_ref,
                    ln1g_ref, ln1b_ref,
                    w1_ref, b1_ref, w2_ref, b2_ref,
                    ln2g_ref, ln2b_ref,
                    o_ref, *, nheads):
    x = x_ref[0]                       # (Lq, D)
    mask = mask_ref[0]                 # (Lq, Lq) additive (causal + padding)
    a = _self_attention(x, mask, wqkv_ref[...], bqkv_ref[...],
                        wo_ref[...], bo_ref[...], nheads)
    x = _layer_norm_val(x + a, ln1g_ref[...], ln1b_ref[...])
    f = _ffn_val(x, w1_ref[...], b1_ref[...], w2_ref[...], b2_ref[...])
    x = _layer_norm_val(x + f, ln2g_ref[...], ln2b_ref[...])
    o_ref[0] = x


def _v_layer_kernel(y_ref, qe_ref, cmask_ref,
                    swqkv_ref, sbqkv_ref, swo_ref, sbo_ref,
                    ln1g_ref, ln1b_ref,
                    cwq_ref, cbq_ref, cwkv_ref, cbkv_ref, cwo_ref, cbo_ref,
                    ln2g_ref, ln2b_ref,
                    w1_ref, b1_ref, w2_ref, b2_ref,
                    ln3g_ref, ln3b_ref,
                    o_ref, *, nheads):
    y = y_ref[0]                       # (Lv, D)
    qe = qe_ref[0]                     # (Lq, D)
    cmask = cmask_ref[0]               # (1, Lq) additive padding mask
    # image self-attention: no mask at all (skips the mask DMA & add)
    a = _self_attention(y, None, swqkv_ref[...], sbqkv_ref[...],
                        swo_ref[...], sbo_ref[...], nheads)
    y = _layer_norm_val(y + a, ln1g_ref[...], ln1b_ref[...])
    # question-guided cross-attention
    c = _cross_attention(y, qe, cmask,
                         cwq_ref[...], cbq_ref[...],
                         cwkv_ref[...], cbkv_ref[...],
                         cwo_ref[...], cbo_ref[...], nheads)
    y = _layer_norm_val(y + c, ln2g_ref[...], ln2b_ref[...])
    f = _ffn_val(y, w1_ref[...], b1_ref[...], w2_ref[...], b2_ref[...])
    y = _layer_norm_val(y + f, ln3g_ref[...], ln3b_ref[...])
    o_ref[0] = y


def _fusion_kernel(v_ref, q_ref, qm_ref,
                   wva_ref, bva_ref, wqa_ref, bqa_ref,
                   wvp_ref, bvp_ref, wqp_ref, bqp_ref,
                   lng_ref, lnb_ref, wg_ref, bg_ref,
                   o_ref):
    xv = v_ref[0]                      # (Lv, D)
    xq = q_ref[0]                      # (Lq, D)
    qm = qm_ref[0]                     # (Lq, 1) additive padding mask
    v_pool = _attn_pool_val(xv, wva_ref[...], bva_ref[...], None)
    q_pool = _attn_pool_val(xq, wqa_ref[...], bqa_ref[...], qm)
    fused = (jnp.dot(v_pool.astype(jnp.bfloat16), wvp_ref[...],
                     preferred_element_type=jnp.float32) + bvp_ref[...] +
             jnp.dot(q_pool.astype(jnp.bfloat16), wqp_ref[...],
                     preferred_element_type=jnp.float32) + bqp_ref[...])
    fused = _layer_norm_val(fused, lng_ref[...], lnb_ref[...])
    o_ref[0] = jnp.dot(fused.astype(jnp.bfloat16), wg_ref[...],
                       preferred_element_type=jnp.float32) + bg_ref[...]


# ----------------------------------------------------------------------------
# BlockSpec helpers & kernel wrappers
# ----------------------------------------------------------------------------

def _rep_spec(arr):
    """Full-array block, same block for every grid step (weights / biases)."""
    shp = arr.shape
    nd = len(shp)
    return pl.BlockSpec(shp, lambda b, _nd=nd: (0,) * _nd)


def _bat_spec(arr):
    """Per-batch block: leading axis indexed by the grid, rest full."""
    shp = arr.shape
    nd = len(shp)
    return pl.BlockSpec((1,) + shp[1:], lambda b, _nd=nd: (b,) + (0,) * (_nd - 1))


def linear_seq(x, p):
    """(B, L, K) @ (K, N) + b, gridded over B (parallel)."""
    B, L, K = x.shape
    N = p['w'].shape[1]
    return pl.pallas_call(
        _linear_kernel,
        out_shape=jax.ShapeDtypeStruct((B, L, N), jnp.float32),
        grid=(B,),
        in_specs=[_bat_spec(x), _rep_spec(p['w']), _rep_spec(p['b'])],
        out_specs=pl.BlockSpec((1, L, N), lambda b: (b, 0, 0)),
        compiler_params=_PAR,
    )(x, p['w'], p['b'])


def q_layer(x, mask, lp, nheads):
    B, Lq, D = x.shape
    args = (x, mask,
            lp['qkv']['w'], lp['qkv']['b'], lp['o']['w'], lp['o']['b'],
            lp['ln1']['g'], lp['ln1']['b'],
            lp['w1']['w'], lp['w1']['b'], lp['w2']['w'], lp['w2']['b'],
            lp['ln2']['g'], lp['ln2']['b'])
    in_specs = [_bat_spec(x), _bat_spec(mask)] + [_rep_spec(a) for a in args[2:]]
    return pl.pallas_call(
        functools.partial(_q_layer_kernel, nheads=nheads),
        out_shape=jax.ShapeDtypeStruct((B, Lq, D), jnp.float32),
        grid=(B,),
        in_specs=in_specs,
        out_specs=pl.BlockSpec((1, Lq, D), lambda b: (b, 0, 0)),
        compiler_params=_PAR,
    )(*args)


def v_layer(y, q_enc, cmask, lp, nheads):
    B, Lv, D = y.shape
    args = (y, q_enc, cmask,
            lp['s_qkv']['w'], lp['s_qkv']['b'], lp['s_o']['w'], lp['s_o']['b'],
            lp['ln1']['g'], lp['ln1']['b'],
            lp['c_q']['w'], lp['c_q']['b'], lp['c_kv']['w'], lp['c_kv']['b'],
            lp['c_o']['w'], lp['c_o']['b'],
            lp['ln2']['g'], lp['ln2']['b'],
            lp['w1']['w'], lp['w1']['b'], lp['w2']['w'], lp['w2']['b'],
            lp['ln3']['g'], lp['ln3']['b'])
    in_specs = ([_bat_spec(y), _bat_spec(q_enc), _bat_spec(cmask)] +
                [_rep_spec(a) for a in args[3:]])
    return pl.pallas_call(
        functools.partial(_v_layer_kernel, nheads=nheads),
        out_shape=jax.ShapeDtypeStruct((B, Lv, D), jnp.float32),
        grid=(B,),
        in_specs=in_specs,
        out_specs=pl.BlockSpec((1, Lv, D), lambda b: (b, 0, 0)),
        compiler_params=_PAR,
    )(*args)


def fusion_head(v_enc, q_enc, q_pool_mask, fz, gen):
    B, Lv, D = v_enc.shape
    n_cats = gen['w'].shape[1]
    args = (v_enc, q_enc, q_pool_mask,
            fz['v_att']['w'], fz['v_att']['b'],
            fz['q_att']['w'], fz['q_att']['b'],
            fz['v_proj']['w'], fz['v_proj']['b'],
            fz['q_proj']['w'], fz['q_proj']['b'],
            fz['ln']['g'], fz['ln']['b'],
            gen['w'], gen['b'])
    in_specs = ([_bat_spec(v_enc), _bat_spec(q_enc), _bat_spec(q_pool_mask)] +
                [_rep_spec(a) for a in args[3:]])
    out = pl.pallas_call(
        _fusion_kernel,
        out_shape=jax.ShapeDtypeStruct((B, 1, n_cats), jnp.float32),
        grid=(B,),
        in_specs=in_specs,
        out_specs=pl.BlockSpec((1, 1, n_cats), lambda b: (b, 0, 0)),
        compiler_params=_PAR,
    )(*args)
    return out[:, 0, :]


# ----------------------------------------------------------------------------
# Parameters (weights bf16 for MXU, biases / LN params f32)
# ----------------------------------------------------------------------------

def dense(key, din, dout):
    kw, kb = jax.random.split(key)
    w = (jax.random.normal(kw, (din, dout), jnp.float32) /
         math.sqrt(din)).astype(jnp.bfloat16)
    b = jax.random.normal(kb, (1, dout), jnp.float32) * 0.01
    return {'w': w, 'b': b}


def init_params(key, cfg):
    d, dff = cfg['d_model'], cfg['dff']
    keys = iter(jax.random.split(key, 256))
    nxt = lambda: next(keys)

    def ln_p():
        return {'g': jnp.ones((1, d), jnp.float32),
                'b': jnp.zeros((1, d), jnp.float32)}

    patch_dim = cfg['C'] * cfg['patch'] * cfg['patch']
    params = {
        'vis_embed': dense(nxt(), patch_dim, d),
        'txt_table': jax.random.normal(
            nxt(), (cfg['vocab'], cfg['emb_dim']), jnp.float32) * 0.02,
        'txt_proj': dense(nxt(), cfg['emb_dim'], d),
        'q_layers': [],
        'v_layers': [],
        'fusion': {'v_att': dense(nxt(), d, 1), 'q_att': dense(nxt(), d, 1),
                   'v_proj': dense(nxt(), d, d), 'q_proj': dense(nxt(), d, d),
                   'ln': ln_p()},
        'gen': dense(nxt(), d, cfg['n_cats']),
    }
    for _ in range(cfg['nlayers']):
        params['q_layers'].append({
            'qkv': dense(nxt(), d, 3 * d), 'o': dense(nxt(), d, d),
            'ln1': ln_p(),
            'w1': dense(nxt(), d, dff), 'w2': dense(nxt(), dff, d),
            'ln2': ln_p()})
        params['v_layers'].append({
            's_qkv': dense(nxt(), d, 3 * d), 's_o': dense(nxt(), d, d),
            'ln1': ln_p(),
            'c_q': dense(nxt(), d, d), 'c_kv': dense(nxt(), d, 2 * d),
            'c_o': dense(nxt(), d, d), 'ln2': ln_p(),
            'w1': dense(nxt(), d, dff), 'w2': dense(nxt(), dff, d),
            'ln3': ln_p()})
    return params


# ----------------------------------------------------------------------------
# MCAN forward
# ----------------------------------------------------------------------------

def mcan_forward(params, v_img, q_tok, cfg):
    B, C, Hh, Ww = v_img.shape
    p_sz, nheads = cfg['patch'], cfg['nheads']
    neg = jnp.float32(-1e9)

    # --- visual embedding: patchify (glue) + linear projection (Pallas) ---
    gh, gw = Hh // p_sz, Ww // p_sz
    patches = v_img.reshape(B, C, gh, p_sz, gw, p_sz)
    patches = patches.transpose(0, 2, 4, 1, 3, 5).reshape(
        B, gh * gw, C * p_sz * p_sz)
    v_emb = linear_seq(patches, params['vis_embed'])

    # --- text embedding: table gather (glue) + projection (Pallas) ---
    tok_emb = jnp.take(params['txt_table'], q_tok, axis=0)
    q_emb = linear_seq(tok_emb, params['txt_proj'])

    Lq = q_emb.shape[1]

    # --- masks (subsequent_mask + key_padding_mask semantics) ---
    causal = jnp.where(jnp.arange(Lq)[None, :] > jnp.arange(Lq)[:, None],
                       neg, 0.0).astype(jnp.float32)
    pad_add = jnp.where(q_tok == cfg['pad_idx'], neg, 0.0).astype(jnp.float32)
    q_self_mask = causal[None] + pad_add[:, None, :]      # (B, Lq, Lq)
    cross_mask = pad_add[:, None, :]                      # (B, 1, Lq)
    q_pool_mask = pad_add[:, :, None]                     # (B, Lq, 1)

    # --- deep co-attention: question self-attention encoder stack ---
    x = q_emb
    for lp in params['q_layers']:
        x = q_layer(x, q_self_mask, lp, nheads)
    q_enc = x

    # --- deep co-attention: image self-attn + question-guided attn stack ---
    y = v_emb
    for lp in params['v_layers']:
        y = v_layer(y, q_enc, cross_mask, lp, nheads)
    v_enc = y

    # --- fusion (attention pooling + projections + LN) + generator ---
    logits = fusion_head(v_enc, q_enc, q_pool_mask,
                         params['fusion'], params['gen'])
    return logits          # final dropout is identity in inference mode


# ----------------------------------------------------------------------------
# Main
# ----------------------------------------------------------------------------

if __name__ == "__main__":
    cfg = dict(B=2, C=3, H=16, W=16, patch=4,
               vocab=50, pad_idx=0, emb_dim=24,
               d_model=32, dff=64, nheads=4, nlayers=2,
               n_cats=10, q_len=8)

    key = jax.random.PRNGKey(0)
    kp, kv, kq = jax.random.split(key, 3)
    params = init_params(kp, cfg)

    v = jax.random.normal(kv, (cfg['B'], cfg['C'], cfg['H'], cfg['W']),
                          jnp.float32)
    q = jax.random.randint(kq, (cfg['B'], cfg['q_len']), 1, cfg['vocab'],
                           dtype=jnp.int32)
    # put a few <pad> tokens at the end of each question
    q = q.at[0, -2:].set(cfg['pad_idx'])
    q = q.at[1, -1:].set(cfg['pad_idx'])

    fwd = jax.jit(lambda p, vv, qq: mcan_forward(p, vv, qq, cfg))
    out = jax.block_until_ready(fwd(params, v, q))

    assert out.shape == (cfg['B'], cfg['n_cats']), out.shape
    assert bool(jnp.all(jnp.isfinite(out)))
    print("KERNEL_OK")
</pallas_src>

<mosaic_0001>
module attributes {stable_mosaic.version = 11 : i64} {
  func.func @_linear_kernel(%arg0: i32, %arg1: memref<1x16x48xf32, #tpu.memory_space<vmem>>, %arg2: memref<48x32xbf16, #tpu.memory_space<vmem>>, %arg3: memref<1x32xf32, #tpu.memory_space<vmem>>, %arg4: memref<1x16x32xf32, #tpu.memory_space<vmem>>) attributes {dimension_semantics = [#tpu.dimension_semantics<parallel>], iteration_bounds = array<i64: 2>, scalar_prefetch = 0 : i64, scratch_operands = 0 : i64, tpu.core_type = #tpu.core_type<tc>, window_params = [{transform_indices = @transform_0, window_bounds = array<i64: 1, 16, 48>}, {pipeline_mode = #tpu.pipeline_mode<synchronous>, transform_indices = @transform_1, window_bounds = array<i64: 48, 32>}, {pipeline_mode = #tpu.pipeline_mode<synchronous>, transform_indices = @transform_2, window_bounds = array<i64: 1, 32>}, {transform_indices = @transform_3, window_bounds = array<i64: 1, 16, 32>}]} {
    %c0 = arith.constant 0 : index
    %c0_0 = arith.constant 0 : index
    %c0_1 = arith.constant 0 : index
    %0 = vector.load %arg1[%c0, %c0_0, %c0_1] : memref<1x16x48xf32, #tpu.memory_space<vmem>>, vector<1x16x48xf32>
    %1 = vector.shape_cast %0 : vector<1x16x48xf32> to vector<16x48xf32>
    %2 = arith.truncf %1 : vector<16x48xf32> to vector<16x48xbf16>
    %c0_2 = arith.constant 0 : index
    %c0_3 = arith.constant 0 : index
    %3 = vector.load %arg2[%c0_2, %c0_3] : memref<48x32xbf16, #tpu.memory_space<vmem>>, vector<48x32xbf16>
    %cst = arith.constant dense<0.000000e+00> : vector<16x32xf32>
    %4 = tpu.matmul %2, %3, %cst {dimension_numbers = #tpu.dot_dimension_numbers<[1], [0], [0], [1], [0, 0, 1, 1], [], []>} : vector<16x48xbf16>, vector<48x32xbf16>, vector<16x32xf32> -> vector<16x32xf32>
    %c0_4 = arith.constant 0 : index
    %c0_5 = arith.constant 0 : index
    %5 = vector.load %arg3[%c0_4, %c0_5] : memref<1x32xf32, #tpu.memory_space<vmem>>, vector<1x32xf32>
    %6 = vector.broadcast %5 : vector<1x32xf32> to vector<16x32xf32>
    %7 = arith.addf %4, %6 : vector<16x32xf32>
    %c0_6 = arith.constant 0 : index
    %c0_7 = arith.constant 0 : index
    %c0_8 = arith.constant 0 : index
    %8 = vector.load %arg4[%c0_6, %c0_7, %c0_8] : memref<1x16x32xf32, #tpu.memory_space<vmem>>, vector<1x16x32xf32>
    %9 = vector.shape_cast %8 : vector<1x16x32xf32> to vector<16x32xf32>
    %10 = vector.shape_cast %7 : vector<16x32xf32> to vector<1x16x32xf32>
    tpu.vector_store %arg4[%c0_6, %c0_7, %c0_8], %10 {strides = array<i32>} : memref<1x16x32xf32, #tpu.memory_space<vmem>>, vector<1x16x32xf32>,
    return
  }
  func.func @transform_0(%arg0: i32) -> (i32, i32, i32) {
    %c0_i32 = arith.constant 0 : i32
    %c0_i32_0 = arith.constant 0 : i32
    %c0_i32_1 = arith.constant 0 : i32
    return %arg0, %c0_i32, %c0_i32_0 : i32, i32, i32
  }
  func.func @transform_1(%arg0: i32) -> (i32, i32) {
    %c0_i32 = arith.constant 0 : i32
    %c0_i32_0 = arith.constant 0 : i32
    %c0_i32_1 = arith.constant 0 : i32
    return %c0_i32, %c0_i32_0 : i32, i32
  }
  func.func @transform_2(%arg0: i32) -> (i32, i32) {
    %c0_i32 = arith.constant 0 : i32
    %c0_i32_0 = arith.constant 0 : i32
    %c0_i32_1 = arith.constant 0 : i32
    return %c0_i32, %c0_i32_0 : i32, i32
  }
  func.func @transform_3(%arg0: i32) -> (i32, i32, i32) {
    %c0_i32 = arith.constant 0 : i32
    %c0_i32_0 = arith.constant 0 : i32
    %c0_i32_1 = arith.constant 0 : i32
    return %arg0, %c0_i32, %c0_i32_0 : i32, i32, i32
  }
}

module attributes {stable_mosaic.version = 11 : i64} {
  func.func @_linear_kernel(%arg0: i32, %arg1: memref<1x8x24xf32, #tpu.memory_space<vmem>>, %arg2: memref<24x32xbf16, #tpu.memory_space<vmem>>, %arg3: memref<1x32xf32, #tpu.memory_space<vmem>>, %arg4: memref<1x8x32xf32, #tpu.memory_space<vmem>>) attributes {dimension_semantics = [#tpu.dimension_semantics<parallel>], iteration_bounds = array<i64: 2>, scalar_prefetch = 0 : i64, scratch_operands = 0 : i64, tpu.core_type = #tpu.core_type<tc>, window_params = [{transform_indices = @transform_0, window_bounds = array<i64: 1, 8, 24>}, {pipeline_mode = #tpu.pipeline_mode<synchronous>, transform_indices = @transform_1, window_bounds = array<i64: 24, 32>}, {pipeline_mode = #tpu.pipeline_mode<synchronous>, transform_indices = @transform_2, window_bounds = array<i64: 1, 32>}, {transform_indices = @transform_3, window_bounds = array<i64: 1, 8, 32>}]} {
    %c0 = arith.constant 0 : index
    %c0_0 = arith.constant 0 : index
    %c0_1 = arith.constant 0 : index
    %0 = vector.load %arg1[%c0, %c0_0, %c0_1] : memref<1x8x24xf32, #tpu.memory_space<vmem>>, vector<1x8x24xf32>
    %1 = vector.shape_cast %0 : vector<1x8x24xf32> to vector<8x24xf32>
    %2 = arith.truncf %1 : vector<8x24xf32> to vector<8x24xbf16>
    %c0_2 = arith.constant 0 : index
    %c0_3 = arith.constant 0 : index
    %3 = vector.load %arg2[%c0_2, %c0_3] : memref<24x32xbf16, #tpu.memory_space<vmem>>, vector<24x32xbf16>
    %cst = arith.constant dense<0.000000e+00> : vector<8x32xf32>
    %4 = tpu.matmul %2, %3, %cst {dimension_numbers = #tpu.dot_dimension_numbers<[1], [0], [0], [1], [0, 0, 1, 1], [], []>} : vector<8x24xbf16>, vector<24x32xbf16>, vector<8x32xf32> -> vector<8x32xf32>
    %c0_4 = arith.constant 0 : index
    %c0_5 = arith.constant 0 : index
    %5 = vector.load %arg3[%c0_4, %c0_5] : memref<1x32xf32, #tpu.memory_space<vmem>>, vector<1x32xf32>
    %6 = vector.broadcast %5 : vector<1x32xf32> to vector<8x32xf32>
    %7 = arith.addf %4, %6 : vector<8x32xf32>
    %c0_6 = arith.constant 0 : index
    %c0_7 = arith.constant 0 : index
    %c0_8 = arith.constant 0 : index
    %8 = vector.load %arg4[%c0_6, %c0_7, %c0_8] : memref<1x8x32xf32, #tpu.memory_space<vmem>>, vector<1x8x32xf32>
    %9 = vector.shape_cast %8 : vector<1x8x32xf32> to vector<8x32xf32>
    %10 = vector.shape_cast %7 : vector<8x32xf32> to vector<1x8x32xf32>
    tpu.vector_store %arg4[%c0_6, %c0_7, %c0_8], %10 {strides = array<i32>} : memref<1x8x32xf32, #tpu.memory_space<vmem>>, vector<1x8x32xf32>,
    return
  }
  func.func @transform_0(%arg0: i32) -> (i32, i32, i32) {
    %c0_i32 = arith.constant 0 : i32
    %c0_i32_0 = arith.constant 0 : i32
    %c0_i32_1 = arith.constant 0 : i32
    return %arg0, %c0_i32, %c0_i32_0 : i32, i32, i32
  }
  func.func @transform_1(%arg0: i32) -> (i32, i32) {
    %c0_i32 = arith.constant 0 : i32
    %c0_i32_0 = arith.constant 0 : i32
    %c0_i32_1 = arith.constant 0 : i32
    return %c0_i32, %c0_i32_0 : i32, i32
  }
  func.func @transform_2(%arg0: i32) -> (i32, i32) {
    %c0_i32 = arith.constant 0 : i32
    %c0_i32_0 = arith.constant 0 : i32
    %c0_i32_1 = arith.constant 0 : i32
    return %c0_i32, %c0_i32_0 : i32, i32
  }
  func.func @transform_3(%arg0: i32) -> (i32, i32, i32) {
    %c0_i32 = arith.constant 0 : i32
    %c0_i32_0 = arith.constant 0 : i32
    %c0_i32_1 = arith.constant 0 : i32
    return %arg0, %c0_i32, %c0_i32_0 : i32, i32, i32
  }
}

module attributes {stable_mosaic.version = 11 : i64} {
  func.func @_q_layer_kernel(%arg0: i32, %arg1: memref<1x8x32xf32, #tpu.memory_space<vmem>>, %arg2: memref<1x8x8xf32, #tpu.memory_space<vmem>>, %arg3: memref<32x96xbf16, #tpu.memory_space<vmem>>, %arg4: memref<1x96xf32, #tpu.memory_space<vmem>>, %arg5: memref<32x32xbf16, #tpu.memory_space<vmem>>, %arg6: memref<1x32xf32, #tpu.memory_space<vmem>>, %arg7: memref<1x32xf32, #tpu.memory_space<vmem>>, %arg8: memref<1x32xf32, #tpu.memory_space<vmem>>, %arg9: memref<32x64xbf16, #tpu.memory_space<vmem>>, %arg10: memref<1x64xf32, #tpu.memory_space<vmem>>, %arg11: memref<64x32xbf16, #tpu.memory_space<vmem>>, %arg12: memref<1x32xf32, #tpu.memory_space<vmem>>, %arg13: memref<1x32xf32, #tpu.memory_space<vmem>>, %arg14: memref<1x32xf32, #tpu.memory_space<vmem>>, %arg15: memref<1x8x32xf32, #tpu.memory_space<vmem>>) attributes {dimension_semantics = [#tpu.dimension_semantics<parallel>], iteration_bounds = array<i64: 2>, scalar_prefetch = 0 : i64, scratch_operands = 0 : i64, tpu.core_type = #tpu.core_type<tc>, window_params = [{transform_indices = @transform_0, window_bounds = array<i64: 1, 8, 32>}, {transform_indices = @transform_1, window_bounds = array<i64: 1, 8, 8>}, {pipeline_mode = #tpu.pipeline_mode<synchronous>, transform_indices = @transform_2, window_bounds = array<i64: 32, 96>}, {pipeline_mode = #tpu.pipeline_mode<synchronous>, transform_indices = @transform_3, window_bounds = array<i64: 1, 96>}, {pipeline_mode = #tpu.pipeline_mode<synchronous>, transform_indices = @transform_4, window_bounds = array<i64: 32, 32>}, {pipeline_mode = #tpu.pipeline_mode<synchronous>, transform_indices = @transform_5, window_bounds = array<i64: 1, 32>}, {pipeline_mode = #tpu.pipeline_mode<synchronous>, transform_indices = @transform_6, window_bounds = array<i64: 1, 32>}, {pipeline_mode = #tpu.pipeline_mode<synchronous>, transform_indices = @transform_7, window_bounds = array<i64: 1, 32>}, {pipeline_mode = #tpu.pipeline_mode<synchronous>, transform_indices = @transform_8, window_bounds = array<i64: 32, 64>}, {pipeline_mode = #tpu.pipeline_mode<synchronous>, transform_indices = @transform_9, window_bounds = array<i64: 1, 64>}, {pipeline_mode = #tpu.pipeline_mode<synchronous>, transform_indices = @transform_10, window_bounds = array<i64: 64, 32>}, {pipeline_mode = #tpu.pipeline_mode<synchronous>, transform_indices = @transform_11, window_bounds = array<i64: 1, 32>}, {pipeline_mode = #tpu.pipeline_mode<synchronous>, transform_indices = @transform_12, window_bounds = array<i64: 1, 32>}, {pipeline_mode = #tpu.pipeline_mode<synchronous>, transform_indices = @transform_13, window_bounds = array<i64: 1, 32>}, {transform_indices = @transform_14, window_bounds = array<i64: 1, 8, 32>}]} {
    %c0 = arith.constant 0 : index
    %c0_0 = arith.constant 0 : index
    %c0_1 = arith.constant 0 : index
    %0 = vector.load %arg1[%c0, %c0_0, %c0_1] : memref<1x8x32xf32, #tpu.memory_space<vmem>>, vector<1x8x32xf32>
    %1 = vector.shape_cast %0 : vector<1x8x32xf32> to vector<8x32xf32>
    %c0_2 = arith.constant 0 : index
    %c0_3 = arith.constant 0 : index
    %c0_4 = arith.constant 0 : index
    %2 = vector.load %arg2[%c0_2, %c0_3, %c0_4] : memref<1x8x8xf32, #tpu.memory_space<vmem>>, vector<1x8x8xf32>
    %3 = vector.shape_cast %2 : vector<1x8x8xf32> to vector<8x8xf32>
    %c0_5 = arith.constant 0 : index
    %c0_6 = arith.constant 0 : index
    %4 = vector.load %arg3[%c0_5, %c0_6] : memref<32x96xbf16, #tpu.memory_space<vmem>>, vector<32x96xbf16>
    %c0_7 = arith.constant 0 : index
    %c0_8 = arith.constant 0 : index
    %5 = vector.load %arg4[%c0_7, %c0_8] : memref<1x96xf32, #tpu.memory_space<vmem>>, vector<1x96xf32>
    %c0_9 = arith.constant 0 : index
    %c0_10 = arith.constant 0 : index
    %6 = vector.load %arg5[%c0_9, %c0_10] : memref<32x32xbf16, #tpu.memory_space<vmem>>, vector<32x32xbf16>
    %c0_11 = arith.constant 0 : index
    %c0_12 = arith.constant 0 : index
    %7 = vector.load %arg6[%c0_11, %c0_12] : memref<1x32xf32, #tpu.memory_space<vmem>>, vector<1x32xf32>
    %8 = arith.truncf %1 : vector<8x32xf32> to vector<8x32xbf16>
    %cst = arith.constant dense<0.000000e+00> : vector<8x96xf32>
    %9 = tpu.matmul %8, %4, %cst {dimension_numbers = #tpu.dot_dimension_numbers<[1], [0], [0], [1], [0, 0, 1, 1], [], []>} : vector<8x32xbf16>, vector<32x96xbf16>, vector<8x96xf32> -> vector<8x96xf32>
    %10 = vector.broadcast %5 : vector<1x96xf32> to vector<8x96xf32>
    %11 = arith.addf %9, %10 : vector<8x96xf32>
    %12 = vector.extract_strided_slice %11 {offsets = [0, 0], sizes = [8, 32], strides = [1, 1]} : vector<8x96xf32> to vector<8x32xf32>
    %13 = vector.extract_strided_slice %11 {offsets = [0, 32], sizes = [8, 32], strides = [1, 1]} : vector<8x96xf32> to vector<8x32xf32>
    %14 = vector.extract_strided_slice %11 {offsets = [0, 64], sizes = [8, 32], strides = [1, 1]} : vector<8x96xf32> to vector<8x32xf32>
    %15 = tpu.transpose %13, [1, 0] : vector<8x32xf32> -> vector<32x8xf32>
    %16 = vector.extract_strided_slice %12 {offsets = [0, 0], sizes = [8, 8], strides = [1, 1]} : vector<8x32xf32> to vector<8x8xf32>
    %17 = vector.extract_strided_slice %15 {offsets = [0, 0], sizes = [8, 8], strides = [1, 1]} : vector<32x8xf32> to vector<8x8xf32>
    %cst_13 = arith.constant dense<0.000000e+00> : vector<8x8xf32>
    %18 = tpu.matmul %16, %17, %cst_13 {dimension_numbers = #tpu.dot_dimension_numbers<[1], [0], [0], [1], [0, 0, 1, 1], [], []>} : vector<8x8xf32>, vector<8x8xf32>, vector<8x8xf32> -> vector<8x8xf32>
    %cst_14 = arith.constant 0.353553385 : f32
    %19 = vector.broadcast %cst_14 : f32 to vector<8x8xf32>
    %20 = arith.mulf %18, %19 : vector<8x8xf32>
    %21 = arith.addf %20, %3 : vector<8x8xf32>
    %cst_15 = arith.constant dense<0xFF800000> : vector<8xf32>
    %22 = vector.multi_reduction <maximumf>, %21, %cst_15 [1] : vector<8x8xf32> to vector<8xf32>
    %23 = vector.shape_cast %22 : vector<8xf32> to vector<8x1xf32>
    %24 = vector.broadcast %23 : vector<8x1xf32> to vector<8x8xf32>
    %25 = arith.subf %21, %24 : vector<8x8xf32>
    %26 = math.exp %25 : vector<8x8xf32>
    %cst_16 = arith.constant dense<0.000000e+00> : vector<8xf32>
    %27 = vector.multi_reduction <add>, %26, %cst_16 [1] : vector<8x8xf32> to vector<8xf32>
    %28 = vector.shape_cast %27 : vector<8xf32> to vector<8x1xf32>
    %29 = tpu.reciprocal %28 {approx = true} : vector<8x1xf32> -> vector<8x1xf32>
    %30 = vector.broadcast %29 : vector<8x1xf32> to vector<8x8xf32>
    %31 = arith.mulf %26, %30 : vector<8x8xf32>
    %32 = vector.extract_strided_slice %14 {offsets = [0, 0], sizes = [8, 8], strides = [1, 1]} : vector<8x32xf32> to vector<8x8xf32>
    %cst_17 = arith.constant dense<0.000000e+00> : vector<8x8xf32>
    %33 = tpu.matmul %31, %32, %cst_17 {dimension_numbers = #tpu.dot_dimension_numbers<[1], [0], [0], [1], [0, 0, 1, 1], [], []>} : vector<8x8xf32>, vector<8x8xf32>, vector<8x8xf32> -> vector<8x8xf32>
    %34 = vector.extract_strided_slice %12 {offsets = [0, 8], sizes = [8, 8], strides = [1, 1]} : vector<8x32xf32> to vector<8x8xf32>
    %35 = vector.extract_strided_slice %15 {offsets = [8, 0], sizes = [8, 8], strides = [1, 1]} : vector<32x8xf32> to vector<8x8xf32>
    %cst_18 = arith.constant dense<0.000000e+00> : vector<8x8xf32>
    %36 = tpu.matmul %34, %35, %cst_18 {dimension_numbers = #tpu.dot_dimension_numbers<[1], [0], [0], [1], [0, 0, 1, 1], [], []>} : vector<8x8xf32>, vector<8x8xf32>, vector<8x8xf32> -> vector<8x8xf32>
    %cst_19 = arith.constant 0.353553385 : f32
    %37 = vector.broadcast %cst_19 : f32 to vector<8x8xf32>
    %38 = arith.mulf %36, %37 : vector<8x8xf32>
    %39 = arith.addf %38, %3 : vector<8x8xf32>
    %cst_20 = arith.constant dense<0xFF800000> : vector<8xf32>
    %40 = vector.multi_reduction <maximumf>, %39, %cst_20 [1] : vector<8x8xf32> to vector<8xf32>
    %41 = vector.shape_cast %40 : vector<8xf32> to vector<8x1xf32>
    %42 = vector.broadcast %41 : vector<8x1xf32> to vector<8x8xf32>
    %43 = arith.subf %39, %42 : vector<8x8xf32>
    %44 = math.exp %43 : vector<8x8xf32>
    %cst_21 = arith.constant dense<0.000000e+00> : vector<8xf32>
    %45 = vector.multi_reduction <add>, %44, %cst_21 [1] : vector<8x8xf32> to vector<8xf32>
    %46 = vector.shape_cast %45 : vector<8xf32> to vector<8x1xf32>
    %47 = tpu.reciprocal %46 {approx = true} : vector<8x1xf32> -> vector<8x1xf32>
    %48 = vector.broadcast %47 : vector<8x1xf32> to vector<8x8xf32>
    %49 = arith.mulf %44, %48 : vector<8x8xf32>
    %50 = vector.extract_strided_slice %14 {offsets = [0, 8], sizes = [8, 8], strides = [1, 1]} : vector<8x32xf32> to vector<8x8xf32>
    %cst_22 = arith.constant dense<0.000000e+00> : vector<8x8xf32>
    %51 = tpu.matmul %49, %50, %cst_22 {dimension_numbers = #tpu.dot_dimension_numbers<[1], [0], [0], [1], [0, 0, 1, 1], [], []>} : vector<8x8xf32>, vector<8x8xf32>, vector<8x8xf32> -> vector<8x8xf32>
    %52 = vector.extract_strided_slice %12 {offsets = [0, 16], sizes = [8, 8], strides = [1, 1]} : vector<8x32xf32> to vector<8x8xf32>
    %53 = vector.extract_strided_slice %15 {offsets = [16, 0], sizes = [8, 8], strides = [1, 1]} : vector<32x8xf32> to vector<8x8xf32>
    %cst_23 = arith.constant dense<0.000000e+00> : vector<8x8xf32>
    %54 = tpu.matmul %52, %53, %cst_23 {dimension_numbers = #tpu.dot_dimension_numbers<[1], [0], [0], [1], [0, 0, 1, 1], [], []>} : vector<8x8xf32>, vector<8x8xf32>, vector<8x8xf32> -> vector<8x8xf32>
    %cst_24 = arith.constant 0.353553385 : f32
    %55 = vector.broadcast %cst_24 : f32 to vector<8x8xf32>
    %56 = arith.mulf %54, %55 : vector<8x8xf32>
    %57 = arith.addf %56, %3 : vector<8x8xf32>
    %cst_25 = arith.constant dense<0xFF800000> : vector<8xf32>
    %58 = vector.multi_reduction <maximumf>, %57, %cst_25 [1] : vector<8x8xf32> to vector<8xf32>
    %59 = vector.shape_cast %58 : vector<8xf32> to vector<8x1xf32>
    %60 = vector.broadcast %59 : vector<8x1xf32> to vector<8x8xf32>
    %61 = arith.subf %57, %60 : vector<8x8xf32>
    %62 = math.exp %61 : vector<8x8xf32>
    %cst_26 = arith.constant dense<0.000000e+00> : vector<8xf32>
    %63 = vector.multi_reduction <add>, %62, %cst_26 [1] : vector<8x8xf32> to vector<8xf32>
    %64 = vector.shape_cast %63 : vector<8xf32> to vector<8x1xf32>
    %65 = tpu.reciprocal %64 {approx = true} : vector<8x1xf32> -> vector<8x1xf32>
    %66 = vector.broadcast %65 : vector<8x1xf32> to vector<8x8xf32>
    %67 = arith.mulf %62, %66 : vector<8x8xf32>
    %68 = vector.extract_strided_slice %14 {offsets = [0, 16], sizes = [8, 8], strides = [1, 1]} : vector<8x32xf32> to vector<8x8xf32>
    %cst_27 = arith.constant dense<0.000000e+00> : vector<8x8xf32>
    %69 = tpu.matmul %67, %68, %cst_27 {dimension_numbers = #tpu.dot_dimension_numbers<[1], [0], [0], [1], [0, 0, 1, 1], [], []>} : vector<8x8xf32>, vector<8x8xf32>, vector<8x8xf32> -> vector<8x8xf32>
    %70 = vector.extract_strided_slice %12 {offsets = [0, 24], sizes = [8, 8], strides = [1, 1]} : vector<8x32xf32> to vector<8x8xf32>
    %71 = vector.extract_strided_slice %15 {offsets = [24, 0], sizes = [8, 8], strides = [1, 1]} : vector<32x8xf32> to vector<8x8xf32>
    %cst_28 = arith.constant dense<0.000000e+00> : vector<8x8xf32>
    %72 = tpu.matmul %70, %71, %cst_28 {dimension_numbers = #tpu.dot_dimension_numbers<[1], [0], [0], [1], [0, 0, 1, 1], [], []>} : vector<8x8xf32>, vector<8x8xf32>, vector<8x8xf32> -> vector<8x8xf32>
    %cst_29 = arith.constant 0.353553385 : f32
    %73 = vector.broadcast %cst_29 : f32 to vector<8x8xf32>
    %74 = arith.mulf %72, %73 : vector<8x8xf32>
    %75 = arith.addf %74, %3 : vector<8x8xf32>
    %cst_30 = arith.constant dense<0xFF800000> : vector<8xf32>
    %76 = vector.multi_reduction <maximumf>, %75, %cst_30 [1] : vector<8x8xf32> to vector<8xf32>
    %77 = vector.shape_cast %76 : vector<8xf32> to vector<8x1xf32>
    %78 = vector.broadcast %77 : vector<8x1xf32> to vector<8x8xf32>
    %79 = arith.subf %75, %78 : vector<8x8xf32>
    %80 = math.exp %79 : vector<8x8xf32>
    %cst_31 = arith.constant dense<0.000000e+00> : vector<8xf32>
    %81 = vector.multi_reduction <add>, %80, %cst_31 [1] : vector<8x8xf32> to vector<8xf32>
    %82 = vector.shape_cast %81 : vector<8xf32> to vector<8x1xf32>
    %83 = tpu.reciprocal %82 {approx = true} : vector<8x1xf32> -> vector<8x1xf32>
    %84 = vector.broadcast %83 : vector<8x1xf32> to vector<8x8xf32>
    %85 = arith.mulf %80, %84 : vector<8x8xf32>
    %86 = vector.extract_strided_slice %14 {offsets = [0, 24], sizes = [8, 8], strides = [1, 1]} : vector<8x32xf32> to vector<8x8xf32>
    %cst_32 = arith.constant dense<0.000000e+00> : vector<8x8xf32>
    %87 = tpu.matmul %85, %86, %cst_32 {dimension_numbers = #tpu.dot_dimension_numbers<[1], [0], [0], [1], [0, 0, 1, 1], [], []>} : vector<8x8xf32>, vector<8x8xf32>, vector<8x8xf32> -> vector<8x8xf32>
    %88 = tpu.concatenate %33, %51, %69, %87 in 1 : vector<8x8xf32>, vector<8x8xf32>, vector<8x8xf32>, vector<8x8xf32> -> vector<8x32xf32>
    %89 = arith.truncf %88 : vector<8x32xf32> to vector<8x32xbf16>
    %cst_33 = arith.constant dense<0.000000e+00> : vector<8x32xf32>
    %90 = tpu.matmul %89, %6, %cst_33 {dimension_numbers = #tpu.dot_dimension_numbers<[1], [0], [0], [1], [0, 0, 1, 1], [], []>} : vector<8x32xbf16>, vector<32x32xbf16>, vector<8x32xf32> -> vector<8x32xf32>
    %91 = vector.broadcast %7 : vector<1x32xf32> to vector<8x32xf32>
    %92 = arith.addf %90, %91 : vector<8x32xf32>
    %93 = arith.addf %1, %92 : vector<8x32xf32>
    %c0_34 = arith.constant 0 : index
    %c0_35 = arith.constant 0 : index
    %94 = vector.load %arg7[%c0_34, %c0_35] : memref<1x32xf32, #tpu.memory_space<vmem>>, vector<1x32xf32>
    %c0_36 = arith.constant 0 : index
    %c0_37 = arith.constant 0 : index
    %95 = vector.load %arg8[%c0_36, %c0_37] : memref<1x32xf32, #tpu.memory_space<vmem>>, vector<1x32xf32>
    %cst_38 = arith.constant dense<0.000000e+00> : vector<8xf32>
    %96 = vector.multi_reduction <add>, %93, %cst_38 [1] : vector<8x32xf32> to vector<8xf32>
    %97 = vector.shape_cast %96 : vector<8xf32> to vector<8x1xf32>
    %cst_39 = arith.constant 3.200000e+01 : f32
    %98 = vector.broadcast %cst_39 : f32 to vector<8x1xf32>
    %99 = arith.divf %97, %98 : vector<8x1xf32>
    %100 = vector.broadcast %99 : vector<8x1xf32> to vector<8x32xf32>
    %101 = arith.subf %93, %100 : vector<8x32xf32>
    %102 = arith.mulf %101, %101 : vector<8x32xf32>
    %cst_40 = arith.constant dense<0.000000e+00> : vector<8xf32>
    %103 = vector.multi_reduction <add>, %102, %cst_40 [1] : vector<8x32xf32> to vector<8xf32>
    %104 = vector.shape_cast %103 : vector<8xf32> to vector<8x1xf32>
    %cst_41 = arith.constant 3.200000e+01 : f32
    %105 = vector.broadcast %cst_41 : f32 to vector<8x1xf32>
    %106 = arith.divf %104, %105 : vector<8x1xf32>
    %107 = vector.broadcast %99 : vector<8x1xf32> to vector<8x32xf32>
    %108 = arith.subf %93, %107 : vector<8x32xf32>
    %cst_42 = arith.constant 9.99999974E-6 : f32
    %109 = vector.broadcast %cst_42 : f32 to vector<8x1xf32>
    %110 = arith.addf %106, %109 : vector<8x1xf32>
    %111 = math.rsqrt %110 : vector<8x1xf32>
    %112 = vector.broadcast %111 : vector<8x1xf32> to vector<8x32xf32>
    %113 = arith.mulf %108, %112 : vector<8x32xf32>
    %114 = vector.broadcast %94 : vector<1x32xf32> to vector<8x32xf32>
    %115 = arith.mulf %113, %114 : vector<8x32xf32>
    %116 = vector.broadcast %95 : vector<1x32xf32> to vector<8x32xf32>
    %117 = arith.addf %115, %116 : vector<8x32xf32>
    %c0_43 = arith.constant 0 : index
    %c0_44 = arith.constant 0 : index
    %118 = vector.load %arg9[%c0_43, %c0_44] : memref<32x64xbf16, #tpu.memory_space<vmem>>, vector<32x64xbf16>
    %c0_45 = arith.constant 0 : index
    %c0_46 = arith.constant 0 : index
    %119 = vector.load %arg10[%c0_45, %c0_46] : memref<1x64xf32, #tpu.memory_space<vmem>>, vector<1x64xf32>
    %c0_47 = arith.constant 0 : index
    %c0_48 = arith.constant 0 : index
    %120 = vector.load %arg11[%c0_47, %c0_48] : memref<64x32xbf16, #tpu.memory_space<vmem>>, vector<64x32xbf16>
    %c0_49 = arith.constant 0 : index
    %c0_50 = arith.constant 0 : index
    %121 = vector.load %arg12[%c0_49, %c0_50] : memref<1x32xf32, #tpu.memory_space<vmem>>, vector<1x32xf32>
    %122 = arith.truncf %117 : vector<8x32xf32> to vector<8x32xbf16>
    %cst_51 = arith.constant dense<0.000000e+00> : vector<8x64xf32>
    %123 = tpu.matmul %122, %118, %cst_51 {dimension_numbers = #tpu.dot_dimension_numbers<[1], [0], [0], [1], [0, 0, 1, 1], [], []>} : vector<8x32xbf16>, vector<32x64xbf16>, vector<8x64xf32> -> vector<8x64xf32>
    %124 = vector.broadcast %119 : vector<1x64xf32> to vector<8x64xf32>
    %125 = arith.addf %123, %124 : vector<8x64xf32>
    %cst_52 = arith.constant 0.000000e+00 : f32
    %126 = vector.broadcast %cst_52 : f32 to vector<8x64xf32>
    %127 = arith.maximumf %125, %126 : vector<8x64xf32>
    %128 = arith.truncf %127 : vector<8x64xf32> to vector<8x64xbf16>
    %cst_53 = arith.constant dense<0.000000e+00> : vector<8x32xf32>
    %129 = tpu.matmul %128, %120, %cst_53 {dimension_numbers = #tpu.dot_dimension_numbers<[1], [0], [0], [1], [0, 0, 1, 1], [], []>} : vector<8x64xbf16>, vector<64x32xbf16>, vector<8x32xf32> -> vector<8x32xf32>
    %130 = vector.broadcast %121 : vector<1x32xf32> to vector<8x32xf32>
    %131 = arith.addf %129, %130 : vector<8x32xf32>
    %132 = arith.addf %117, %131 : vector<8x32xf32>
    %c0_54 = arith.constant 0 : index
    %c0_55 = arith.constant 0 : index
    %133 = vector.load %arg13[%c0_54, %c0_55] : memref<1x32xf32, #tpu.memory_space<vmem>>, vector<1x32xf32>
    %c0_56 = arith.constant 0 : index
    %c0_57 = arith.constant 0 : index
    %134 = vector.load %arg14[%c0_56, %c0_57] : memref<1x32xf32, #tpu.memory_space<vmem>>, vector<1x32xf32>
    %cst_58 = arith.constant dense<0.000000e+00> : vector<8xf32>
    %135 = vector.multi_reduction <add>, %132, %cst_58 [1] : vector<8x32xf32> to vector<8xf32>
    %136 = vector.shape_cast %135 : vector<8xf32> to vector<8x1xf32>
    %cst_59 = arith.constant 3.200000e+01 : f32
    %137 = vector.broadcast %cst_59 : f32 to vector<8x1xf32>
    %138 = arith.divf %136, %137 : vector<8x1xf32>
    %139 = vector.broadcast %138 : vector<8x1xf32> to vector<8x32xf32>
    %140 = arith.subf %132, %139 : vector<8x32xf32>
    %141 = arith.mulf %140, %140 : vector<8x32xf32>
    %cst_60 = arith.constant dense<0.000000e+00> : vector<8xf32>
    %142 = vector.multi_reduction <add>, %141, %cst_60 [1] : vector<8x32xf32> to vector<8xf32>
    %143 = vector.shape_cast %142 : vector<8xf32> to vector<8x1xf32>
    %cst_61 = arith.constant 3.200000e+01 : f32
    %144 = vector.broadcast %cst_61 : f32 to vector<8x1xf32>
    %145 = arith.divf %143, %144 : vector<8x1xf32>
    %146 = vector.broadcast %138 : vector<8x1xf32> to vector<8x32xf32>
    %147 = arith.subf %132, %146 : vector<8x32xf32>
    %cst_62 = arith.constant 9.99999974E-6 : f32
    %148 = vector.broadcast %cst_62 : f32 to vector<8x1xf32>
    %149 = arith.addf %145, %148 : vector<8x1xf32>
    %150 = math.rsqrt %149 : vector<8x1xf32>
    %151 = vector.broadcast %150 : vector<8x1xf32> to vector<8x32xf32>
    %152 = arith.mulf %147, %151 : vector<8x32xf32>
    %153 = vector.broadcast %133 : vector<1x32xf32> to vector<8x32xf32>
    %154 = arith.mulf %152, %153 : vector<8x32xf32>
    %155 = vector.broadcast %134 : vector<1x32xf32> to vector<8x32xf32>
    %156 = arith.addf %154, %155 : vector<8x32xf32>
    %c0_63 = arith.constant 0 : index
    %c0_64 = arith.constant 0 : index
    %c0_65 = arith.constant 0 : index
    %157 = vector.load %arg15[%c0_63, %c0_64, %c0_65] : memref<1x8x32xf32, #tpu.memory_space<vmem>>, vector<1x8x32xf32>
    %158 = vector.shape_cast %157 : vector<1x8x32xf32> to vector<8x32xf32>
    %159 = vector.shape_cast %156 : vector<8x32xf32> to vector<1x8x32xf32>
    tpu.vector_store %arg15[%c0_63, %c0_64, %c0_65], %159 {strides = array<i32>} : memref<1x8x32xf32, #tpu.memory_space<vmem>>, vector<1x8x32xf32>,
    return
  }
  func.func @transform_0(%arg0: i32) -> (i32, i32, i32) {
    %c0_i32 = arith.constant 0 : i32
    %c0_i32_0 = arith.constant 0 : i32
    %c0_i32_1 = arith.constant 0 : i32
    return %arg0, %c0_i32, %c0_i32_0 : i32, i32, i32
  }
  func.func @transform_1(%arg0: i32) -> (i32, i32, i32) {
    %c0_i32 = arith.constant 0 : i32
    %c0_i32_0 = arith.constant 0 : i32
    %c0_i32_1 = arith.constant 0 : i32
    return %arg0, %c0_i32, %c0_i32_0 : i32, i32, i32
  }
  func.func @transform_2(%arg0: i32) -> (i32, i32) {
    %c0_i32 = arith.constant 0 : i32
    %c0_i32_0 = arith.constant 0 : i32
    %c0_i32_1 = arith.constant 0 : i32
    return %c0_i32, %c0_i32_0 : i32, i32
  }
  func.func @transform_3(%arg0: i32) -> (i32, i32) {
    %c0_i32 = arith.constant 0 : i32
    %c0_i32_0 = arith.constant 0 : i32
    %c0_i32_1 = arith.constant 0 : i32
    return %c0_i32, %c0_i32_0 : i32, i32
  }
  func.func @transform_4(%arg0: i32) -> (i32, i32) {
    %c0_i32 = arith.constant 0 : i32
    %c0_i32_0 = arith.constant 0 : i32
    %c0_i32_1 = arith.constant 0 : i32
    return %c0_i32, %c0_i32_0 : i32, i32
  }
  func.func @transform_5(%arg0: i32) -> (i32, i32) {
    %c0_i32 = arith.constant 0 : i32
    %c0_i32_0 = arith.constant 0 : i32
    %c0_i32_1 = arith.constant 0 : i32
    return %c0_i32, %c0_i32_0 : i32, i32
  }
  func.func @transform_6(%arg0: i32) -> (i32, i32) {
    %c0_i32 = arith.constant 0 : i32
    %c0_i32_0 = arith.constant 0 : i32
    %c0_i32_1 = arith.constant 0 : i32
    return %c0_i32, %c0_i32_0 : i32, i32
  }
  func.func @transform_7(%arg0: i32) -> (i32, i32) {
    %c0_i32 = arith.constant 0 : i32
    %c0_i32_0 = arith.constant 0 : i32
    %c0_i32_1 = arith.constant 0 : i32
    return %c0_i32, %c0_i32_0 : i32, i32
  }
  func.func @transform_8(%arg0: i32) -> (i32, i32) {
    %c0_i32 = arith.constant 0 : i32
    %c0_i32_0 = arith.constant 0 : i32
    %c0_i32_1 = arith.constant 0 : i32
    return %c0_i32, %c0_i32_0 : i32, i32
  }
  func.func @transform_9(%arg0: i32) -> (i32, i32) {
    %c0_i32 = arith.constant 0 : i32
    %c0_i32_0 = arith.constant 0 : i32
    %c0_i32_1 = arith.constant 0 : i32
    return %c0_i32, %c0_i32_0 : i32, i32
  }
  func.func @transform_10(%arg0: i32) -> (i32, i32) {
    %c0_i32 = arith.constant 0 : i32
    %c0_i32_0 = arith.constant 0 : i32
    %c0_i32_1 = arith.constant 0 : i32
    return %c0_i32, %c0_i32_0 : i32, i32
  }
  func.func @transform_11(%arg0: i32) -> (i32, i32) {
    %c0_i32 = arith.constant 0 : i32
    %c0_i32_0 = arith.constant 0 : i32
    %c0_i32_1 = arith.constant 0 : i32
    return %c0_i32, %c0_i32_0 : i32, i32
  }
  func.func @transform_12(%arg0: i32) -> (i32, i32) {
    %c0_i32 = arith.constant 0 : i32
    %c0_i32_0 = arith.constant 0 : i32
    %c0_i32_1 = arith.constant 0 : i32
    return %c0_i32, %c0_i32_0 : i32, i32
  }
  func.func @transform_13(%arg0: i32) -> (i32, i32) {
    %c0_i32 = arith.constant 0 : i32
    %c0_i32_0 = arith.constant 0 : i32
    %c0_i32_1 = arith.constant 0 : i32
    return %c0_i32, %c0_i32_0 : i32, i32
  }
  func.func @transform_14(%arg0: i32) -> (i32, i32, i32) {
    %c0_i32 = arith.constant 0 : i32
    %c0_i32_0 = arith.constant 0 : i32
    %c0_i32_1 = arith.constant 0 : i32
    return %arg0, %c0_i32, %c0_i32_0 : i32, i32, i32
  }
}

module attributes {stable_mosaic.version = 11 : i64} {
  func.func @_v_layer_kernel(%arg0: i32, %arg1: memref<1x16x32xf32, #tpu.memory_space<vmem>>, %arg2: memref<1x8x32xf32, #tpu.memory_space<vmem>>, %arg3: memref<1x1x8xf32, #tpu.memory_space<vmem>>, %arg4: memref<32x96xbf16, #tpu.memory_space<vmem>>, %arg5: memref<1x96xf32, #tpu.memory_space<vmem>>, %arg6: memref<32x32xbf16, #tpu.memory_space<vmem>>, %arg7: memref<1x32xf32, #tpu.memory_space<vmem>>, %arg8: memref<1x32xf32, #tpu.memory_space<vmem>>, %arg9: memref<1x32xf32, #tpu.memory_space<vmem>>, %arg10: memref<32x32xbf16, #tpu.memory_space<vmem>>, %arg11: memref<1x32xf32, #tpu.memory_space<vmem>>, %arg12: memref<32x64xbf16, #tpu.memory_space<vmem>>, %arg13: memref<1x64xf32, #tpu.memory_space<vmem>>, %arg14: memref<32x32xbf16, #tpu.memory_space<vmem>>, %arg15: memref<1x32xf32, #tpu.memory_space<vmem>>, %arg16: memref<1x32xf32, #tpu.memory_space<vmem>>, %arg17: memref<1x32xf32, #tpu.memory_space<vmem>>, %arg18: memref<32x64xbf16, #tpu.memory_space<vmem>>, %arg19: memref<1x64xf32, #tpu.memory_space<vmem>>, %arg20: memref<64x32xbf16, #tpu.memory_space<vmem>>, %arg21: memref<1x32xf32, #tpu.memory_space<vmem>>, %arg22: memref<1x32xf32, #tpu.memory_space<vmem>>, %arg23: memref<1x32xf32, #tpu.memory_space<vmem>>, %arg24: memref<1x16x32xf32, #tpu.memory_space<vmem>>) attributes {dimension_semantics = [#tpu.dimension_semantics<parallel>], iteration_bounds = array<i64: 2>, scalar_prefetch = 0 : i64, scratch_operands = 0 : i64, tpu.core_type = #tpu.core_type<tc>, window_params = [{transform_indices = @transform_0, window_bounds = array<i64: 1, 16, 32>}, {transform_indices = @transform_1, window_bounds = array<i64: 1, 8, 32>}, {transform_indices = @transform_2, window_bounds = array<i64: 1, 1, 8>}, {pipeline_mode = #tpu.pipeline_mode<synchronous>, transform_indices = @transform_3, window_bounds = array<i64: 32, 96>}, {pipeline_mode = #tpu.pipeline_mode<synchronous>, transform_indices = @transform_4, window_bounds = array<i64: 1, 96>}, {pipeline_mode = #tpu.pipeline_mode<synchronous>, transform_indices = @transform_5, window_bounds = array<i64: 32, 32>}, {pipeline_mode = #tpu.pipeline_mode<synchronous>, transform_indices = @transform_6, window_bounds = array<i64: 1, 32>}, {pipeline_mode = #tpu.pipeline_mode<synchronous>, transform_indices = @transform_7, window_bounds = array<i64: 1, 32>}, {pipeline_mode = #tpu.pipeline_mode<synchronous>, transform_indices = @transform_8, window_bounds = array<i64: 1, 32>}, {pipeline_mode = #tpu.pipeline_mode<synchronous>, transform_indices = @transform_9, window_bounds = array<i64: 32, 32>}, {pipeline_mode = #tpu.pipeline_mode<synchronous>, transform_indices = @transform_10, window_bounds = array<i64: 1, 32>}, {pipeline_mode = #tpu.pipeline_mode<synchronous>, transform_indices = @transform_11, window_bounds = array<i64: 32, 64>}, {pipeline_mode = #tpu.pipeline_mode<synchronous>, transform_indices = @transform_12, window_bounds = array<i64: 1, 64>}, {pipeline_mode = #tpu.pipeline_mode<synchronous>, transform_indices = @transform_13, window_bounds = array<i64: 32, 32>}, {pipeline_mode = #tpu.pipeline_mode<synchronous>, transform_indices = @transform_14, window_bounds = array<i64: 1, 32>}, {pipeline_mode = #tpu.pipeline_mode<synchronous>, transform_indices = @transform_15, window_bounds = array<i64: 1, 32>}, {pipeline_mode = #tpu.pipeline_mode<synchronous>, transform_indices = @transform_16, window_bounds = array<i64: 1, 32>}, {pipeline_mode = #tpu.pipeline_mode<synchronous>, transform_indices = @transform_17, window_bounds = array<i64: 32, 64>}, {pipeline_mode = #tpu.pipeline_mode<synchronous>, transform_indices = @transform_18, window_bounds = array<i64: 1, 64>}, {pipeline_mode = #tpu.pipeline_mode<synchronous>, transform_indices = @transform_19, window_bounds = array<i64: 64, 32>}, {pipeline_mode = #tpu.pipeline_mode<synchronous>, transform_indices = @transform_20, window_bounds = array<i64: 1, 32>}, {pipeline_mode = #tpu.pipeline_mode<synchronous>, transform_indices = @transform_21, window_bounds = array<i64: 1, 32>}, {pipeline_mode = #tpu.pipeline_mode<synchronous>, transform_indices = @transform_22, window_bounds = array<i64: 1, 32>}, {transform_indices = @transform_23, window_bounds = array<i64: 1, 16, 32>}]} {
    %c0 = arith.constant 0 : index
    %c0_0 = arith.constant 0 : index
    %c0_1 = arith.constant 0 : index
    %0 = vector.load %arg1[%c0, %c0_0, %c0_1] : memref<1x16x32xf32, #tpu.memory_space<vmem>>, vector<1x16x32xf32>
    %1 = vector.shape_cast %0 : vector<1x16x32xf32> to vector<16x32xf32>
    %c0_2 = arith.constant 0 : index
    %c0_3 = arith.constant 0 : index
    %c0_4 = arith.constant 0 : index
    %2 = vector.load %arg2[%c0_2, %c0_3, %c0_4] : memref<1x8x32xf32, #tpu.memory_space<vmem>>, vector<1x8x32xf32>
    %3 = vector.shape_cast %2 : vector<1x8x32xf32> to vector<8x32xf32>
    %c0_5 = arith.constant 0 : index
    %c0_6 = arith.constant 0 : index
    %c0_7 = arith.constant 0 : index
    %4 = vector.load %arg3[%c0_5, %c0_6, %c0_7] : memref<1x1x8xf32, #tpu.memory_space<vmem>>, vector<1x1x8xf32>
    %5 = vector.shape_cast %4 : vector<1x1x8xf32> to vector<1x8xf32>
    %c0_8 = arith.constant 0 : index
    %c0_9 = arith.constant 0 : index
    %6 = vector.load %arg4[%c0_8, %c0_9] : memref<32x96xbf16, #tpu.memory_space<vmem>>, vector<32x96xbf16>
    %c0_10 = arith.constant 0 : index
    %c0_11 = arith.constant 0 : index
    %7 = vector.load %arg5[%c0_10, %c0_11] : memref<1x96xf32, #tpu.memory_space<vmem>>, vector<1x96xf32>
    %c0_12 = arith.constant 0 : index
    %c0_13 = arith.constant 0 : index
    %8 = vector.load %arg6[%c0_12, %c0_13] : memref<32x32xbf16, #tpu.memory_space<vmem>>, vector<32x32xbf16>
    %c0_14 = arith.constant 0 : index
    %c0_15 = arith.constant 0 : index
    %9 = vector.load %arg7[%c0_14, %c0_15] : memref<1x32xf32, #tpu.memory_space<vmem>>, vector<1x32xf32>
    %10 = arith.truncf %1 : vector<16x32xf32> to vector<16x32xbf16>
    %cst = arith.constant dense<0.000000e+00> : vector<16x96xf32>
    %11 = tpu.matmul %10, %6, %cst {dimension_numbers = #tpu.dot_dimension_numbers<[1], [0], [0], [1], [0, 0, 1, 1], [], []>} : vector<16x32xbf16>, vector<32x96xbf16>, vector<16x96xf32> -> vector<16x96xf32>
    %12 = vector.broadcast %7 : vector<1x96xf32> to vector<16x96xf32>
    %13 = arith.addf %11, %12 : vector<16x96xf32>
    %14 = vector.extract_strided_slice %13 {offsets = [0, 0], sizes = [16, 32], strides = [1, 1]} : vector<16x96xf32> to vector<16x32xf32>
    %15 = vector.extract_strided_slice %13 {offsets = [0, 32], sizes = [16, 32], strides = [1, 1]} : vector<16x96xf32> to vector<16x32xf32>
    %16 = vector.extract_strided_slice %13 {offsets = [0, 64], sizes = [16, 32], strides = [1, 1]} : vector<16x96xf32> to vector<16x32xf32>
    %17 = tpu.transpose %15, [1, 0] : vector<16x32xf32> -> vector<32x16xf32>
    %18 = vector.extract_strided_slice %14 {offsets = [0, 0], sizes = [16, 8], strides = [1, 1]} : vector<16x32xf32> to vector<16x8xf32>
    %19 = vector.extract_strided_slice %17 {offsets = [0, 0], sizes = [8, 16], strides = [1, 1]} : vector<32x16xf32> to vector<8x16xf32>
    %cst_16 = arith.constant dense<0.000000e+00> : vector<16x16xf32>
    %20 = tpu.matmul %18, %19, %cst_16 {dimension_numbers = #tpu.dot_dimension_numbers<[1], [0], [0], [1], [0, 0, 1, 1], [], []>} : vector<16x8xf32>, vector<8x16xf32>, vector<16x16xf32> -> vector<16x16xf32>
    %cst_17 = arith.constant 0.353553385 : f32
    %21 = vector.broadcast %cst_17 : f32 to vector<16x16xf32>
    %22 = arith.mulf %20, %21 : vector<16x16xf32>
    %cst_18 = arith.constant dense<0xFF800000> : vector<16xf32>
    %23 = vector.multi_reduction <maximumf>, %22, %cst_18 [1] : vector<16x16xf32> to vector<16xf32>
    %24 = vector.shape_cast %23 : vector<16xf32> to vector<16x1xf32>
    %25 = vector.broadcast %24 : vector<16x1xf32> to vector<16x16xf32>
    %26 = arith.subf %22, %25 : vector<16x16xf32>
    %27 = math.exp %26 : vector<16x16xf32>
    %cst_19 = arith.constant dense<0.000000e+00> : vector<16xf32>
    %28 = vector.multi_reduction <add>, %27, %cst_19 [1] : vector<16x16xf32> to vector<16xf32>
    %29 = vector.shape_cast %28 : vector<16xf32> to vector<16x1xf32>
    %30 = tpu.reciprocal %29 {approx = true} : vector<16x1xf32> -> vector<16x1xf32>
    %31 = vector.broadcast %30 : vector<16x1xf32> to vector<16x16xf32>
    %32 = arith.mulf %27, %31 : vector<16x16xf32>
    %33 = vector.extract_strided_slice %16 {offsets = [0, 0], sizes = [16, 8], strides = [1, 1]} : vector<16x32xf32> to vector<16x8xf32>
    %cst_20 = arith.constant dense<0.000000e+00> : vector<16x8xf32>
    %34 = tpu.matmul %32, %33, %cst_20 {dimension_numbers = #tpu.dot_dimension_numbers<[1], [0], [0], [1], [0, 0, 1, 1], [], []>} : vector<16x16xf32>, vector<16x8xf32>, vector<16x8xf32> -> vector<16x8xf32>
    %35 = vector.extract_strided_slice %14 {offsets = [0, 8], sizes = [16, 8], strides = [1, 1]} : vector<16x32xf32> to vector<16x8xf32>
    %36 = vector.extract_strided_slice %17 {offsets = [8, 0], sizes = [8, 16], strides = [1, 1]} : vector<32x16xf32> to vector<8x16xf32>
    %cst_21 = arith.constant dense<0.000000e+00> : vector<16x16xf32>
    %37 = tpu.matmul %35, %36, %cst_21 {dimension_numbers = #tpu.dot_dimension_numbers<[1], [0], [0], [1], [0, 0, 1, 1], [], []>} : vector<16x8xf32>, vector<8x16xf32>, vector<16x16xf32> -> vector<16x16xf32>
    %cst_22 = arith.constant 0.353553385 : f32
    %38 = vector.broadcast %cst_22 : f32 to vector<16x16xf32>
    %39 = arith.mulf %37, %38 : vector<16x16xf32>
    %cst_23 = arith.constant dense<0xFF800000> : vector<16xf32>
    %40 = vector.multi_reduction <maximumf>, %39, %cst_23 [1] : vector<16x16xf32> to vector<16xf32>
    %41 = vector.shape_cast %40 : vector<16xf32> to vector<16x1xf32>
    %42 = vector.broadcast %41 : vector<16x1xf32> to vector<16x16xf32>
    %43 = arith.subf %39, %42 : vector<16x16xf32>
    %44 = math.exp %43 : vector<16x16xf32>
    %cst_24 = arith.constant dense<0.000000e+00> : vector<16xf32>
    %45 = vector.multi_reduction <add>, %44, %cst_24 [1] : vector<16x16xf32> to vector<16xf32>
    %46 = vector.shape_cast %45 : vector<16xf32> to vector<16x1xf32>
    %47 = tpu.reciprocal %46 {approx = true} : vector<16x1xf32> -> vector<16x1xf32>
    %48 = vector.broadcast %47 : vector<16x1xf32> to vector<16x16xf32>
    %49 = arith.mulf %44, %48 : vector<16x16xf32>
    %50 = vector.extract_strided_slice %16 {offsets = [0, 8], sizes = [16, 8], strides = [1, 1]} : vector<16x32xf32> to vector<16x8xf32>
    %cst_25 = arith.constant dense<0.000000e+00> : vector<16x8xf32>
    %51 = tpu.matmul %49, %50, %cst_25 {dimension_numbers = #tpu.dot_dimension_numbers<[1], [0], [0], [1], [0, 0, 1, 1], [], []>} : vector<16x16xf32>, vector<16x8xf32>, vector<16x8xf32> -> vector<16x8xf32>
    %52 = vector.extract_strided_slice %14 {offsets = [0, 16], sizes = [16, 8], strides = [1, 1]} : vector<16x32xf32> to vector<16x8xf32>
    %53 = vector.extract_strided_slice %17 {offsets = [16, 0], sizes = [8, 16], strides = [1, 1]} : vector<32x16xf32> to vector<8x16xf32>
    %cst_26 = arith.constant dense<0.000000e+00> : vector<16x16xf32>
    %54 = tpu.matmul %52, %53, %cst_26 {dimension_numbers = #tpu.dot_dimension_numbers<[1], [0], [0], [1], [0, 0, 1, 1], [], []>} : vector<16x8xf32>, vector<8x16xf32>, vector<16x16xf32> -> vector<16x16xf32>
    %cst_27 = arith.constant 0.353553385 : f32
    %55 = vector.broadcast %cst_27 : f32 to vector<16x16xf32>
    %56 = arith.mulf %54, %55 : vector<16x16xf32>
    %cst_28 = arith.constant dense<0xFF800000> : vector<16xf32>
    %57 = vector.multi_reduction <maximumf>, %56, %cst_28 [1] : vector<16x16xf32> to vector<16xf32>
    %58 = vector.shape_cast %57 : vector<16xf32> to vector<16x1xf32>
    %59 = vector.broadcast %58 : vector<16x1xf32> to vector<16x16xf32>
    %60 = arith.subf %56, %59 : vector<16x16xf32>
    %61 = math.exp %60 : vector<16x16xf32>
    %cst_29 = arith.constant dense<0.000000e+00> : vector<16xf32>
    %62 = vector.multi_reduction <add>, %61, %cst_29 [1] : vector<16x16xf32> to vector<16xf32>
    %63 = vector.shape_cast %62 : vector<16xf32> to vector<16x1xf32>
    %64 = tpu.reciprocal %63 {approx = true} : vector<16x1xf32> -> vector<16x1xf32>
    %65 = vector.broadcast %64 : vector<16x1xf32> to vector<16x16xf32>
    %66 = arith.mulf %61, %65 : vector<16x16xf32>
    %67 = vector.extract_strided_slice %16 {offsets = [0, 16], sizes = [16, 8], strides = [1, 1]} : vector<16x32xf32> to vector<16x8xf32>
    %cst_30 = arith.constant dense<0.000000e+00> : vector<16x8xf32>
    %68 = tpu.matmul %66, %67, %cst_30 {dimension_numbers = #tpu.dot_dimension_numbers<[1], [0], [0], [1], [0, 0, 1, 1], [], []>} : vector<16x16xf32>, vector<16x8xf32>, vector<16x8xf32> -> vector<16x8xf32>
    %69 = vector.extract_strided_slice %14 {offsets = [0, 24], sizes = [16, 8], strides = [1, 1]} : vector<16x32xf32> to vector<16x8xf32>
    %70 = vector.extract_strided_slice %17 {offsets = [24, 0], sizes = [8, 16], strides = [1, 1]} : vector<32x16xf32> to vector<8x16xf32>
    %cst_31 = arith.constant dense<0.000000e+00> : vector<16x16xf32>
    %71 = tpu.matmul %69, %70, %cst_31 {dimension_numbers = #tpu.dot_dimension_numbers<[1], [0], [0], [1], [0, 0, 1, 1], [], []>} : vector<16x8xf32>, vector<8x16xf32>, vector<16x16xf32> -> vector<16x16xf32>
    %cst_32 = arith.constant 0.353553385 : f32
    %72 = vector.broadcast %cst_32 : f32 to vector<16x16xf32>
    %73 = arith.mulf %71, %72 : vector<16x16xf32>
    %cst_33 = arith.constant dense<0xFF800000> : vector<16xf32>
    %74 = vector.multi_reduction <maximumf>, %73, %cst_33 [1] : vector<16x16xf32> to vector<16xf32>
    %75 = vector.shape_cast %74 : vector<16xf32> to vector<16x1xf32>
    %76 = vector.broadcast %75 : vector<16x1xf32> to vector<16x16xf32>
    %77 = arith.subf %73, %76 : vector<16x16xf32>
    %78 = math.exp %77 : vector<16x16xf32>
    %cst_34 = arith.constant dense<0.000000e+00> : vector<16xf32>
    %79 = vector.multi_reduction <add>, %78, %cst_34 [1] : vector<16x16xf32> to vector<16xf32>
    %80 = vector.shape_cast %79 : vector<16xf32> to vector<16x1xf32>
    %81 = tpu.reciprocal %80 {approx = true} : vector<16x1xf32> -> vector<16x1xf32>
    %82 = vector.broadcast %81 : vector<16x1xf32> to vector<16x16xf32>
    %83 = arith.mulf %78, %82 : vector<16x16xf32>
    %84 = vector.extract_strided_slice %16 {offsets = [0, 24], sizes = [16, 8], strides = [1, 1]} : vector<16x32xf32> to vector<16x8xf32>
    %cst_35 = arith.constant dense<0.000000e+00> : vector<16x8xf32>
    %85 = tpu.matmul %83, %84, %cst_35 {dimension_numbers = #tpu.dot_dimension_numbers<[1], [0], [0], [1], [0, 0, 1, 1], [], []>} : vector<16x16xf32>, vector<16x8xf32>, vector<16x8xf32> -> vector<16x8xf32>
    %86 = tpu.concatenate %34, %51, %68, %85 in 1 : vector<16x8xf32>, vector<16x8xf32>, vector<16x8xf32>, vector<16x8xf32> -> vector<16x32xf32>
    %87 = arith.truncf %86 : vector<16x32xf32> to vector<16x32xbf16>
    %cst_36 = arith.constant dense<0.000000e+00> : vector<16x32xf32>
    %88 = tpu.matmul %87, %8, %cst_36 {dimension_numbers = #tpu.dot_dimension_numbers<[1], [0], [0], [1], [0, 0, 1, 1], [], []>} : vector<16x32xbf16>, vector<32x32xbf16>, vector<16x32xf32> -> vector<16x32xf32>
    %89 = vector.broadcast %9 : vector<1x32xf32> to vector<16x32xf32>
    %90 = arith.addf %88, %89 : vector<16x32xf32>
    %91 = arith.addf %1, %90 : vector<16x32xf32>
    %c0_37 = arith.constant 0 : index
    %c0_38 = arith.constant 0 : index
    %92 = vector.load %arg8[%c0_37, %c0_38] : memref<1x32xf32, #tpu.memory_space<vmem>>, vector<1x32xf32>
    %c0_39 = arith.constant 0 : index
    %c0_40 = arith.constant 0 : index
    %93 = vector.load %arg9[%c0_39, %c0_40] : memref<1x32xf32, #tpu.memory_space<vmem>>, vector<1x32xf32>
    %cst_41 = arith.constant dense<0.000000e+00> : vector<16xf32>
    %94 = vector.multi_reduction <add>, %91, %cst_41 [1] : vector<16x32xf32> to vector<16xf32>
    %95 = vector.shape_cast %94 : vector<16xf32> to vector<16x1xf32>
    %cst_42 = arith.constant 3.200000e+01 : f32
    %96 = vector.broadcast %cst_42 : f32 to vector<16x1xf32>
    %97 = arith.divf %95, %96 : vector<16x1xf32>
    %98 = vector.broadcast %97 : vector<16x1xf32> to vector<16x32xf32>
    %99 = arith.subf %91, %98 : vector<16x32xf32>
    %100 = arith.mulf %99, %99 : vector<16x32xf32>
    %cst_43 = arith.constant dense<0.000000e+00> : vector<16xf32>
    %101 = vector.multi_reduction <add>, %100, %cst_43 [1] : vector<16x32xf32> to vector<16xf32>
    %102 = vector.shape_cast %101 : vector<16xf32> to vector<16x1xf32>
    %cst_44 = arith.constant 3.200000e+01 : f32
    %103 = vector.broadcast %cst_44 : f32 to vector<16x1xf32>
    %104 = arith.divf %102, %103 : vector<16x1xf32>
    %105 = vector.broadcast %97 : vector<16x1xf32> to vector<16x32xf32>
    %106 = arith.subf %91, %105 : vector<16x32xf32>
    %cst_45 = arith.constant 9.99999974E-6 : f32
    %107 = vector.broadcast %cst_45 : f32 to vector<16x1xf32>
    %108 = arith.addf %104, %107 : vector<16x1xf32>
    %109 = math.rsqrt %108 : vector<16x1xf32>
    %110 = vector.broadcast %109 : vector<16x1xf32> to vector<16x32xf32>
    %111 = arith.mulf %106, %110 : vector<16x32xf32>
    %112 = vector.broadcast %92 : vector<1x32xf32> to vector<16x32xf32>
    %113 = arith.mulf %111, %112 : vector<16x32xf32>
    %114 = vector.broadcast %93 : vector<1x32xf32> to vector<16x32xf32>
    %115 = arith.addf %113, %114 : vector<16x32xf32>
    %c0_46 = arith.constant 0 : index
    %c0_47 = arith.constant 0 : index
    %116 = vector.load %arg10[%c0_46, %c0_47] : memref<32x32xbf16, #tpu.memory_space<vmem>>, vector<32x32xbf16>
    %c0_48 = arith.constant 0 : index
    %c0_49 = arith.constant 0 : index
    %117 = vector.load %arg11[%c0_48, %c0_49] : memref<1x32xf32, #tpu.memory_space<vmem>>, vector<1x32xf32>
    %c0_50 = arith.constant 0 : index
    %c0_51 = arith.constant 0 : index
    %118 = vector.load %arg12[%c0_50, %c0_51] : memref<32x64xbf16, #tpu.memory_space<vmem>>, vector<32x64xbf16>
    %c0_52 = arith.constant 0 : index
    %c0_53 = arith.constant 0 : index
    %119 = vector.load %arg13[%c0_52, %c0_53] : memref<1x64xf32, #tpu.memory_space<vmem>>, vector<1x64xf32>
    %c0_54 = arith.constant 0 : index
    %c0_55 = arith.constant 0 : index
    %120 = vector.load %arg14[%c0_54, %c0_55] : memref<32x32xbf16, #tpu.memory_space<vmem>>, vector<32x32xbf16>
    %c0_56 = arith.constant 0 : index
    %c0_57 = arith.constant 0 : index
    %121 = vector.load %arg15[%c0_56, %c0_57] : memref<1x32xf32, #tpu.memory_space<vmem>>, vector<1x32xf32>
    %122 = arith.truncf %115 : vector<16x32xf32> to vector<16x32xbf16>
    %cst_58 = arith.constant dense<0.000000e+00> : vector<16x32xf32>
    %123 = tpu.matmul %122, %116, %cst_58 {dimension_numbers = #tpu.dot_dimension_numbers<[1], [0], [0], [1], [0, 0, 1, 1], [], []>} : vector<16x32xbf16>, vector<32x32xbf16>, vector<16x32xf32> -> vector<16x32xf32>
    %124 = vector.broadcast %117 : vector<1x32xf32> to vector<16x32xf32>
    %125 = arith.addf %123, %124 : vector<16x32xf32>
    %126 = arith.truncf %3 : vector<8x32xf32> to vector<8x32xbf16>
    %cst_59 = arith.constant dense<0.000000e+00> : vector<8x64xf32>
    %127 = tpu.matmul %126, %118, %cst_59 {dimension_numbers = #tpu.dot_dimension_numbers<[1], [0], [0], [1], [0, 0, 1, 1], [], []>} : vector<8x32xbf16>, vector<32x64xbf16>, vector<8x64xf32> -> vector<8x64xf32>
    %128 = vector.broadcast %119 : vector<1x64xf32> to vector<8x64xf32>
    %129 = arith.addf %127, %128 : vector<8x64xf32>
    %130 = vector.extract_strided_slice %129 {offsets = [0, 0], sizes = [8, 32], strides = [1, 1]} : vector<8x64xf32> to vector<8x32xf32>
    %131 = vector.extract_strided_slice %129 {offsets = [0, 32], sizes = [8, 32], strides = [1, 1]} : vector<8x64xf32> to vector<8x32xf32>
    %132 = tpu.transpose %130, [1, 0] : vector<8x32xf32> -> vector<32x8xf32>
    %133 = vector.extract_strided_slice %125 {offsets = [0, 0], sizes = [16, 8], strides = [1, 1]} : vector<16x32xf32> to vector<16x8xf32>
    %134 = vector.extract_strided_slice %132 {offsets = [0, 0], sizes = [8, 8], strides = [1, 1]} : vector<32x8xf32> to vector<8x8xf32>
    %cst_60 = arith.constant dense<0.000000e+00> : vector<16x8xf32>
    %135 = tpu.matmul %133, %134, %cst_60 {dimension_numbers = #tpu.dot_dimension_numbers<[1], [0], [0], [1], [0, 0, 1, 1], [], []>} : vector<16x8xf32>, vector<8x8xf32>, vector<16x8xf32> -> vector<16x8xf32>
    %cst_61 = arith.constant 0.353553385 : f32
    %136 = vector.broadcast %cst_61 : f32 to vector<16x8xf32>
    %137 = arith.mulf %135, %136 : vector<16x8xf32>
    %138 = vector.broadcast %5 : vector<1x8xf32> to vector<16x8xf32>
    %139 = arith.addf %137, %138 : vector<16x8xf32>
    %cst_62 = arith.constant dense<0xFF800000> : vector<16xf32>
    %140 = vector.multi_reduction <maximumf>, %139, %cst_62 [1] : vector<16x8xf32> to vector<16xf32>
    %141 = vector.shape_cast %140 : vector<16xf32> to vector<16x1xf32>
    %142 = vector.broadcast %141 : vector<16x1xf32> to vector<16x8xf32>
    %143 = arith.subf %139, %142 : vector<16x8xf32>
    %144 = math.exp %143 : vector<16x8xf32>
    %cst_63 = arith.constant dense<0.000000e+00> : vector<16xf32>
    %145 = vector.multi_reduction <add>, %144, %cst_63 [1] : vector<16x8xf32> to vector<16xf32>
    %146 = vector.shape_cast %145 : vector<16xf32> to vector<16x1xf32>
    %147 = tpu.reciprocal %146 {approx = true} : vector<16x1xf32> -> vector<16x1xf32>
    %148 = vector.broadcast %147 : vector<16x1xf32> to vector<16x8xf32>
    %149 = arith.mulf %144, %148 : vector<16x8xf32>
    %150 = vector.extract_strided_slice %131 {offsets = [0, 0], sizes = [8, 8], strides = [1, 1]} : vector<8x32xf32> to vector<8x8xf32>
    %cst_64 = arith.constant dense<0.000000e+00> : vector<16x8xf32>
    %151 = tpu.matmul %149, %150, %cst_64 {dimension_numbers = #tpu.dot_dimension_numbers<[1], [0], [0], [1], [0, 0, 1, 1], [], []>} : vector<16x8xf32>, vector<8x8xf32>, vector<16x8xf32> -> vector<16x8xf32>
    %152 = vector.extract_strided_slice %125 {offsets = [0, 8], sizes = [16, 8], strides = [1, 1]} : vector<16x32xf32> to vector<16x8xf32>
    %153 = vector.extract_strided_slice %132 {offsets = [8, 0], sizes = [8, 8], strides = [1, 1]} : vector<32x8xf32> to vector<8x8xf32>
    %cst_65 = arith.constant dense<0.000000e+00> : vector<16x8xf32>
    %154 = tpu.matmul %152, %153, %cst_65 {dimension_numbers = #tpu.dot_dimension_numbers<[1], [0], [0], [1], [0, 0, 1, 1], [], []>} : vector<16x8xf32>, vector<8x8xf32>, vector<16x8xf32> -> vector<16x8xf32>
    %cst_66 = arith.constant 0.353553385 : f32
    %155 = vector.broadcast %cst_66 : f32 to vector<16x8xf32>
    %156 = arith.mulf %154, %155 : vector<16x8xf32>
    %157 = vector.broadcast %5 : vector<1x8xf32> to vector<16x8xf32>
    %158 = arith.addf %156, %157 : vector<16x8xf32>
    %cst_67 = arith.constant dense<0xFF800000> : vector<16xf32>
    %159 = vector.multi_reduction <maximumf>, %158, %cst_67 [1] : vector<16x8xf32> to vector<16xf32>
    %160 = vector.shape_cast %159 : vector<16xf32> to vector<16x1xf32>
    %161 = vector.broadcast %160 : vector<16x1xf32> to vector<16x8xf32>
    %162 = arith.subf %158, %161 : vector<16x8xf32>
    %163 = math.exp %162 : vector<16x8xf32>
    %cst_68 = arith.constant dense<0.000000e+00> : vector<16xf32>
    %164 = vector.multi_reduction <add>, %163, %cst_68 [1] : vector<16x8xf32> to vector<16xf32>
    %165 = vector.shape_cast %164 : vector<16xf32> to vector<16x1xf32>
    %166 = tpu.reciprocal %165 {approx = true} : vector<16x1xf32> -> vector<16x1xf32>
    %167 = vector.broadcast %166 : vector<16x1xf32> to vector<16x8xf32>
    %168 = arith.mulf %163, %167 : vector<16x8xf32>
    %169 = vector.extract_strided_slice %131 {offsets = [0, 8], sizes = [8, 8], strides = [1, 1]} : vector<8x32xf32> to vector<8x8xf32>
    %cst_69 = arith.constant dense<0.000000e+00> : vector<16x8xf32>
    %170 = tpu.matmul %168, %169, %cst_69 {dimension_numbers = #tpu.dot_dimension_numbers<[1], [0], [0], [1], [0, 0, 1, 1], [], []>} : vector<16x8xf32>, vector<8x8xf32>, vector<16x8xf32> -> vector<16x8xf32>
    %171 = vector.extract_strided_slice %125 {offsets = [0, 16], sizes = [16, 8], strides = [1, 1]} : vector<16x32xf32> to vector<16x8xf32>
    %172 = vector.extract_strided_slice %132 {offsets = [16, 0], sizes = [8, 8], strides = [1, 1]} : vector<32x8xf32> to vector<8x8xf32>
    %cst_70 = arith.constant dense<0.000000e+00> : vector<16x8xf32>
    %173 = tpu.matmul %171, %172, %cst_70 {dimension_numbers = #tpu.dot_dimension_numbers<[1], [0], [0], [1], [0, 0, 1, 1], [], []>} : vector<16x8xf32>, vector<8x8xf32>, vector<16x8xf32> -> vector<16x8xf32>
    %cst_71 = arith.constant 0.353553385 : f32
    %174 = vector.broadcast %cst_71 : f32 to vector<16x8xf32>
    %175 = arith.mulf %173, %174 : vector<16x8xf32>
    %176 = vector.broadcast %5 : vector<1x8xf32> to vector<16x8xf32>
    %177 = arith.addf %175, %176 : vector<16x8xf32>
    %cst_72 = arith.constant dense<0xFF800000> : vector<16xf32>
    %178 = vector.multi_reduction <maximumf>, %177, %cst_72 [1] : vector<16x8xf32> to vector<16xf32>
    %179 = vector.shape_cast %178 : vector<16xf32> to vector<16x1xf32>
    %180 = vector.broadcast %179 : vector<16x1xf32> to vector<16x8xf32>
    %181 = arith.subf %177, %180 : vector<16x8xf32>
    %182 = math.exp %181 : vector<16x8xf32>
    %cst_73 = arith.constant dense<0.000000e+00> : vector<16xf32>
    %183 = vector.multi_reduction <add>, %182, %cst_73 [1] : vector<16x8xf32> to vector<16xf32>
    %184 = vector.shape_cast %183 : vector<16xf32> to vector<16x1xf32>
    %185 = tpu.reciprocal %184 {approx = true} : vector<16x1xf32> -> vector<16x1xf32>
    %186 = vector.broadcast %185 : vector<16x1xf32> to vector<16x8xf32>
    %187 = arith.mulf %182, %186 : vector<16x8xf32>
    %188 = vector.extract_strided_slice %131 {offsets = [0, 16], sizes = [8, 8], strides = [1, 1]} : vector<8x32xf32> to vector<8x8xf32>
    %cst_74 = arith.constant dense<0.000000e+00> : vector<16x8xf32>
    %189 = tpu.matmul %187, %188, %cst_74 {dimension_numbers = #tpu.dot_dimension_numbers<[1], [0], [0], [1], [0, 0, 1, 1], [], []>} : vector<16x8xf32>, vector<8x8xf32>, vector<16x8xf32> -> vector<16x8xf32>
    %190 = vector.extract_strided_slice %125 {offsets = [0, 24], sizes = [16, 8], strides = [1, 1]} : vector<16x32xf32> to vector<16x8xf32>
    %191 = vector.extract_strided_slice %132 {offsets = [24, 0], sizes = [8, 8], strides = [1, 1]} : vector<32x8xf32> to vector<8x8xf32>
    %cst_75 = arith.constant dense<0.000000e+00> : vector<16x8xf32>
    %192 = tpu.matmul %190, %191, %cst_75 {dimension_numbers = #tpu.dot_dimension_numbers<[1], [0], [0], [1], [0, 0, 1, 1], [], []>} : vector<16x8xf32>, vector<8x8xf32>, vector<16x8xf32> -> vector<16x8xf32>
    %cst_76 = arith.constant 0.353553385 : f32
    %193 = vector.broadcast %cst_76 : f32 to vector<16x8xf32>
    %194 = arith.mulf %192, %193 : vector<16x8xf32>
    %195 = vector.broadcast %5 : vector<1x8xf32> to vector<16x8xf32>
    %196 = arith.addf %194, %195 : vector<16x8xf32>
    %cst_77 = arith.constant dense<0xFF800000> : vector<16xf32>
    %197 = vector.multi_reduction <maximumf>, %196, %cst_77 [1] : vector<16x8xf32> to vector<16xf32>
    %198 = vector.shape_cast %197 : vector<16xf32> to vector<16x1xf32>
    %199 = vector.broadcast %198 : vector<16x1xf32> to vector<16x8xf32>
    %200 = arith.subf %196, %199 : vector<16x8xf32>
    %201 = math.exp %200 : vector<16x8xf32>
    %cst_78 = arith.constant dense<0.000000e+00> : vector<16xf32>
    %202 = vector.multi_reduction <add>, %201, %cst_78 [1] : vector<16x8xf32> to vector<16xf32>
    %203 = vector.shape_cast %202 : vector<16xf32> to vector<16x1xf32>
    %204 = tpu.reciprocal %203 {approx = true} : vector<16x1xf32> -> vector<16x1xf32>
    %205 = vector.broadcast %204 : vector<16x1xf32> to vector<16x8xf32>
    %206 = arith.mulf %201, %205 : vector<16x8xf32>
    %207 = vector.extract_strided_slice %131 {offsets = [0, 24], sizes = [8, 8], strides = [1, 1]} : vector<8x32xf32> to vector<8x8xf32>
    %cst_79 = arith.constant dense<0.000000e+00> : vector<16x8xf32>
    %208 = tpu.matmul %206, %207, %cst_79 {dimension_numbers = #tpu.dot_dimension_numbers<[1], [0], [0], [1], [0, 0, 1, 1], [], []>} : vector<16x8xf32>, vector<8x8xf32>, vector<16x8xf32> -> vector<16x8xf32>
    %209 = tpu.concatenate %151, %170, %189, %208 in 1 : vector<16x8xf32>, vector<16x8xf32>, vector<16x8xf32>, vector<16x8xf32> -> vector<16x32xf32>
    %210 = arith.truncf %209 : vector<16x32xf32> to vector<16x32xbf16>
    %cst_80 = arith.constant dense<0.000000e+00> : vector<16x32xf32>
    %211 = tpu.matmul %210, %120, %cst_80 {dimension_numbers = #tpu.dot_dimension_numbers<[1], [0], [0], [1], [0, 0, 1, 1], [], []>} : vector<16x32xbf16>, vector<32x32xbf16>, vector<16x32xf32> -> vector<16x32xf32>
    %212 = vector.broadcast %121 : vector<1x32xf32> to vector<16x32xf32>
    %213 = arith.addf %211, %212 : vector<16x32xf32>
    %214 = arith.addf %115, %213 : vector<16x32xf32>
    %c0_81 = arith.constant 0 : index
    %c0_82 = arith.constant 0 : index
    %215 = vector.load %arg16[%c0_81, %c0_82] : memref<1x32xf32, #tpu.memory_space<vmem>>, vector<1x32xf32>
    %c0_83 = arith.constant 0 : index
    %c0_84 = arith.constant 0 : index
    %216 = vector.load %arg17[%c0_83, %c0_84] : memref<1x32xf32, #tpu.memory_space<vmem>>, vector<1x32xf32>
    %cst_85 = arith.constant dense<0.000000e+00> : vector<16xf32>
    %217 = vector.multi_reduction <add>, %214, %cst_85 [1] : vector<16x32xf32> to vector<16xf32>
    %218 = vector.shape_cast %217 : vector<16xf32> to vector<16x1xf32>
    %cst_86 = arith.constant 3.200000e+01 : f32
    %219 = vector.broadcast %cst_86 : f32 to vector<16x1xf32>
    %220 = arith.divf %218, %219 : vector<16x1xf32>
    %221 = vector.broadcast %220 : vector<16x1xf32> to vector<16x32xf32>
    %222 = arith.subf %214, %221 : vector<16x32xf32>
    %223 = arith.mulf %222, %222 : vector<16x32xf32>
    %cst_87 = arith.constant dense<0.000000e+00> : vector<16xf32>
    %224 = vector.multi_reduction <add>, %223, %cst_87 [1] : vector<16x32xf32> to vector<16xf32>
    %225 = vector.shape_cast %224 : vector<16xf32> to vector<16x1xf32>
    %cst_88 = arith.constant 3.200000e+01 : f32
    %226 = vector.broadcast %cst_88 : f32 to vector<16x1xf32>
    %227 = arith.divf %225, %226 : vector<16x1xf32>
    %228 = vector.broadcast %220 : vector<16x1xf32> to vector<16x32xf32>
    %229 = arith.subf %214, %228 : vector<16x32xf32>
    %cst_89 = arith.constant 9.99999974E-6 : f32
    %230 = vector.broadcast %cst_89 : f32 to vector<16x1xf32>
    %231 = arith.addf %227, %230 : vector<16x1xf32>
    %232 = math.rsqrt %231 : vector<16x1xf32>
    %233 = vector.broadcast %232 : vector<16x1xf32> to vector<16x32xf32>
    %234 = arith.mulf %229, %233 : vector<16x32xf32>
    %235 = vector.broadcast %215 : vector<1x32xf32> to vector<16x32xf32>
    %236 = arith.mulf %234, %235 : vector<16x32xf32>
    %237 = vector.broadcast %216 : vector<1x32xf32> to vector<16x32xf32>
    %238 = arith.addf %236, %237 : vector<16x32xf32>
    %c0_90 = arith.constant 0 : index
    %c0_91 = arith.constant 0 : index
    %239 = vector.load %arg18[%c0_90, %c0_91] : memref<32x64xbf16, #tpu.memory_space<vmem>>, vector<32x64xbf16>
    %c0_92 = arith.constant 0 : index
    %c0_93 = arith.constant 0 : index
    %240 = vector.load %arg19[%c0_92, %c0_93] : memref<1x64xf32, #tpu.memory_space<vmem>>, vector<1x64xf32>
    %c0_94 = arith.constant 0 : index
    %c0_95 = arith.constant 0 : index
    %241 = vector.load %arg20[%c0_94, %c0_95] : memref<64x32xbf16, #tpu.memory_space<vmem>>, vector<64x32xbf16>
    %c0_96 = arith.constant 0 : index
    %c0_97 = arith.constant 0 : index
    %242 = vector.load %arg21[%c0_96, %c0_97] : memref<1x32xf32, #tpu.memory_space<vmem>>, vector<1x32xf32>
    %243 = arith.truncf %238 : vector<16x32xf32> to vector<16x32xbf16>
    %cst_98 = arith.constant dense<0.000000e+00> : vector<16x64xf32>
    %244 = tpu.matmul %243, %239, %cst_98 {dimension_numbers = #tpu.dot_dimension_numbers<[1], [0], [0], [1], [0, 0, 1, 1], [], []>} : vector<16x32xbf16>, vector<32x64xbf16>, vector<16x64xf32> -> vector<16x64xf32>
    %245 = vector.broadcast %240 : vector<1x64xf32> to vector<16x64xf32>
    %246 = arith.addf %244, %245 : vector<16x64xf32>
    %cst_99 = arith.constant 0.000000e+00 : f32
    %247 = vector.broadcast %cst_99 : f32 to vector<16x64xf32>
    %248 = arith.maximumf %246, %247 : vector<16x64xf32>
    %249 = arith.truncf %248 : vector<16x64xf32> to vector<16x64xbf16>
    %cst_100 = arith.constant dense<0.000000e+00> : vector<16x32xf32>
    %250 = tpu.matmul %249, %241, %cst_100 {dimension_numbers = #tpu.dot_dimension_numbers<[1], [0], [0], [1], [0, 0, 1, 1], [], []>} : vector<16x64xbf16>, vector<64x32xbf16>, vector<16x32xf32> -> vector<16x32xf32>
    %251 = vector.broadcast %242 : vector<1x32xf32> to vector<16x32xf32>
    %252 = arith.addf %250, %251 : vector<16x32xf32>
    %253 = arith.addf %238, %252 : vector<16x32xf32>
    %c0_101 = arith.constant 0 : index
    %c0_102 = arith.constant 0 : index
    %254 = vector.load %arg22[%c0_101, %c0_102] : memref<1x32xf32, #tpu.memory_space<vmem>>, vector<1x32xf32>
    %c0_103 = arith.constant 0 : index
    %c0_104 = arith.constant 0 : index
    %255 = vector.load %arg23[%c0_103, %c0_104] : memref<1x32xf32, #tpu.memory_space<vmem>>, vector<1x32xf32>
    %cst_105 = arith.constant dense<0.000000e+00> : vector<16xf32>
    %256 = vector.multi_reduction <add>, %253, %cst_105 [1] : vector<16x32xf32> to vector<16xf32>
    %257 = vector.shape_cast %256 : vector<16xf32> to vector<16x1xf32>
    %cst_106 = arith.constant 3.200000e+01 : f32
    %258 = vector.broadcast %cst_106 : f32 to vector<16x1xf32>
    %259 = arith.divf %257, %258 : vector<16x1xf32>
    %260 = vector.broadcast %259 : vector<16x1xf32> to vector<16x32xf32>
    %261 = arith.subf %253, %260 : vector<16x32xf32>
    %262 = arith.mulf %261, %261 : vector<16x32xf32>
    %cst_107 = arith.constant dense<0.000000e+00> : vector<16xf32>
    %263 = vector.multi_reduction <add>, %262, %cst_107 [1] : vector<16x32xf32> to vector<16xf32>
    %264 = vector.shape_cast %263 : vector<16xf32> to vector<16x1xf32>
    %cst_108 = arith.constant 3.200000e+01 : f32
    %265 = vector.broadcast %cst_108 : f32 to vector<16x1xf32>
    %266 = arith.divf %264, %265 : vector<16x1xf32>
    %267 = vector.broadcast %259 : vector<16x1xf32> to vector<16x32xf32>
    %268 = arith.subf %253, %267 : vector<16x32xf32>
    %cst_109 = arith.constant 9.99999974E-6 : f32
    %269 = vector.broadcast %cst_109 : f32 to vector<16x1xf32>
    %270 = arith.addf %266, %269 : vector<16x1xf32>
    %271 = math.rsqrt %270 : vector<16x1xf32>
    %272 = vector.broadcast %271 : vector<16x1xf32> to vector<16x32xf32>
    %273 = arith.mulf %268, %272 : vector<16x32xf32>
    %274 = vector.broadcast %254 : vector<1x32xf32> to vector<16x32xf32>
    %275 = arith.mulf %273, %274 : vector<16x32xf32>
    %276 = vector.broadcast %255 : vector<1x32xf32> to vector<16x32xf32>
    %277 = arith.addf %275, %276 : vector<16x32xf32>
    %c0_110 = arith.constant 0 : index
    %c0_111 = arith.constant 0 : index
    %c0_112 = arith.constant 0 : index
    %278 = vector.load %arg24[%c0_110, %c0_111, %c0_112] : memref<1x16x32xf32, #tpu.memory_space<vmem>>, vector<1x16x32xf32>
    %279 = vector.shape_cast %278 : vector<1x16x32xf32> to vector<16x32xf32>
    %280 = vector.shape_cast %277 : vector<16x32xf32> to vector<1x16x32xf32>
    tpu.vector_store %arg24[%c0_110, %c0_111, %c0_112], %280 {strides = array<i32>} : memref<1x16x32xf32, #tpu.memory_space<vmem>>, vector<1x16x32xf32>,
    return
  }
  func.func @transform_0(%arg0: i32) -> (i32, i32, i32) {
    %c0_i32 = arith.constant 0 : i32
    %c0_i32_0 = arith.constant 0 : i32
    %c0_i32_1 = arith.constant 0 : i32
    return %arg0, %c0_i32, %c0_i32_0 : i32, i32, i32
  }
  func.func @transform_1(%arg0: i32) -> (i32, i32, i32) {
    %c0_i32 = arith.constant 0 : i32
    %c0_i32_0 = arith.constant 0 : i32
    %c0_i32_1 = arith.constant 0 : i32
    return %arg0, %c0_i32, %c0_i32_0 : i32, i32, i32
  }
  func.func @transform_2(%arg0: i32) -> (i32, i32, i32) {
    %c0_i32 = arith.constant 0 : i32
    %c0_i32_0 = arith.constant 0 : i32
    %c0_i32_1 = arith.constant 0 : i32
    return %arg0, %c0_i32, %c0_i32_0 : i32, i32, i32
  }
  func.func @transform_3(%arg0: i32) -> (i32, i32) {
    %c0_i32 = arith.constant 0 : i32
    %c0_i32_0 = arith.constant 0 : i32
    %c0_i32_1 = arith.constant 0 : i32
    return %c0_i32, %c0_i32_0 : i32, i32
  }
  func.func @transform_4(%arg0: i32) -> (i32, i32) {
    %c0_i32 = arith.constant 0 : i32
    %c0_i32_0 = arith.constant 0 : i32
    %c0_i32_1 = arith.constant 0 : i32
    return %c0_i32, %c0_i32_0 : i32, i32
  }
  func.func @transform_5(%arg0: i32) -> (i32, i32) {
    %c0_i32 = arith.constant 0 : i32
    %c0_i32_0 = arith.constant 0 : i32
    %c0_i32_1 = arith.constant 0 : i32
    return %c0_i32, %c0_i32_0 : i32, i32
  }
  func.func @transform_6(%arg0: i32) -> (i32, i32) {
    %c0_i32 = arith.constant 0 : i32
    %c0_i32_0 = arith.constant 0 : i32
    %c0_i32_1 = arith.constant 0 : i32
    return %c0_i32, %c0_i32_0 : i32, i32
  }
  func.func @transform_7(%arg0: i32) -> (i32, i32) {
    %c0_i32 = arith.constant 0 : i32
    %c0_i32_0 = arith.constant 0 : i32
    %c0_i32_1 = arith.constant 0 : i32
    return %c0_i32, %c0_i32_0 : i32, i32
  }
  func.func @transform_8(%arg0: i32) -> (i32, i32) {
    %c0_i32 = arith.constant 0 : i32
    %c0_i32_0 = arith.constant 0 : i32
    %c0_i32_1 = arith.constant 0 : i32
    return %c0_i32, %c0_i32_0 : i32, i32
  }
  func.func @transform_9(%arg0: i32) -> (i32, i32) {
    %c0_i32 = arith.constant 0 : i32
    %c0_i32_0 = arith.constant 0 : i32
    %c0_i32_1 = arith.constant 0 : i32
    return %c0_i32, %c0_i32_0 : i32, i32
  }
  func.func @transform_10(%arg0: i32) -> (i32, i32) {
    %c0_i32 = arith.constant 0 : i32
    %c0_i32_0 = arith.constant 0 : i32
    %c0_i32_1 = arith.constant 0 : i32
    return %c0_i32, %c0_i32_0 : i32, i32
  }
  func.func @transform_11(%arg0: i32) -> (i32, i32) {
    %c0_i32 = arith.constant 0 : i32
    %c0_i32_0 = arith.constant 0 : i32
    %c0_i32_1 = arith.constant 0 : i32
    return %c0_i32, %c0_i32_0 : i32, i32
  }
  func.func @transform_12(%arg0: i32) -> (i32, i32) {
    %c0_i32 = arith.constant 0 : i32
    %c0_i32_0 = arith.constant 0 : i32
    %c0_i32_1 = arith.constant 0 : i32
    return %c0_i32, %c0_i32_0 : i32, i32
  }
  func.func @transform_13(%arg0: i32) -> (i32, i32) {
    %c0_i32 = arith.constant 0 : i32
    %c0_i32_0 = arith.constant 0 : i32
    %c0_i32_1 = arith.constant 0 : i32
    return %c0_i32, %c0_i32_0 : i32, i32
  }
  func.func @transform_14(%arg0: i32) -> (i32, i32) {
    %c0_i32 = arith.constant 0 : i32
    %c0_i32_0 = arith.constant 0 : i32
    %c0_i32_1 = arith.constant 0 : i32
    return %c0_i32, %c0_i32_0 : i32, i32
  }
  func.func @transform_15(%arg0: i32) -> (i32, i32) {
    %c0_i32 = arith.constant 0 : i32
    %c0_i32_0 = arith.constant 0 : i32
    %c0_i32_1 = arith.constant 0 : i32
    return %c0_i32, %c0_i32_0 : i32, i32
  }
  func.func @transform_16(%arg0: i32) -> (i32, i32) {
    %c0_i32 = arith.constant 0 : i32
    %c0_i32_0 = arith.constant 0 : i32
    %c0_i32_1 = arith.constant 0 : i32
    return %c0_i32, %c0_i32_0 : i32, i32
  }
  func.func @transform_17(%arg0: i32) -> (i32, i32) {
    %c0_i32 = arith.constant 0 : i32
    %c0_i32_0 = arith.constant 0 : i32
    %c0_i32_1 = arith.constant 0 : i32
    return %c0_i32, %c0_i32_0 : i32, i32
  }
  func.func @transform_18(%arg0: i32) -> (i32, i32) {
    %c0_i32 = arith.constant 0 : i32
    %c0_i32_0 = arith.constant 0 : i32
    %c0_i32_1 = arith.constant 0 : i32
    return %c0_i32, %c0_i32_0 : i32, i32
  }
  func.func @transform_19(%arg0: i32) -> (i32, i32) {
    %c0_i32 = arith.constant 0 : i32
    %c0_i32_0 = arith.constant 0 : i32
    %c0_i32_1 = arith.constant 0 : i32
    return %c0_i32, %c0_i32_0 : i32, i32
  }
  func.func @transform_20(%arg0: i32) -> (i32, i32) {
    %c0_i32 = arith.constant 0 : i32
    %c0_i32_0 = arith.constant 0 : i32
    %c0_i32_1 = arith.constant 0 : i32
    return %c0_i32, %c0_i32_0 : i32, i32
  }
  func.func @transform_21(%arg0: i32) -> (i32, i32) {
    %c0_i32 = arith.constant 0 : i32
    %c0_i32_0 = arith.constant 0 : i32
    %c0_i32_1 = arith.constant 0 : i32
    return %c0_i32, %c0_i32_0 : i32, i32
  }
  func.func @transform_22(%arg0: i32) -> (i32, i32) {
    %c0_i32 = arith.constant 0 : i32
    %c0_i32_0 = arith.constant 0 : i32
    %c0_i32_1 = arith.constant 0 : i32
    return %c0_i32, %c0_i32_0 : i32, i32
  }
  func.func @transform_23(%arg0: i32) -> (i32, i32, i32) {
    %c0_i32 = arith.constant 0 : i32
    %c0_i32_0 = arith.constant 0 : i32
    %c0_i32_1 = arith.constant 0 : i32
    return %arg0, %c0_i32, %c0_i32_0 : i32, i32, i32
  }
}

module attributes {stable_mosaic.version = 11 : i64} {
  func.func @_fusion_kernel(%arg0: i32, %arg1: memref<1x16x32xf32, #tpu.memory_space<vmem>>, %arg2: memref<1x8x32xf32, #tpu.memory_space<vmem>>, %arg3: memref<1x8x1xf32, #tpu.memory_space<vmem>>, %arg4: memref<32x1xbf16, #tpu.memory_space<vmem>>, %arg5: memref<1x1xf32, #tpu.memory_space<vmem>>, %arg6: memref<32x1xbf16, #tpu.memory_space<vmem>>, %arg7: memref<1x1xf32, #tpu.memory_space<vmem>>, %arg8: memref<32x32xbf16, #tpu.memory_space<vmem>>, %arg9: memref<1x32xf32, #tpu.memory_space<vmem>>, %arg10: memref<32x32xbf16, #tpu.memory_space<vmem>>, %arg11: memref<1x32xf32, #tpu.memory_space<vmem>>, %arg12: memref<1x32xf32, #tpu.memory_space<vmem>>, %arg13: memref<1x32xf32, #tpu.memory_space<vmem>>, %arg14: memref<32x10xbf16, #tpu.memory_space<vmem>>, %arg15: memref<1x10xf32, #tpu.memory_space<vmem>>, %arg16: memref<1x1x10xf32, #tpu.memory_space<vmem>>) attributes {dimension_semantics = [#tpu.dimension_semantics<parallel>], iteration_bounds = array<i64: 2>, scalar_prefetch = 0 : i64, scratch_operands = 0 : i64, tpu.core_type = #tpu.core_type<tc>, window_params = [{transform_indices = @transform_0, window_bounds = array<i64: 1, 16, 32>}, {transform_indices = @transform_1, window_bounds = array<i64: 1, 8, 32>}, {transform_indices = @transform_2, window_bounds = array<i64: 1, 8, 1>}, {pipeline_mode = #tpu.pipeline_mode<synchronous>, transform_indices = @transform_3, window_bounds = array<i64: 32, 1>}, {pipeline_mode = #tpu.pipeline_mode<synchronous>, transform_indices = @transform_4, window_bounds = array<i64: 1, 1>}, {pipeline_mode = #tpu.pipeline_mode<synchronous>, transform_indices = @transform_5, window_bounds = array<i64: 32, 1>}, {pipeline_mode = #tpu.pipeline_mode<synchronous>, transform_indices = @transform_6, window_bounds = array<i64: 1, 1>}, {pipeline_mode = #tpu.pipeline_mode<synchronous>, transform_indices = @transform_7, window_bounds = array<i64: 32, 32>}, {pipeline_mode = #tpu.pipeline_mode<synchronous>, transform_indices = @transform_8, window_bounds = array<i64: 1, 32>}, {pipeline_mode = #tpu.pipeline_mode<synchronous>, transform_indices = @transform_9, window_bounds = array<i64: 32, 32>}, {pipeline_mode = #tpu.pipeline_mode<synchronous>, transform_indices = @transform_10, window_bounds = array<i64: 1, 32>}, {pipeline_mode = #tpu.pipeline_mode<synchronous>, transform_indices = @transform_11, window_bounds = array<i64: 1, 32>}, {pipeline_mode = #tpu.pipeline_mode<synchronous>, transform_indices = @transform_12, window_bounds = array<i64: 1, 32>}, {pipeline_mode = #tpu.pipeline_mode<synchronous>, transform_indices = @transform_13, window_bounds = array<i64: 32, 10>}, {pipeline_mode = #tpu.pipeline_mode<synchronous>, transform_indices = @transform_14, window_bounds = array<i64: 1, 10>}, {transform_indices = @transform_15, window_bounds = array<i64: 1, 1, 10>}]} {
    %c0 = arith.constant 0 : index
    %c0_0 = arith.constant 0 : index
    %c0_1 = arith.constant 0 : index
    %0 = vector.load %arg1[%c0, %c0_0, %c0_1] : memref<1x16x32xf32, #tpu.memory_space<vmem>>, vector<1x16x32xf32>
    %1 = vector.shape_cast %0 : vector<1x16x32xf32> to vector<16x32xf32>
    %c0_2 = arith.constant 0 : index
    %c0_3 = arith.constant 0 : index
    %c0_4 = arith.constant 0 : index
    %2 = vector.load %arg2[%c0_2, %c0_3, %c0_4] : memref<1x8x32xf32, #tpu.memory_space<vmem>>, vector<1x8x32xf32>
    %3 = vector.shape_cast %2 : vector<1x8x32xf32> to vector<8x32xf32>
    %c0_5 = arith.constant 0 : index
    %c0_6 = arith.constant 0 : index
    %c0_7 = arith.constant 0 : index
    %4 = vector.load %arg3[%c0_5, %c0_6, %c0_7] : memref<1x8x1xf32, #tpu.memory_space<vmem>>, vector<1x8x1xf32>
    %5 = vector.shape_cast %4 : vector<1x8x1xf32> to vector<8x1xf32>
    %c0_8 = arith.constant 0 : index
    %c0_9 = arith.constant 0 : index
    %6 = vector.load %arg4[%c0_8, %c0_9] : memref<32x1xbf16, #tpu.memory_space<vmem>>, vector<32x1xbf16>
    %c0_10 = arith.constant 0 : index
    %c0_11 = arith.constant 0 : index
    %7 = vector.load %arg5[%c0_10, %c0_11] : memref<1x1xf32, #tpu.memory_space<vmem>>, vector<1x1xf32>
    %8 = arith.truncf %1 : vector<16x32xf32> to vector<16x32xbf16>
    %cst = arith.constant dense<0.000000e+00> : vector<16x1xf32>
    %9 = tpu.matmul %8, %6, %cst {dimension_numbers = #tpu.dot_dimension_numbers<[1], [0], [0], [1], [0, 0, 1, 1], [], []>} : vector<16x32xbf16>, vector<32x1xbf16>, vector<16x1xf32> -> vector<16x1xf32>
    %10 = vector.broadcast %7 : vector<1x1xf32> to vector<16x1xf32>
    %11 = arith.addf %9, %10 : vector<16x1xf32>
    %cst_12 = arith.constant dense<0xFF800000> : vector<1xf32>
    %12 = vector.multi_reduction <maximumf>, %11, %cst_12 [0] : vector<16x1xf32> to vector<1xf32>
    %13 = vector.shape_cast %12 : vector<1xf32> to vector<1x1xf32>
    %14 = vector.broadcast %13 : vector<1x1xf32> to vector<16x1xf32>
    %15 = arith.subf %11, %14 : vector<16x1xf32>
    %16 = math.exp %15 : vector<16x1xf32>
    %cst_13 = arith.constant dense<0.000000e+00> : vector<1xf32>
    %17 = vector.multi_reduction <add>, %16, %cst_13 [0] : vector<16x1xf32> to vector<1xf32>
    %18 = vector.shape_cast %17 : vector<1xf32> to vector<1x1xf32>
    %19 = tpu.reciprocal %18 {approx = true} : vector<1x1xf32> -> vector<1x1xf32>
    %20 = vector.broadcast %19 : vector<1x1xf32> to vector<16x1xf32>
    %21 = arith.mulf %16, %20 : vector<16x1xf32>
    %22 = vector.broadcast %21 : vector<16x1xf32> to vector<16x32xf32>
    %23 = arith.mulf %22, %1 : vector<16x32xf32>
    %cst_14 = arith.constant dense<0.000000e+00> : vector<32xf32>
    %24 = vector.multi_reduction <add>, %23, %cst_14 [0] : vector<16x32xf32> to vector<32xf32>
    %25 = vector.shape_cast %24 : vector<32xf32> to vector<1x32xf32>
    %c0_15 = arith.constant 0 : index
    %c0_16 = arith.constant 0 : index
    %26 = vector.load %arg6[%c0_15, %c0_16] : memref<32x1xbf16, #tpu.memory_space<vmem>>, vector<32x1xbf16>
    %c0_17 = arith.constant 0 : index
    %c0_18 = arith.constant 0 : index
    %27 = vector.load %arg7[%c0_17, %c0_18] : memref<1x1xf32, #tpu.memory_space<vmem>>, vector<1x1xf32>
    %28 = arith.truncf %3 : vector<8x32xf32> to vector<8x32xbf16>
    %cst_19 = arith.constant dense<0.000000e+00> : vector<8x1xf32>
    %29 = tpu.matmul %28, %26, %cst_19 {dimension_numbers = #tpu.dot_dimension_numbers<[1], [0], [0], [1], [0, 0, 1, 1], [], []>} : vector<8x32xbf16>, vector<32x1xbf16>, vector<8x1xf32> -> vector<8x1xf32>
    %30 = vector.broadcast %27 : vector<1x1xf32> to vector<8x1xf32>
    %31 = arith.addf %29, %30 : vector<8x1xf32>
    %32 = arith.addf %31, %5 : vector<8x1xf32>
    %cst_20 = arith.constant dense<0xFF800000> : vector<1xf32>
    %33 = vector.multi_reduction <maximumf>, %32, %cst_20 [0] : vector<8x1xf32> to vector<1xf32>
    %34 = vector.shape_cast %33 : vector<1xf32> to vector<1x1xf32>
    %35 = vector.broadcast %34 : vector<1x1xf32> to vector<8x1xf32>
    %36 = arith.subf %32, %35 : vector<8x1xf32>
    %37 = math.exp %36 : vector<8x1xf32>
    %cst_21 = arith.constant dense<0.000000e+00> : vector<1xf32>
    %38 = vector.multi_reduction <add>, %37, %cst_21 [0] : vector<8x1xf32> to vector<1xf32>
    %39 = vector.shape_cast %38 : vector<1xf32> to vector<1x1xf32>
    %40 = tpu.reciprocal %39 {approx = true} : vector<1x1xf32> -> vector<1x1xf32>
    %41 = vector.broadcast %40 : vector<1x1xf32> to vector<8x1xf32>
    %42 = arith.mulf %37, %41 : vector<8x1xf32>
    %43 = vector.broadcast %42 : vector<8x1xf32> to vector<8x32xf32>
    %44 = arith.mulf %43, %3 : vector<8x32xf32>
    %cst_22 = arith.constant dense<0.000000e+00> : vector<32xf32>
    %45 = vector.multi_reduction <add>, %44, %cst_22 [0] : vector<8x32xf32> to vector<32xf32>
    %46 = vector.shape_cast %45 : vector<32xf32> to vector<1x32xf32>
    %47 = arith.truncf %25 : vector<1x32xf32> to vector<1x32xbf16>
    %c0_23 = arith.constant 0 : index
    %c0_24 = arith.constant 0 : index
    %48 = vector.load %arg8[%c0_23, %c0_24] : memref<32x32xbf16, #tpu.memory_space<vmem>>, vector<32x32xbf16>
    %cst_25 = arith.constant dense<0.000000e+00> : vector<1x32xf32>
    %49 = tpu.matmul %47, %48, %cst_25 {dimension_numbers = #tpu.dot_dimension_numbers<[1], [0], [0], [1], [0, 0, 1, 1], [], []>} : vector<1x32xbf16>, vector<32x32xbf16>, vector<1x32xf32> -> vector<1x32xf32>
    %c0_26 = arith.constant 0 : index
    %c0_27 = arith.constant 0 : index
    %50 = vector.load %arg9[%c0_26, %c0_27] : memref<1x32xf32, #tpu.memory_space<vmem>>, vector<1x32xf32>
    %51 = arith.addf %49, %50 : vector<1x32xf32>
    %52 = arith.truncf %46 : vector<1x32xf32> to vector<1x32xbf16>
    %c0_28 = arith.constant 0 : index
    %c0_29 = arith.constant 0 : index
    %53 = vector.load %arg10[%c0_28, %c0_29] : memref<32x32xbf16, #tpu.memory_space<vmem>>, vector<32x32xbf16>
    %cst_30 = arith.constant dense<0.000000e+00> : vector<1x32xf32>
    %54 = tpu.matmul %52, %53, %cst_30 {dimension_numbers = #tpu.dot_dimension_numbers<[1], [0], [0], [1], [0, 0, 1, 1], [], []>} : vector<1x32xbf16>, vector<32x32xbf16>, vector<1x32xf32> -> vector<1x32xf32>
    %55 = arith.addf %51, %54 : vector<1x32xf32>
    %c0_31 = arith.constant 0 : index
    %c0_32 = arith.constant 0 : index
    %56 = vector.load %arg11[%c0_31, %c0_32] : memref<1x32xf32, #tpu.memory_space<vmem>>, vector<1x32xf32>
    %57 = arith.addf %55, %56 : vector<1x32xf32>
    %c0_33 = arith.constant 0 : index
    %c0_34 = arith.constant 0 : index
    %58 = vector.load %arg12[%c0_33, %c0_34] : memref<1x32xf32, #tpu.memory_space<vmem>>, vector<1x32xf32>
    %c0_35 = arith.constant 0 : index
    %c0_36 = arith.constant 0 : index
    %59 = vector.load %arg13[%c0_35, %c0_36] : memref<1x32xf32, #tpu.memory_space<vmem>>, vector<1x32xf32>
    %cst_37 = arith.constant dense<0.000000e+00> : vector<1xf32>
    %60 = vector.multi_reduction <add>, %57, %cst_37 [1] : vector<1x32xf32> to vector<1xf32>
    %61 = vector.shape_cast %60 : vector<1xf32> to vector<1x1xf32>
    %cst_38 = arith.constant 3.200000e+01 : f32
    %62 = vector.broadcast %cst_38 : f32 to vector<1x1xf32>
    %63 = arith.divf %61, %62 : vector<1x1xf32>
    %64 = vector.broadcast %63 : vector<1x1xf32> to vector<1x32xf32>
    %65 = arith.subf %57, %64 : vector<1x32xf32>
    %66 = arith.mulf %65, %65 : vector<1x32xf32>
    %cst_39 = arith.constant dense<0.000000e+00> : vector<1xf32>
    %67 = vector.multi_reduction <add>, %66, %cst_39 [1] : vector<1x32xf32> to vector<1xf32>
    %68 = vector.shape_cast %67 : vector<1xf32> to vector<1x1xf32>
    %cst_40 = arith.constant 3.200000e+01 : f32
    %69 = vector.broadcast %cst_40 : f32 to vector<1x1xf32>
    %70 = arith.divf %68, %69 : vector<1x1xf32>
    %71 = vector.broadcast %63 : vector<1x1xf32> to vector<1x32xf32>
    %72 = arith.subf %57, %71 : vector<1x32xf32>
    %cst_41 = arith.constant 9.99999974E-6 : f32
    %73 = vector.broadcast %cst_41 : f32 to vector<1x1xf32>
    %74 = arith.addf %70, %73 : vector<1x1xf32>
    %75 = math.rsqrt %74 : vector<1x1xf32>
    %76 = vector.broadcast %75 : vector<1x1xf32> to vector<1x32xf32>
    %77 = arith.mulf %72, %76 : vector<1x32xf32>
    %78 = arith.mulf %77, %58 : vector<1x32xf32>
    %79 = arith.addf %78, %59 : vector<1x32xf32>
    %80 = arith.truncf %79 : vector<1x32xf32> to vector<1x32xbf16>
    %c0_42 = arith.constant 0 : index
    %c0_43 = arith.constant 0 : index
    %81 = vector.load %arg14[%c0_42, %c0_43] : memref<32x10xbf16, #tpu.memory_space<vmem>>, vector<32x10xbf16>
    %cst_44 = arith.constant dense<0.000000e+00> : vector<1x10xf32>
    %82 = tpu.matmul %80, %81, %cst_44 {dimension_numbers = #tpu.dot_dimension_numbers<[1], [0], [0], [1], [0, 0, 1, 1], [], []>} : vector<1x32xbf16>, vector<32x10xbf16>, vector<1x10xf32> -> vector<1x10xf32>
    %c0_45 = arith.constant 0 : index
    %c0_46 = arith.constant 0 : index
    %83 = vector.load %arg15[%c0_45, %c0_46] : memref<1x10xf32, #tpu.memory_space<vmem>>, vector<1x10xf32>
    %84 = arith.addf %82, %83 : vector<1x10xf32>
    %c0_47 = arith.constant 0 : index
    %c0_48 = arith.constant 0 : index
    %c0_49 = arith.constant 0 : index
    %85 = vector.load %arg16[%c0_47, %c0_48, %c0_49] : memref<1x1x10xf32, #tpu.memory_space<vmem>>, vector<1x1x10xf32>
    %86 = vector.shape_cast %85 : vector<1x1x10xf32> to vector<1x10xf32>
    %87 = vector.shape_cast %84 : vector<1x10xf32> to vector<1x1x10xf32>
    tpu.vector_store %arg16[%c0_47, %c0_48, %c0_49], %87 {strides = array<i32>} : memref<1x1x10xf32, #tpu.memory_space<vmem>>, vector<1x1x10xf32>,
    return
  }
  func.func @transform_0(%arg0: i32) -> (i32, i32, i32) {
    %c0_i32 = arith.constant 0 : i32
    %c0_i32_0 = arith.constant 0 : i32
    %c0_i32_1 = arith.constant 0 : i32
    return %arg0, %c0_i32, %c0_i32_0 : i32, i32, i32
  }
  func.func @transform_1(%arg0: i32) -> (i32, i32, i32) {
    %c0_i32 = arith.constant 0 : i32
    %c0_i32_0 = arith.constant 0 : i32
    %c0_i32_1 = arith.constant 0 : i32
    return %arg0, %c0_i32, %c0_i32_0 : i32, i32, i32
  }
  func.func @transform_2(%arg0: i32) -> (i32, i32, i32) {
    %c0_i32 = arith.constant 0 : i32
    %c0_i32_0 = arith.constant 0 : i32
    %c0_i32_1 = arith.constant 0 : i32
    return %arg0, %c0_i32, %c0_i32_0 : i32, i32, i32
  }
  func.func @transform_3(%arg0: i32) -> (i32, i32) {
    %c0_i32 = arith.constant 0 : i32
    %c0_i32_0 = arith.constant 0 : i32
    %c0_i32_1 = arith.constant 0 : i32
    return %c0_i32, %c0_i32_0 : i32, i32
  }
  func.func @transform_4(%arg0: i32) -> (i32, i32) {
    %c0_i32 = arith.constant 0 : i32
    %c0_i32_0 = arith.constant 0 : i32
    %c0_i32_1 = arith.constant 0 : i32
    return %c0_i32, %c0_i32_0 : i32, i32
  }
  func.func @transform_5(%arg0: i32) -> (i32, i32) {
    %c0_i32 = arith.constant 0 : i32
    %c0_i32_0 = arith.constant 0 : i32
    %c0_i32_1 = arith.constant 0 : i32
    return %c0_i32, %c0_i32_0 : i32, i32
  }
  func.func @transform_6(%arg0: i32) -> (i32, i32) {
    %c0_i32 = arith.constant 0 : i32
    %c0_i32_0 = arith.constant 0 : i32
    %c0_i32_1 = arith.constant 0 : i32
    return %c0_i32, %c0_i32_0 : i32, i32
  }
  func.func @transform_7(%arg0: i32) -> (i32, i32) {
    %c0_i32 = arith.constant 0 : i32
    %c0_i32_0 = arith.constant 0 : i32
    %c0_i32_1 = arith.constant 0 : i32
    return %c0_i32, %c0_i32_0 : i32, i32
  }
  func.func @transform_8(%arg0: i32) -> (i32, i32) {
    %c0_i32 = arith.constant 0 : i32
    %c0_i32_0 = arith.constant 0 : i32
    %c0_i32_1 = arith.constant 0 : i32
    return %c0_i32, %c0_i32_0 : i32, i32
  }
  func.func @transform_9(%arg0: i32) -> (i32, i32) {
    %c0_i32 = arith.constant 0 : i32
    %c0_i32_0 = arith.constant 0 : i32
    %c0_i32_1 = arith.constant 0 : i32
    return %c0_i32, %c0_i32_0 : i32, i32
  }
  func.func @transform_10(%arg0: i32) -> (i32, i32) {
    %c0_i32 = arith.constant 0 : i32
    %c0_i32_0 = arith.constant 0 : i32
    %c0_i32_1 = arith.constant 0 : i32
    return %c0_i32, %c0_i32_0 : i32, i32
  }
  func.func @transform_11(%arg0: i32) -> (i32, i32) {
    %c0_i32 = arith.constant 0 : i32
    %c0_i32_0 = arith.constant 0 : i32
    %c0_i32_1 = arith.constant 0 : i32
    return %c0_i32, %c0_i32_0 : i32, i32
  }
  func.func @transform_12(%arg0: i32) -> (i32, i32) {
    %c0_i32 = arith.constant 0 : i32
    %c0_i32_0 = arith.constant 0 : i32
    %c0_i32_1 = arith.constant 0 : i32
    return %c0_i32, %c0_i32_0 : i32, i32
  }
  func.func @transform_13(%arg0: i32) -> (i32, i32) {
    %c0_i32 = arith.constant 0 : i32
    %c0_i32_0 = arith.constant 0 : i32
    %c0_i32_1 = arith.constant 0 : i32
    return %c0_i32, %c0_i32_0 : i32, i32
  }
  func.func @transform_14(%arg0: i32) -> (i32, i32) {
    %c0_i32 = arith.constant 0 : i32
    %c0_i32_0 = arith.constant 0 : i32
    %c0_i32_1 = arith.constant 0 : i32
    return %c0_i32, %c0_i32_0 : i32, i32
  }
  func.func @transform_15(%arg0: i32) -> (i32, i32, i32) {
    %c0_i32 = arith.constant 0 : i32
    %c0_i32_0 = arith.constant 0 : i32
    %c0_i32_1 = arith.constant 0 : i32
    return %arg0, %c0_i32, %c0_i32_0 : i32, i32, i32
  }
}

</mosaic_0001>

<bundles_post_ra>
// kernel: _lambda_.8
= control target key start
LH: loop header
LB: loop body
LE: loop exit
PB: predicated region body
PF: predicated region fallthrough
CT: control target
= control target key end

     0   :  { %s357_s12 = smov 0   ;;  %s383_s0 = inlined_call_operand.vmem [shape: f32[2,8,24], index: 0, kind: input, shape index: {}]   ;;  %s384_s1 = inlined_call_operand.vmem [shape: bf16[24,32], index: 1, kind: input, shape index: {}]   ;;  %s385_s2 = inlined_call_operand.vmem [shape: f32[1,32], index: 2, kind: input, shape index: {}]   ;;  %s386_s3 = inlined_call_operand.vmem [shape: f32[2,8,32], index: 3, kind: output, shape index: {}]  }
   0x1 LB: > { %s291_s13 = sadd.s32 4294967295, %s333_s12   ;;  %p295_p0 = scmp.ge.s32.totalorder %s333_s12, 1  ;;  %s333_s12 = sphi %s357_s12, %s13_s12  }
   0x2   : > { %p136_p1 = scmp.lt.s32.totalorder %s333_s12, 3 }
   0x4   : > { %p137_p2 = pnand %p295_p0, %p136_p1 }
   0x5   : > { %p158_p3 = scmp.lt.s32.totalorder (!%p137_p2), %s291_s13, 1 }
   0x6   : > { %140 = sbr.rel (%p137_p2) target bundleno = 219 (0xdb), region = 32 }
   0xb   : > { %v325_v0 = vld [vmem:[%s384_s1 + $0x8] ss:$0 sps:$4 sm:$0xff]   ;;  %vm192_vm0 = vcmask 1043456   ;;  %v335_v1 = vmov 0.0   ;;  %vm336_vm1 = vmmov 0   ;;  %v326_v3 = vld [vmem:[%s384_s1] sm:$0xff]  }
   0xc   : > { %307 = vmatprep.subr.bf16.mxu0 %v335_v1  ;;  %v194_v2 = vsel %vm192_vm0, %v325_v0, 0  ;;  %311 = vmatprep.mubr.msk.bf16.mxu0 %vm336_vm1, %v335_v1  ;;  %s388_s13 = smov (!%p158_p3, %s291_s13), 1  ;;  %vm188_vm2 = vcmask 195584   ;;  %v298_v6 = vld [vmem:[%s385_s2] ss:$0 sm:$0xff]  ;;  %vm236_vm3 = vcmask 261120  }
   0xd   : > { %308 = vmatpush3.bf16.msra.mxu0 %v194_v2  ;;  %s296_s18 = sshll.u32 %s388_s13, 3 }
   0xe   : > { %309 = vmatprep.subr.bf16.mxu0 %v335_v1  ;;  %s161_s21 = scalar_lea.vmem %s383_s0, %s296_s18  ;;  %s165_s26 = scalar_lea.vmem %s386_s3, %s296_s18 }
   0xf   : > { %v167_v4 = vld [vmem:[%s161_s21] sm:$0xff] }
  0x10   : > { %v168_v5 = vpack.c.bf16 %v167_v4, %v167_v4 }
  0x11   : > { %310 = vmatpush3.bf16.msra.mxu0 %v326_v3 }
  0x14   : > { %312 = vmatmul.mubr.msk.bf16.vlgmr.msra.gmra.mxu0 %vm188_vm2, %v168_v5 }
  0xd4   : > { %v230_v7 = vpop.f32.mrf.mxu0 }
  0xd5   : > { %v231_v8 = vadd.f32 %v298_v6, %v230_v7 }
  0xd6   : > { %v313_v9 = vpop.f32.mrf.mxu0 }
  0xd7   : > { %237 = vst.msk [vmem:[%s165_s26] sm:$0xff] %vm236_vm3, %v231_v8 }
  0xd8   : > { %v233_v10 = vpop.f32.mrf.mxu0 }
  0xda   : > { %v314_v11 = vpop.f32.mrf.mxu0 }
  0xdb PF: > { %s13_s12 = sadd.s32 1, %s333_s12  }
  0xdc   : > { %p10_p4 = scmp.ge.s32.totalorder %s13_s12, 4  }
  0xde   :  { %12 = sbr.rel (!%p10_p4) target bundleno = 1 (0x1), region = 62 }

// kernel: _lambda_.7
= control target key start
LH: loop header
LB: loop body
LE: loop exit
PB: predicated region body
PF: predicated region fallthrough
CT: control target
= control target key end

     0   :  { %s384_s12 = smov 0   ;;  %s413_s0 = inlined_call_operand.vmem [shape: f32[2,16,48], index: 0, kind: input, shape index: {}]   ;;  %s414_s1 = inlined_call_operand.vmem [shape: bf16[48,32], index: 1, kind: input, shape index: {}]   ;;  %s415_s2 = inlined_call_operand.vmem [shape: f32[1,32], index: 2, kind: input, shape index: {}]   ;;  %s416_s3 = inlined_call_operand.vmem [shape: f32[2,16,32], index: 3, kind: output, shape index: {}]  }
   0x1 LB: > { %s309_s13 = sadd.s32 4294967295, %s360_s12   ;;  %p313_p0 = scmp.ge.s32.totalorder %s360_s12, 1  ;;  %s360_s12 = sphi %s384_s12, %s13_s12  }
   0x2   : > { %p137_p1 = scmp.lt.s32.totalorder %s360_s12, 3 }
   0x4   : > { %p138_p2 = pnand %p313_p0, %p137_p1 }
   0x5   : > { %p161_p3 = scmp.lt.s32.totalorder (!%p138_p2), %s309_s13, 1 }
   0x6   : > { %141 = sbr.rel (%p138_p2) target bundleno = 224 (0xe0), region = 32 }
   0xb   : > { %v351_v0 = vld [vmem:[%s414_s1 + $0x10] sm:$0xff]   ;;  %v362_v1 = vmov 0.0   ;;  %v352_v2 = vld [vmem:[%s414_s1 + $0x8] sm:$0xff]   ;;  %vm363_vm0 = vmmov 0   ;;  %s418_s13 = smov (!%p161_p3, %s309_s13), 1  ;;  %v353_v3 = vld [vmem:[%s414_s1] sm:$0xff]  }
   0xc   : > { %331 = vmatprep.subr.bf16.mxu0 %v362_v1  ;;  %337 = vmatprep.mubr.msk.bf16.mxu0 %vm363_vm0, %v362_v1  ;;  %s325_s20 = sshll.u32 %s418_s13, 4  ;;  %vm206_vm1 = vcmask 392192   ;;  %v318_v7 = vld [vmem:[%s415_s2] ss:$0 sm:$0xff]  ;;  %vm251_vm2 = vcmask 261120  }
   0xd   : > { %332 = vmatpush3.bf16.msra.mxu0 %v351_v0  ;;  %s165_s23 = scalar_lea.vmem %s413_s0, %s325_s20  ;;  %s170_s28 = scalar_lea.vmem %s416_s3, %s325_s20 }
   0xe   : > { %333 = vmatprep.subr.bf16.mxu0 %v362_v1  ;;  %v172_v4 = vld [vmem:[%s165_s23] sm:$0xff]  ;;  %v173_v5 = vld [vmem:[%s165_s23 + $0x8] sm:$0xff] }
   0xf   : > { %v174_v6 = vpack.c.bf16 %v173_v5, %v172_v4 }
  0x11   : > { %334 = vmatpush3.bf16.msra.mxu0 %v352_v2 }
  0x12   : > { %335 = vmatprep.subr.bf16.mxu0 %v362_v1 }
  0x15   : > { %336 = vmatpush3.bf16.msra.mxu0 %v353_v3 }
  0x18   : > { %338 = vmatmul.mubr.msk.bf16.vlgmr.msra.gmra.mxu0 %vm206_vm1, %v174_v6 }
  0xd8   : > { %v244_v8 = vpop.f32.mrf.mxu0 }
  0xd9   : > { %v245_v9 = vadd.f32 %v318_v7, %v244_v8 }
  0xda   : > { %v339_v10 = vpop.f32.mrf.mxu0 }
  0xdb   : > { %252 = vst.msk [vmem:[%s170_s28] sm:$0xff] %vm251_vm2, %v245_v9 }
  0xdc   : > { %v247_v11 = vpop.f32.mrf.mxu0 }
  0xdd   : > { %v248_v12 = vadd.f32 %v318_v7, %v247_v11 }
  0xde   : > { %v340_v13 = vpop.f32.mrf.mxu0 }
  0xdf   : > { %253 = vst.msk [vmem:[%s170_s28 + $0x8] sm:$0xff] %vm251_vm2, %v248_v12 }
  0xe0 PF: > { %s13_s12 = sadd.s32 1, %s360_s12  }
  0xe1   : > { %p10_p4 = scmp.ge.s32.totalorder %s13_s12, 4  }
  0xe3   :  { %12 = sbr.rel (!%p10_p4) target bundleno = 1 (0x1), region = 62 }

// kernel: _lambda_.9
= control target key start
LH: loop header
LB: loop body
LE: loop exit
PB: predicated region body
PF: predicated region fallthrough
CT: control target
= control target key end

     0   :  { %s1885_s29 = smov 0   ;;  %s2057_s0 = inlined_call_operand.vmem [shape: f32[2,8,32], index: 0, kind: input, shape index: {}]   ;;  %s2058_s1 = inlined_call_operand.vmem [shape: f32[2,8,8], index: 1, kind: input, shape index: {}]   ;;  %s2059_s2 = inlined_call_operand.vmem [shape: bf16[32,96], index: 2, kind: input, shape index: {}]   ;;  %s2060_s3 = inlined_call_operand.vmem [shape: f32[1,96], index: 3, kind: input, shape index: {}]   ;;  %s2061_s4 = inlined_call_operand.vmem [shape: bf16[32,32], index: 4, kind: input, shape index: {}]   ;;  %s2062_s5 = inlined_call_operand.vmem [shape: f32[1,32], index: 5, kind: input, shape index: {}]   ;;  %s2063_s6 = inlined_call_operand.vmem [shape: f32[1,32], index: 6, kind: input, shape index: {}]   ;;  %s2064_s7 = inlined_call_operand.vmem [shape: f32[1,32], index: 7, kind: input, shape index: {}]   ;;  %s2065_s8 = inlined_call_operand.vmem [shape: bf16[32,64], index: 8, kind: input, shape index: {}]   ;;  %s2066_s9 = inlined_call_operand.vmem [shape: f32[1,64], index: 9, kind: input, shape index: {}]   ;;  %s2067_s10 = inlined_call_operand.vmem [shape: bf16[64,32], index: 10, kind: input, shape index: {}]   ;;  %s2068_s11 = inlined_call_operand.vmem [shape: f32[1,32], index: 11, kind: input, shape index: {}]   ;;  %s2069_s12 = inlined_call_operand.vmem [shape: f32[1,32], index: 12, kind: input, shape index: {}]   ;;  %s2070_s13 = inlined_call_operand.vmem [shape: f32[1,32], index: 13, kind: input, shape index: {}]   ;;  %s2071_s14 = inlined_call_operand.vmem [shape: f32[2,8,32], index: 14, kind: output, shape index: {}]  }
   0x1 LB: > { %s1582_s30 = sadd.s32 4294967295, %s1792_s29   ;;  %p1586_p0 = scmp.ge.s32.totalorder %s1792_s29, 1  ;;  %s1792_s29 = sphi %s1885_s29, %s24_s29  }
   0x2   : > { %p420_p1 = scmp.lt.s32.totalorder %s1792_s29, 3 }
   0x4   : > { %p421_p2 = pnand %p1586_p0, %p420_p1 }
   0x5   : > { %p468_p3 = scmp.lt.s32.totalorder (!%p421_p2), %s1582_s30, 1  ;;  %s1796_s25 = smov (!%p421_p2), 64  }
   0x6   : > { %424 = sbr.rel (%p421_p2) target bundleno = 2886 (0xb46), region = 76  ;;  %s1797_s26 = smov (!%p421_p2), 96  }
   0x7   : > { %s1798_s27 = smov (!%p421_p2), 88   ;;  %s1799_s28 = smov (!%p421_p2), 120  }
   0x8   : > { %s1801_s18 = smov (!%p421_p2), 72   ;;  %s1802_s20 = smov (!%p421_p2), 112  }
   0x9   : > { %s1803_s21 = smov (!%p421_p2), 104   ;;  %s1805_s23 = smov (!%p421_p2), 40  }
   0xa   : > { %s1806_s24 = smov (!%p421_p2), 48   ;;  %s1808_s15 = smov (!%p421_p2), 16  }
   0xb   : > { %v1756_v0 = vld [vmem:[%s2059_s2 + $0x8] sm:$0xff]   ;;  %v1794_v1 = vmov 0.0   ;;  %v1757_v2 = vld [vmem:[%s2059_s2] sm:$0xff]   ;;  %vm1795_vm0 = vmmov 0   ;;  %s2073_s30 = smov (!%p468_p3, %s1582_s30), 1  ;;  %vm512_vm1 = vcmask 261120  }
   0xc   : > { %1656 = vmatprep.subr.bf16.mxu0 %v1794_v1  ;;  %1669 = vmatprep.subr.mxu1 %v1794_v1  ;;  %s1906_s19 = sshll.u32 %s2073_s30, 3  ;;  %v1590_v5 = vld [vmem:[%s2060_s3] ss:$0 sm:$0xff]  ;;  %s1800_s30 = smov 80   ;;  %vm559_vm2 = vcmask 64512   ;;  %vm1237_vm3 = vcmask 130048  }
   0xd   : > { %1657 = vmatpush3.bf16.msra.mxu0 %v1756_v0  ;;  %1660 = vmatprep.mubr.msk.bf16.mxu0 %vm1795_vm0, %v1794_v1  ;;  %s471_s22 = scalar_lea.vmem %s2057_s0, %s1906_s19  ;;  %s475_s17 = scalar_lea.vmem %s2058_s1, %s1906_s19  ;;  %vm1239_vm4 = vcmask 195584   ;;  %vm1442_vm5 = vcmask 523264  }
   0xe   : > { %1658 = vmatprep.subr.bf16.mxu0 %v1794_v1  ;;  %1671 = vmatprep.mubr.msk.f32.mxu1 %vm1795_vm0, %v1794_v1  ;;  %v1913_v3 = vld [vmem:[%s471_s22] sm:$0xff]  ;;  %s1804_s22 = smov 56   ;;  %s1809_s16 = smov 24  }
   0xf   : > { %v493_v4 = vpack.c.bf16 %v1913_v3, %v1913_v3  ;;  %v482_v14 = vld [vmem:[%s475_s17] sm:$0xff]  ;;  %s479_s17 = scalar_lea.vmem %s2071_s14, %s1906_s19 }
  0x11   : > { %1659 = vmatpush3.bf16.msra.mxu0 %v1757_v2 }
  0x12   : > { %1664 = vmatprep.subr.mxu0 %v1794_v1 }
  0x14   : > { %1661 = vmatmul.mubr.msk.bf16.vlgmr.msra.gmra.mxu0 %vm512_vm1, %v493_v4 }
  0x15   : > { %1666 = vmatprep.mubr.msk.f32.mxu0 %vm1795_vm0, %v1794_v1 }
  0xd4   : > { %v550_v6 = vpop.f32.mrf.mxu0 }
  0xd5   : > { %v1923_v7 = vadd.f32 %v1590_v5, %v550_v6 }
  0xd6   : > { %v1662_v8 = vpop.f32.mrf.mxu0 }
  0xd7   : > { %647 = vrot.lane.b32.xlu1 %v1923_v7, %s1796_s25  ;;  %557 = vrot.lane.b32.xlu0 %v1923_v7, %s1797_s26 }
  0xd8   : > { %v553_v9 = vpop.f32.mrf.mxu0 }
  0xda   : > { %v1663_v10 = vpop.f32.mrf.mxu0 }
  0xdb   : > { %725 = vrot.lane.b32.xlu1 %v1923_v7, %s1798_s27 }
  0xdf   : > { %723 = vrot.lane.b32.xlu1 %v1923_v7, %s1799_s28 }
  0xe3   : > { %892 = vrot.lane.b32.xlu1 %v1923_v7, %s1800_s30  ;;  %s1807_s30 = smov 8  }
 0x149   : > { %v648_v11 = vpop.permute.xlu1 %647  ;;  %v558_v12 = vpop.permute.xlu0 %557 }
 0x14a   : > { %1665 = vmatpush3.xpose.msk.msra.mxu0 %vm559_vm2, %v558_v12  ;;  %1670 = vmatpush3.msra.mxu1 %v648_v11 }
 0x14b   : > { %1674 = vmatprep.subr.mxu1 %v1794_v1  ;;  %1679 = vmatprep.subr.mxu0 %v1794_v1 }
 0x14d   : > { %1667 = vmatmul.mubr.msk.f32.vlgmr.msra.gmra.mxu0 %vm559_vm2, %v1923_v7  ;;  %v726_v24 = vpop.permute.xlu1 %725 }
 0x14e   : > { %1681 = vmatprep.mubr.msk.f32.mxu0 %vm1795_vm0, %v1794_v1 }
 0x151   : > { %v724_v25 = vpop.permute.xlu1 %723 }
 0x155   : > { %v893_v26 = vpop.permute.xlu1 %892 }
 0x20d   : > { %v630_v13 = vpop.f32.mrf.mxu0 }
 0x20e   : > { %v634_v15 = vmul.f32 0.35355338, %v630_v13 }
 0x20f   : > { %v1668_v16 = vpop.f32.mrf.mxu0 }
 0x210   : > { %v635_v17 = vadd.f32 %v634_v15, %v482_v14  ;;  %v1758_v15 = vld [vmem:[%s2061_s4 + $0x8] sm:$0xff]   ;;  %v1759_v16 = vld [vmem:[%s2061_s4] sm:$0xff]  }
 0x212   : > { %v636_v18 = vsel %vm559_vm2, %v635_v17, -inf }
 0x213   : > { %637 = vmax.xlane.f32.xlu0 %v636_v18 }
 0x229   : > { %1059 = vrot.lane.b32.xlu0 %v1923_v7, %s1801_s18 }
 0x29c   : > { %v638_v19 = vpop.xlane.xlu0 %637 }
 0x29d   : > { %v639_v20 = vsub.f32 %v635_v17, %v638_v19 }
 0x29f   : > { %v640_v21 = vmul.f32 1.442695, %v639_v20 }
 0x2a0   : > { %v1060_v31 = vpop.permute.xlu0 %1059 }
 0x2a1   : > { %1766 = vpow2.f32 %v640_v21 }
 0x2ae   : > { %v1767_v22 = vpop.eup %1766 }
 0x2af   : > { %v642_v23 = vsel %vm559_vm2, %v1767_v22, 0.0 }
 0x2b0   : > { %643 = vadd.xlane.f32.xlu1 %v642_v23 }
 0x2c1   : > { %890 = vrot.lane.b32.xlu1 %v1923_v7, %s1802_s20 }
 0x2c5   : > { %1057 = vrot.lane.b32.xlu1 %v1923_v7, %s1803_s21 }
 0x339   : > { %v644_v27 = vpop.xlane.xlu1 %643 }
 0x33a   : > { %1768 = vrcp.f32 %v644_v27 }
 0x33d   : > { %v891_v30 = vpop.permute.xlu1 %890 }
 0x341   : > { %v1058_v32 = vpop.permute.xlu1 %1057 }
 0x347   : > { %v1769_v28 = vpop.eup %1768 }
 0x348   : > { %v646_v29 = vmul.f32 %v1769_v28, %v1767_v22 }
 0x34a   : > { %1672 = vmatmul.mubr.msk.f32.vlgmr.msra.gmra.mxu1 %vm559_vm2, %v646_v29 }
 0x34b   : > { %1675 = vmatpush3.xpose.msk.msra.mxu1 %vm559_vm2, %v726_v24  ;;  %1676 = vmatprep.mubr.msk.f32.mxu1 %vm1795_vm0, %v1794_v1 }
 0x34c   : > { %1684 = vmatprep.subr.mxu1 %v1794_v1 }
 0x34e   : > { %1677 = vmatmul.mubr.msk.f32.vlgmr.msra.gmra.mxu1 %vm559_vm2, %v724_v25 }
 0x34f   : > { %1685 = vmatpush3.xpose.msk.msra.mxu1 %vm559_vm2, %v893_v26  ;;  %1686 = vmatprep.mubr.msk.f32.mxu1 %vm1795_vm0, %v1794_v1 }
 0x350   : > { %1694 = vmatprep.subr.mxu1 %v1794_v1 }
 0x352   : > { %1687 = vmatmul.mubr.msk.f32.vlgmr.msra.gmra.mxu1 %vm559_vm2, %v891_v30  ;;  %v1606_v30 = vld [vmem:[%s2062_s5] ss:$0 sm:$0xff] }
 0x353   : > { %1695 = vmatpush3.xpose.msk.msra.mxu1 %vm559_vm2, %v1060_v31  ;;  %1696 = vmatprep.mubr.msk.f32.mxu1 %vm1795_vm0, %v1794_v1 }
 0x354   : > { %1704 = vmatprep.subr.bf16.mxu1 %v1794_v1 }
 0x356   : > { %1697 = vmatmul.mubr.msk.f32.vlgmr.msra.gmra.mxu1 %vm559_vm2, %v1058_v32 }
 0x357   : > { %1708 = vmatprep.mubr.msk.bf16.mxu1 %vm1795_vm0, %v1794_v1  ;;  %1705 = vmatpush3.bf16.msra.mxu1 %v1758_v15 }
 0x358   : > { %1706 = vmatprep.subr.bf16.mxu1 %v1794_v1 }
 0x35b   : > { %1707 = vmatpush3.bf16.msra.mxu1 %v1759_v16 }
 0x35c   : > { %1720 = vmatprep.subr.bf16.mxu1 %v1794_v1 }
 0x40a   : > { %v1964_v33 = vpop.f32.mrf.mxu1 }
 0x40c   : > { %v1673_v34 = vpop.f32.mrf.mxu1 }
 0x40e   : > { %v797_v35 = vpop.f32.mrf.mxu1 }
 0x40f   : > { %v801_v36 = vmul.f32 0.35355338, %v797_v35 }
 0x410   : > { %v1678_v37 = vpop.f32.mrf.mxu1 }
 0x411   : > { %v802_v38 = vadd.f32 %v801_v36, %v482_v14 }
 0x412   : > { %v964_v39 = vpop.f32.mrf.mxu1 }
 0x413   : > { %v968_v40 = vmul.f32 0.35355338, %v964_v39  ;;  %v803_v41 = vsel %vm559_vm2, %v802_v38, -inf }
 0x414   : > { %804 = vmax.xlane.f32.xlu1 %v803_v41  ;;  %v1688_v42 = vpop.f32.mrf.mxu1 }
 0x415   : > { %v969_v43 = vadd.f32 %v968_v40, %v482_v14 }
 0x416   : > { %v1131_v44 = vpop.f32.mrf.mxu1 }
 0x417   : > { %v1135_v45 = vmul.f32 0.35355338, %v1131_v44  ;;  %v970_v46 = vsel %vm559_vm2, %v969_v43, -inf  ;;  %v1762_v44 = vld [vmem:[%s2067_s10 + $0x18] sm:$0xff]  }
 0x418   : > { %971 = vmax.xlane.f32.xlu0 %v970_v46  ;;  %v1698_v47 = vpop.f32.mrf.mxu1 }
 0x419   : > { %v1136_v48 = vadd.f32 %v1135_v45, %v482_v14  ;;  %v1763_v45 = vld [vmem:[%s2067_s10 + $0x10] sm:$0xff]  }
 0x41b   : > { %v1137_v49 = vsel %vm559_vm2, %v1136_v48, -inf }
 0x41c   : > { %1138 = vmax.xlane.f32.xlu1 %v1137_v49 }
 0x42d   : > { %814 = vrot.lane.b32.xlu1 %v1923_v7, %s1804_s22 }
 0x49d   : > { %v805_v50 = vpop.xlane.xlu1 %804 }
 0x49e   : > { %v806_v51 = vsub.f32 %v802_v38, %v805_v50  ;;  %v1610_v50 = vld [vmem:[%s2063_s6] ss:$0 sm:$0xff] }
 0x4a0   : > { %v807_v52 = vmul.f32 1.442695, %v806_v51 }
 0x4a1   : > { %v972_v53 = vpop.xlane.xlu0 %971 }
 0x4a2   : > { %1770 = vpow2.f32 %v807_v52  ;;  %v973_v54 = vsub.f32 %v969_v43, %v972_v53  ;;  %v1760_v43 = vld [vmem:[%s2065_s8 + $0x8] sm:$0xff]   ;;  %v1611_v52 = vld [vmem:[%s2064_s7] ss:$0 sm:$0xff] }
 0x4a4   : > { %v974_v55 = vmul.f32 1.442695, %v973_v54 }
 0x4a5   : > { %v1139_v56 = vpop.xlane.xlu1 %1138 }
 0x4a6   : > { %1772 = vpow2.f32 %v974_v55  ;;  %v1140_v57 = vsub.f32 %v1136_v48, %v1139_v56  ;;  %v1764_v56 = vld [vmem:[%s2067_s10 + $0x8] sm:$0xff]  }
 0x4a8   : > { %v1141_v58 = vmul.f32 1.442695, %v1140_v57  ;;  %v1765_v57 = vld [vmem:[%s2067_s10] sm:$0xff]  }
 0x4a9   : > { %v815_v59 = vpop.permute.xlu1 %814 }
 0x4aa   : > { %1774 = vpow2.f32 %v1141_v58  ;;  %1680 = vmatpush3.msra.mxu0 %v815_v59  ;;  %v1612_v58 = vld [vmem:[%s2066_s9] ss:$0 sm:$0xff] }
 0x4ab   : > { %1689 = vmatprep.subr.mxu0 %v1794_v1 }
 0x4af   : > { %v1771_v60 = vpop.eup %1770 }
 0x4b0   : > { %v809_v61 = vsel %vm559_vm2, %v1771_v60, 0.0 }
 0x4b1   : > { %810 = vadd.xlane.f32.xlu1 %v809_v61 }
 0x4b3   : > { %v1773_v62 = vpop.eup %1772 }
 0x4b4   : > { %v976_v63 = vsel %vm559_vm2, %v1773_v62, 0.0 }
 0x4b5   : > { %977 = vadd.xlane.f32.xlu1 %v976_v63 }
 0x4b7   : > { %v1775_v0 = vpop.eup %1774 }
 0x4b8   : > { %v1143_v2 = vsel %vm559_vm2, %v1775_v0, 0.0 }
 0x4b9   : > { %1144 = vadd.xlane.f32.xlu0 %v1143_v2 }
 0x4c6   : > { %1148 = vrot.lane.b32.xlu1 %v1923_v7, %s1805_s23 }
 0x4cf   : > { %981 = vrot.lane.b32.xlu0 %v1923_v7, %s1806_s24 }
 0x53a   : > { %v811_v4 = vpop.xlane.xlu1 %810 }
 0x53b   : > { %1776 = vrcp.f32 %v811_v4 }
 0x53e   : > { %v978_v5 = vpop.xlane.xlu1 %977 }
 0x53f   : > { %1778 = vrcp.f32 %v978_v5 }
 0x542   : > { %v1145_v6 = vpop.xlane.xlu0 %1144  ;;  %v1149_v7 = vpop.permute.xlu1 %1148 }
 0x543   : > { %1780 = vrcp.f32 %v1145_v6 }
 0x546   : > { %v982_v10 = vpop.permute.xlu0 %981 }
 0x548   : > { %v1777_v8 = vpop.eup %1776 }
 0x549   : > { %v813_v9 = vmul.f32 %v1777_v8, %v1771_v60 }
 0x54b   : > { %1682 = vmatmul.mubr.msk.f32.vlgmr.msra.gmra.mxu0 %vm559_vm2, %v813_v9 }
 0x54c   : > { %v1779_v11 = vpop.eup %1778  ;;  %1690 = vmatpush3.msra.mxu0 %v982_v10  ;;  %1691 = vmatprep.mubr.msk.f32.mxu0 %vm1795_vm0, %v1794_v1 }
 0x54d   : > { %1699 = vmatprep.subr.mxu0 %v1794_v1  ;;  %v980_v12 = vmul.f32 %v1779_v11, %v1773_v62 }
 0x54f   : > { %1692 = vmatmul.mubr.msk.f32.vlgmr.msra.gmra.mxu0 %vm559_vm2, %v980_v12 }
 0x550   : > { %v1781_v13 = vpop.eup %1780  ;;  %1700 = vmatpush3.msra.mxu0 %v1149_v7  ;;  %1701 = vmatprep.mubr.msk.f32.mxu0 %vm1795_vm0, %v1794_v1 }
 0x551   : > { %v1147_v14 = vmul.f32 %v1781_v13, %v1775_v0  ;;  %1712 = vmatprep.subr.bf16.mxu0 %v1794_v1 }
 0x553   : > { %1702 = vmatmul.mubr.msk.f32.vlgmr.msra.gmra.mxu0 %vm559_vm2, %v1147_v14 }
 0x554   : > { %1716 = vmatprep.mubr.msk.bf16.mxu0 %vm1795_vm0, %v1794_v1  ;;  %1713 = vmatpush3.bf16.msra.mxu0 %v1760_v43 }
 0x555   : > { %1714 = vmatprep.subr.bf16.mxu0 %v1794_v1 }
 0x60b   : > { %v886_v17 = vpop.f32.mrf.mxu0 }
 0x60c   : > { %1225 = vrot.lane.b32.xlu1 %v886_v17, %s1807_s30 }
 0x60d   : > { %v1683_v18 = vpop.f32.mrf.mxu0 }
 0x60f   : > { %v1053_v19 = vpop.f32.mrf.mxu0 }
 0x610   : > { %1229 = vrot.lane.b32.xlu0 %v1053_v19, %s1808_s15 }
 0x611   : > { %v1693_v20 = vpop.f32.mrf.mxu0 }
 0x612   : > { %v1622_v20 = vld [vmem:[%s2069_s12] ss:$0 sm:$0xff] }
 0x613   : > { %v1220_v21 = vpop.f32.mrf.mxu0 }
 0x614   : > { %1233 = vrot.lane.b32.xlu1 %v1220_v21, %s1809_s16 }
 0x615   : > { %v1703_v22 = vpop.f32.mrf.mxu0 }
 0x616   : > { %v1623_v22 = vld [vmem:[%s2070_s13] ss:$0 sm:$0xff] }
 0x67e   : > { %v1226_v23 = vpop.permute.xlu1 %1225 }
 0x67f   : > { %v1236_v25 = vsel %vm559_vm2, %v1964_v33, %v1226_v23 }
 0x682   : > { %v1230_v24 = vpop.permute.xlu0 %1229 }
 0x683   : > { %v1238_v26 = vsel %vm1237_vm3, %v1236_v25, %v1230_v24 }
 0x686   : > { %v1234_v27 = vpop.permute.xlu1 %1233 }
 0x687   : > { %v1240_v28 = vsel %vm1239_vm4, %v1238_v26, %v1234_v27 }
 0x688   : > { %v1241_v29 = vpack.c.bf16 %v1240_v28, %v1240_v28 }
 0x68a   : > { %1709 = vmatmul.mubr.msk.bf16.vlgmr.msra.gmra.mxu1 %vm512_vm1, %v1241_v29 }
 0x68b   : > { %1728 = vmatprep.mubr.msk.bf16.mxu1 %vm1795_vm0, %v1794_v1  ;;  %1721 = vmatpush3.bf16.msra.mxu1 %v1762_v44 }
 0x68c   : > { %1722 = vmatprep.subr.bf16.mxu1 %v1794_v1 }
 0x68f   : > { %1723 = vmatpush3.bf16.msra.mxu1 %v1763_v45 }
 0x690   : > { %1724 = vmatprep.subr.bf16.mxu1 %v1794_v1 }
 0x693   : > { %1725 = vmatpush3.bf16.msra.mxu1 %v1764_v56 }
 0x694   : > { %1726 = vmatprep.subr.bf16.mxu1 %v1794_v1  ;;  %v1616_v1 = vld [vmem:[%s2068_s11] ss:$0 sm:$0xff] }
 0x697   : > { %1727 = vmatpush3.bf16.msra.mxu1 %v1765_v57 }
 0x74a   : > { %v1297_v31 = vpop.f32.mrf.mxu1 }
 0x74b   : > { %v1298_v32 = vadd.f32 %v1606_v30, %v1297_v31 }
 0x74c   : > { %v1710_v34 = vpop.f32.mrf.mxu1 }
 0x74d   : > { %v1303_v35 = vadd.f32 %v1298_v32, %v1913_v3  ;;  %v1761_v3 = vld [vmem:[%s2065_s8] sm:$0xff]  }
 0x74e   : > { %v1300_v36 = vpop.f32.mrf.mxu1  ;;  %1715 = vmatpush3.bf16.msra.mxu0 %v1761_v3 }
 0x74f   : > { %v1306_v33 = vsel %vm512_vm1, %v1303_v35, 0.0 }
 0x750   : > { %1307 = vadd.xlane.f32.xlu0 %v1306_v33  ;;  %v1711_v37 = vpop.f32.mrf.mxu1 }
 0x7d9   : > { %v1308_v38 = vpop.xlane.xlu0 %1307 }
 0x7da   : > { %v1310_v39 = vmul.f32 0.03125, %v1308_v38 }
 0x7dc   : > { %v1311_v40 = vsub.f32 %v1303_v35, %v1310_v39 }
 0x7de   : > { %v1312_v41 = vmul.f32 %v1311_v40, %v1311_v40 }
 0x7e0   : > { %v1313_v42 = vsel %vm512_vm1, %v1312_v41, 0.0 }
 0x7e1   : > { %1314 = vadd.xlane.f32.xlu1 %v1313_v42 }
 0x86a   : > { %v1315_v46 = vpop.xlane.xlu1 %1314 }
 0x86b   : > { %v1316_v47 = vmul.f32 0.03125, %v1315_v46 }
 0x86d   : > { %v1317_v48 = vadd.f32 1e-05, %v1316_v47 }
 0x86f   : > { %1782 = vrsqrt.f32 %v1317_v48 }
 0x87c   : > { %v1783_v49 = vpop.eup %1782 }
 0x87d   : > { %v1319_v51 = vmul.f32 %v1783_v49, %v1311_v40 }
 0x87f   : > { %v1326_v53 = vmul.f32 %v1610_v50, %v1319_v51 }
 0x881   : > { %v1333_v54 = vadd.f32 %v1611_v52, %v1326_v53 }
 0x883   : > { %v1348_v55 = vpack.c.bf16 %v1333_v54, %v1333_v54 }
 0x885   : > { %1717 = vmatmul.mubr.msk.bf16.vlgmr.msra.gmra.mxu0 %vm512_vm1, %v1348_v55 }
 0x945   : > { %v1404_v59 = vpop.f32.mrf.mxu0 }
 0x946   : > { %v1405_v60 = vadd.f32 %v1612_v58, %v1404_v59 }
 0x947   : > { %v1718_v61 = vpop.f32.mrf.mxu0 }
 0x948   : > { %v1410_v62 = vmax.f32 %v1405_v60, 0.0 }
 0x949   : > { %v1407_v63 = vpop.f32.mrf.mxu0 }
 0x94a   : > { %v1411_v0 = vpack.c.bf16 %v1410_v62, %v1410_v62 }
 0x94b   : > { %v1719_v2 = vpop.f32.mrf.mxu0 }
 0x94c   : > { %1729 = vmatmul.mubr.msk.bf16.vlgmr.msra.gmra.mxu1 %vm1442_vm5, %v1411_v0 }
 0xa0c   : > { %v1480_v4 = vpop.f32.mrf.mxu1 }
 0xa0d   : > { %v1481_v5 = vadd.f32 %v1616_v1, %v1480_v4 }
 0xa0e   : > { %v1730_v6 = vpop.f32.mrf.mxu1 }
 0xa0f   : > { %v1486_v8 = vadd.f32 %v1481_v5, %v1333_v54 }
 0xa10   : > { %v1483_v9 = vpop.f32.mrf.mxu1 }
 0xa11   : > { %v1489_v10 = vsel %vm512_vm1, %v1486_v8, 0.0 }
 0xa12   : > { %1490 = vadd.xlane.f32.xlu0 %v1489_v10  ;;  %v1731_v11 = vpop.f32.mrf.mxu1 }
 0xa9b   : > { %v1491_v12 = vpop.xlane.xlu0 %1490 }
 0xa9c   : > { %v1492_v7 = vmul.f32 0.03125, %v1491_v12 }
 0xa9e   : > { %v1493_v13 = vsub.f32 %v1486_v8, %v1492_v7 }
 0xaa0   : > { %v1494_v14 = vmul.f32 %v1493_v13, %v1493_v13 }
 0xaa2   : > { %v1495_v15 = vsel %vm512_vm1, %v1494_v14, 0.0 }
 0xaa3   : > { %1496 = vadd.xlane.f32.xlu0 %v1495_v15 }
 0xb2c   : > { %v1497_v16 = vpop.xlane.xlu0 %1496 }
 0xb2d   : > { %v1498_v17 = vmul.f32 0.03125, %v1497_v16 }
 0xb2f   : > { %v1499_v18 = vadd.f32 1e-05, %v1498_v17 }
 0xb31   : > { %1784 = vrsqrt.f32 %v1499_v18 }
 0xb3e   : > { %v1785_v19 = vpop.eup %1784 }
 0xb3f   : > { %v1501_v21 = vmul.f32 %v1785_v19, %v1493_v13 }
 0xb41   : > { %v1508_v23 = vmul.f32 %v1622_v20, %v1501_v21 }
 0xb43   : > { %v1515_v24 = vadd.f32 %v1623_v22, %v1508_v23 }
 0xb45   : > { %1516 = vst.msk [vmem:[%s479_s17] sm:$0xff] %vm512_vm1, %v1515_v24 }
 0xb46 PF: > { %s24_s29 = sadd.s32 1, %s1792_s29  }
 0xb47   : > { %p21_p4 = scmp.ge.s32.totalorder %s24_s29, 4  }
 0xb49   :  { %23 = sbr.rel (!%p21_p4) target bundleno = 1 (0x1), region = 109 }

// kernel: _lambda_.13
= control target key start
LH: loop header
LB: loop body
LE: loop exit
PB: predicated region body
PF: predicated region fallthrough
CT: control target
= control target key end

     0   :  { %s1550_s0 = inlined_call_operand.vmem [shape: f32[2,16,32], index: 0, kind: input, shape index: {}]   ;;  %s1551_s1 = inlined_call_operand.vmem [shape: f32[2,8,32], index: 1, kind: input, shape index: {}]   ;;  %s1552_s2 = inlined_call_operand.vmem [shape: f32[2,8,1], index: 2, kind: input, shape index: {}]   ;;  %s1553_s3 = inlined_call_operand.vmem [shape: bf16[32,1], index: 3, kind: input, shape index: {}]   ;;  %s1554_s4 = inlined_call_operand.<no memory space> [shape: f32[1,1], index: 4, kind: input, shape index: {}]   ;;  %s1555_s5 = inlined_call_operand.vmem [shape: bf16[32,1], index: 5, kind: input, shape index: {}]   ;;  %s1556_s7 = inlined_call_operand.vmem [shape: bf16[32,32], index: 7, kind: input, shape index: {}]   ;;  %s1557_s8 = inlined_call_operand.vmem [shape: f32[1,32], index: 8, kind: input, shape index: {}]   ;;  %s1558_s9 = inlined_call_operand.vmem [shape: bf16[32,32], index: 9, kind: input, shape index: {}]   ;;  %s1559_s10 = inlined_call_operand.vmem [shape: f32[1,32], index: 10, kind: input, shape index: {}]   ;;  %s1560_s11 = inlined_call_operand.vmem [shape: f32[1,32], index: 11, kind: input, shape index: {}]   ;;  %s1561_s12 = inlined_call_operand.vmem [shape: f32[1,32], index: 12, kind: input, shape index: {}]   ;;  %s1562_s13 = inlined_call_operand.vmem [shape: bf16[32,10], index: 13, kind: input, shape index: {}]   ;;  %s1563_s14 = inlined_call_operand.vmem [shape: f32[1,10], index: 14, kind: input, shape index: {}]   ;;  %s1564_s15 = inlined_call_operand.hbm [shape: f32[2,1,10], index: 15, kind: output, shape index: {}]   ;;  %s1565_s6 = inlined_call_operand.<no memory space> [shape: f32[1,1], index: 6, kind: input, shape index: {}]  }
   0x1   :  { %1567 = sst [smem:[#allocation9_spill]] %s1553_s3  ;;  %v20_v0 = vstv %s1554_s4  ;;  %v22_v1 = vstv %s1565_s6 }
   0x2   :  { %21 = vst [vmem:[#allocation2] sm:$0x1] %v20_v0  ;;  %23 = vst [vmem:[#allocation3] sm:$0x1] %v22_v1 }
   0x3   :  { %24 = vsyncpa [#allocation5], 0 }
   0x4   :  { %26 = vsyncpa [#allocation5 + $0x1], 0  ;;  %s1353_s22 = smov 0   ;;  %s1355_s23 = smov 0  }
   0x5   :  { %s1357_s24 = smov 0   ;;  %s1359_s25 = smov 0  }
   0x6 LB: > { %1568 = sst [smem:[#allocation7_spill]] %s1257_s24  ;;  %s1374_s4 = sadd.s32 4294967295, %s1261_s25   ;;  %s1261_s25 = sphi %s1359_s25, %s1577_s25   ;;  %s1257_s24 = sphi %s1357_s24, %s1574_s24   ;;  %s1253_s23 = sphi %s1355_s23, %s1576_s23   ;;  %s1249_s22 = sphi %s1353_s22, %s1575_s22  }
   0x7   : > { %s1051_s6 = sadd.s32 4294967294, %s1261_s25   ;;  %s1378_s26 = sadd.s32 1, %s1261_s25  }
   0x8   : > { %s369_s27 = sadd.s32 1, %s1257_s24  ;;  %s366_s28 = ssub.s32 %s1261_s25, %s1378_s26 }
   0x9   : > { %p379_p0 = scmp.ne.s32.totalorder %s1257_s24, %s1253_s23  ;;  %p367_p1 = scmp.eq.s32.totalorder %s366_s28, 0 }
   0xa   : > { %p380_p2 = scmp.eq.s32.totalorder %s1374_s4, 1  ;;  %p385_p3 = scmp.ne.s32.totalorder %s1253_s23, %s1249_s22 }
   0xb   : > { %p386_p4 = scmp.eq.s32.totalorder %s1051_s6, 1  ;;  %p1054_p7 = scmp.ge.s32.totalorder %s1261_s25, 1 }
   0xc   : > { %s1389_s29 = scalar_select %p367_p1, %s1257_s24, %s369_s27  }
   0xd   : > { %p1391_p5 = por %p380_p2, %p379_p0  ;;  %p1395_p6 = por %p386_p4, %p385_p3 }
   0xe   : > { %1569 = sst [smem:[#allocation8_spill]] %s1389_s29  ;;  %p462_p8 = scmp.lt.s32.totalorder %s1261_s25, 3 }
  0x10   : > { %p463_p9 = pnand %p1054_p7, %p462_p8 }
  0x11   : > { %s1572_s3 = sld [smem:[#allocation9_spill]] (!%p463_p9)  ;;  %p517_p10 = scmp.lt.s32.totalorder (!%p463_p9), %s1374_s4, 1 }
  0x12   : > { %466 = sbr.rel (%p463_p9) target bundleno = 1161 (0x489), region = 80  ;;  %s1076_s28 = sshll.u32 (!%p463_p9), %s1374_s4, 4 }
  0x13   : > { %s1509_s21 = scalar_lea.hbm (!%p463_p9), %s1564_s15, %s1076_s28 }
  0x17   : > { %v1179_v2 = vld [vmem:[%s1572_s3 + $0x8] sm:$0xff]   ;;  %v1263_v3 = vmov 0.0   ;;  %v1181_v5 = vld [vmem:[%s1572_s3] sm:$0xff]   ;;  %vm1264_vm0 = vmmov 0   ;;  %s518_s17 = scalar_select %p517_p10, %s1374_s4, 1  ;;  %vm559_vm1 = vcmask 261120  }
  0x18   : > { %1095 = vmatprep.subr.bf16.mxu0 %v1263_v3  ;;  %1103 = vmatprep.subr.bf16.mxu1 %v1263_v3  ;;  %v1180_v4 = vld [vmem:[%s1555_s5 + $0x8] sm:$0xff]   ;;  %v1182_v6 = vld [vmem:[%s1555_s5] sm:$0xff]   ;;  %v1265_v12 = vmov 0   ;;  %vm604_vm2 = vcmask 7168   ;;  %vm879_vm3 = vcmask 253952   ;;  %vm957_vm4 = vcmask 73728  }
  0x19   : > { %1096 = vmatpush3.bf16.msra.mxu0 %v1179_v2  ;;  %1099 = vmatprep.mubr.msk.bf16.mxu0 %vm1264_vm0, %v1263_v3  ;;  %s1079_s18 = sshll.u32 %s518_s17, 4  ;;  %s1057_s19 = sshll.u32 %s518_s17, 3  ;;  %v1063_v13 = vld [vmem:[#allocation3] ss:$0 sm:$0xff]  ;;  %v1059_v14 = vld [vmem:[#allocation2] ss:$0 sm:$0xff] }
  0x1a   : > { %1104 = vmatpush3.bf16.msra.mxu1 %v1180_v4  ;;  %1097 = vmatprep.subr.bf16.mxu0 %v1263_v3  ;;  %s521_s6 = scalar_lea.vmem %s1550_s0, %s1079_s18  ;;  %s525_s24 = scalar_lea.vmem %s1551_s1, %s1057_s19 }
  0x1b   : > { %1105 = vmatprep.subr.bf16.mxu1 %v1263_v3  ;;  %1107 = vmatprep.mubr.msk.bf16.mxu1 %vm1264_vm0, %v1263_v3  ;;  %v1430_v7 = vld [vmem:[%s521_s6] sm:$0xff]  ;;  %v1432_v8 = vld [vmem:[%s521_s6 + $0x8] sm:$0xff]  ;;  %s529_s29 = scalar_lea.vmem %s1552_s2, %s1057_s19  ;;  %s1266_s3 = smov [#allocation4]  }
  0x1c   : > { %v1434_v9 = vld [vmem:[%s525_s24] sm:$0xff]  ;;  %v540_v10 = vpack.c.bf16 %v1432_v8, %v1430_v7  ;;  %1178 = vset.pattern.permute.xlu1 %v1265_v12  ;;  %1177 = vset.pattern.permute.xlu0 %v1265_v12  ;;  %s515_s24 = sand.u32 1, %s1253_s23  }
  0x1d   : > { %1098 = vmatpush3.bf16.msra.mxu0 %v1181_v5  ;;  %v658_v11 = vpack.c.bf16 %v1434_v9, %v1434_v9  ;;  %v534_v16 = vld [vmem:[%s529_s29] sm:$0xff]  ;;  %s516_s17 = scalar_lea.vmem [#allocation4], %s515_s24  ;;  %s960_s6 = scalar_lea.sflag [#allocation5], %s515_s24 }
  0x1e   : > { %1106 = vmatpush3.bf16.msra.mxu1 %v1182_v6  ;;  %1111 = vmatprep.subr.bf16.mxu0 %v1263_v3  ;;  %s972_s18 = sshll.u32 %s516_s17, 4  ;;  %s1205_s29 = sshll.u32 %s1266_s3, 4  ;;  %s1511_s18 = int_to_ptr.vmem [resolvable:$true] %s972_s18  ;;  %s1206_s29 = int_to_ptr.vmem [resolvable:$false] %s1205_s29 }
  0x1f   : > { %1119 = vmatprep.subr.bf16.mxu1 %v1263_v3  ;;  %s1201_s4 = scalar_lea.vmem %s1511_s18, 16  ;;  %s1207_s27 = scalar_lea.vmem %s1206_s29, 32 }
  0x20   : > { %1100 = vmatmul.mubr.msk.bf16.vlgmr.msra.gmra.mxu0 %vm559_vm1, %v540_v10  ;;  %p1202_p11 = scmp.ne.s32.totalorder %s1511_s18, %s1201_s4  ;;  %p1208_p0 = scmp.lt.s32.totalorder %s1511_s18, %s1206_s29 }
  0x21   : > { %1108 = vmatmul.mubr.msk.bf16.vlgmr.msra.gmra.mxu1 %vm559_vm1, %v658_v11  ;;  %1115 = vmatprep.mubr.msk.bf16.mxu0 %vm1264_vm0, %v1263_v3  ;;  %p1209_p1 = scmp.lt.s32.totalorder %s1207_s27, %s1201_s4 }
  0x22   : > { %1123 = vmatprep.mubr.msk.bf16.mxu1 %vm1264_vm0, %v1263_v3  ;;  %p1203_p12 = pnand %p1202_p11, %p1391_p5 }
  0x23   : > { %p1210_p2 = por %p1209_p1, %p1208_p0 }
  0x24   : > { %p1204_p13 = pneg %p1203_p12 }
  0x26   : > { %p1211_p3 = pnand %p1210_p2, %p1204_p13 }
  0xe0   : > { %v597_v15 = vpop.f32.mrf.mxu0 }
  0xe1   : > { %v714_v17 = vpop.f32.mrf.mxu1  ;;  %v598_v21 = vadd.f32 %v1059_v14, %v597_v15  ;;  %v1184_v15 = vld [vmem:[%s1558_s9] sm:$0xff]  }
  0xe2   : > { %v715_v18 = vadd.f32 %v1063_v13, %v714_v17  ;;  %v1101_v19 = vpop.f32.mrf.mxu0  ;;  %v1183_v13 = vld [vmem:[%s1558_s9 + $0x8] sm:$0xff]   ;;  %v1186_v17 = vld [vmem:[%s1556_s7] sm:$0xff]  }
  0xe3   : > { %v1109_v20 = vpop.f32.mrf.mxu1  ;;  %v605_v30 = vsel %vm604_vm2, %v598_v21, -inf  ;;  %1120 = vmatpush3.bf16.msra.mxu1 %v1183_v13 }
  0xe4   : > { %v720_v22 = vadd.f32 %v715_v18, %v534_v16  ;;  %v600_v23 = vpop.f32.mrf.mxu0  ;;  %1121 = vmatprep.subr.bf16.mxu1 %v1263_v3  ;;  %v1185_v16 = vld [vmem:[%s1556_s7 + $0x8] sm:$0xff]  }
  0xe5   : > { %v717_v24 = vpop.f32.mrf.mxu1  ;;  %v601_v26 = vadd.f32 %v1059_v14, %v600_v23  ;;  %1112 = vmatpush3.bf16.msra.mxu0 %v1185_v16 }
  0xe6   : > { %v721_v25 = vsel %vm604_vm2, %v720_v22, -inf  ;;  %v1102_v28 = vpop.f32.mrf.mxu0  ;;  %1113 = vmatprep.subr.bf16.mxu0 %v1263_v3 }
  0xe7   : > { %v722_v27 = vrot.slane %v721_v25, 4  ;;  %v1110_v29 = vpop.f32.mrf.mxu1  ;;  %v606_v31 = vsel %vm604_vm2, %v601_v26, -inf  ;;  %1122 = vmatpush3.bf16.msra.mxu1 %v1184_v15 }
  0xe8   : > { %v607_v33 = vmax.f32 %v605_v30, %v606_v31 }
  0xe9   : > { %v723_v32 = vmax.f32 %v721_v25, %v722_v27  ;;  %1114 = vmatpush3.bf16.msra.mxu0 %v1186_v17 }
  0xea   : > { %v608_v35 = vrot.slane %v607_v33, 4  ;;  %1127 = vmatprep.subr.bf16.mxu0 %v1263_v3 }
  0xeb   : > { %v724_v34 = vrot.slane %v723_v32, 2 }
  0xec   : > { %v609_v37 = vmax.f32 %v607_v33, %v608_v35 }
  0xed   : > { %v725_v36 = vmax.f32 %v723_v32, %v724_v34 }
  0xee   : > { %v610_v39 = vrot.slane %v609_v37, 2 }
  0xef   : > { %v726_v38 = vrot.slane %v725_v36, 1 }
  0xf0   : > { %v611_v41 = vmax.f32 %v609_v37, %v610_v39 }
  0xf1   : > { %v727_v40 = vmax.f32 %v725_v36, %v726_v38 }
  0xf2   : > { %v612_v43 = vrot.slane %v611_v41, 1 }
  0xf3   : > { %v728_v42 = vsub.f32 %v720_v22, %v727_v40 }
  0xf4   : > { %v613_v45 = vmax.f32 %v611_v41, %v612_v43  ;;  %v758_v43 = vld [vmem:[%s1557_s8] sm:$0x1] }
  0xf5   : > { %v729_v44 = vmul.f32 1.442695, %v728_v42 }
  0xf6   : > { %v614_v46 = vsub.f32 %v598_v21, %v613_v45  ;;  %v615_v47 = vsub.f32 %v601_v26, %v613_v45 }
  0xf7   : > { %1189 = vpow2.f32 %v729_v44 }
  0xf8   : > { %v616_v48 = vmul.f32 1.442695, %v614_v46  ;;  %v618_v49 = vmul.f32 1.442695, %v615_v47  ;;  %v875_v47 = vld [vmem:[%s1559_s10] sm:$0x1] }
  0xfa   : > { %1191 = vpow2.f32 %v616_v48 }
  0xfb   : > { %1193 = vpow2.f32 %v618_v49 }
 0x104   : > { %v1190_v50 = vpop.eup %1189 }
 0x105   : > { %v731_v51 = vsel %vm604_vm2, %v1190_v50, 0.0 }
 0x106   : > { %v732_v52 = vrot.slane %v731_v51, 4 }
 0x107   : > { %v1192_v53 = vpop.eup %1191 }
 0x108   : > { %v733_v54 = vadd.f32 %v732_v52, %v731_v51  ;;  %v1194_v55 = vpop.eup %1193  ;;  %v620_v56 = vsel %vm604_vm2, %v1192_v53, 0.0 }
 0x109   : > { %v621_v57 = vsel %vm604_vm2, %v1194_v55, 0.0 }
 0x10a   : > { %v734_v58 = vrot.slane %v733_v54, 2  ;;  %v622_v59 = vadd.f32 %v621_v57, %v620_v56 }
 0x10c   : > { %v735_v60 = vadd.f32 %v734_v58, %v733_v54  ;;  %v623_v61 = vrot.slane %v622_v59, 4  ;;  %v1187_v58 = vld [vmem:[%s1562_s13 + $0x8] sm:$0xff]  }
 0x10e   : > { %v736_v62 = vrot.slane %v735_v60, 1  ;;  %v624_v63 = vadd.f32 %v623_v61, %v622_v59  ;;  %v1188_v59 = vld [vmem:[%s1562_s13] sm:$0xff]  }
 0x110   : > { %v737_v0 = vadd.f32 %v736_v62, %v735_v60  ;;  %v625_v1 = vrot.slane %v624_v63, 2 }
 0x112   : > { %1195 = vrcp.f32 %v737_v0  ;;  %v626_v2 = vadd.f32 %v625_v1, %v624_v63  ;;  %v877_v0 = vld [vmem:[%s1560_s11] sm:$0x1] }
 0x114   : > { %v627_v4 = vrot.slane %v626_v2, 1 }
 0x116   : > { %v628_v5 = vadd.f32 %v627_v4, %v626_v2  ;;  %v878_v2 = vld [vmem:[%s1561_s12] sm:$0x1] }
 0x118   : > { %1197 = vrcp.f32 %v628_v5 }
 0x11f   : > { %v1196_v6 = vpop.eup %1195 }
 0x120   : > { %v739_v10 = vmul.f32 %v1196_v6, %v1190_v50 }
 0x122   : > { %742 = vperm.xlu1 %1178, %v739_v10  }
 0x125   : > { %v1198_v11 = vpop.eup %1197 }
 0x126   : > { %v630_v12 = vmul.f32 %v1198_v11, %v1192_v53  ;;  %v631_v14 = vmul.f32 %v1198_v11, %v1194_v55 }
 0x128   : > { %634 = vperm.xlu0 %1177, %v630_v12  }
 0x12c   : > { %639 = vperm.xlu0 %1177, %v631_v14  }
 0x19d   : > { %v743_v18 = vpop.permute.xlu1 %742 }
 0x19e   : > { %v745_v19 = vmul.f32 %v743_v18, %v1434_v9 }
 0x1a0   : > { %v746_v20 = vsel %vm559_vm1, %v745_v19, 0.0 }
 0x1a1   : > { %v747_v21 = vrot.slane %v746_v20, 4 }
 0x1a3   : > { %v748_v22 = vadd.f32 %v747_v21, %v746_v20  ;;  %v635_v23 = vpop.permute.xlu0 %634 }
 0x1a4   : > { %v642_v26 = vmul.f32 %v635_v23, %v1430_v7 }
 0x1a5   : > { %v749_v24 = vrot.slane %v748_v22, 2 }
 0x1a6   : > { %v644_v31 = vsel %vm559_vm1, %v642_v26, 0.0 }
 0x1a7   : > { %v750_v25 = vadd.f32 %v749_v24, %v748_v22  ;;  %v640_v27 = vpop.permute.xlu0 %639 }
 0x1a8   : > { %v643_v29 = vmul.f32 %v640_v27, %v1432_v8 }
 0x1a9   : > { %v751_v28 = vrot.slane %v750_v25, 1 }
 0x1aa   : > { %v645_v32 = vsel %vm559_vm1, %v643_v29, 0.0 }
 0x1ab   : > { %v752_v30 = vadd.f32 %v751_v28, %v750_v25  ;;  %v646_v33 = vadd.f32 %v645_v32, %v644_v31 }
 0x1ad   : > { %v814_v9 = vpack.c.bf16 %v752_v30, %v752_v30  ;;  %v647_v34 = vrot.slane %v646_v33, 4 }
 0x1af   : > { %1124 = vmatmul.mubr.msk.bf16.vlgmr.msra.gmra.mxu1 %vm559_vm1, %v814_v9  ;;  %v648_v35 = vadd.f32 %v647_v34, %v646_v33 }
 0x1b1   : > { %v649_v36 = vrot.slane %v648_v35, 2 }
 0x1b3   : > { %v650_v37 = vadd.f32 %v649_v36, %v648_v35 }
 0x1b5   : > { %v651_v38 = vrot.slane %v650_v37, 1 }
 0x1b7   : > { %v652_v39 = vadd.f32 %v651_v38, %v650_v37 }
 0x1b9   : > { %v753_v7 = vpack.c.bf16 %v652_v39, %v652_v39 }
 0x1bb   : > { %1116 = vmatmul.mubr.msk.bf16.vlgmr.msra.gmra.mxu0 %vm559_vm1, %v753_v7 }
 0x1bc   : > { %1131 = vmatprep.mubr.msk.bf16.mxu0 %vm1264_vm0, %v1263_v3  ;;  %1128 = vmatpush3.bf16.msra.mxu0 %v1187_v58 }
 0x1bd   : > { %1129 = vmatprep.subr.bf16.mxu0 %v1263_v3  ;;  %v901_v3 = vld [vmem:[%s1563_s14] sm:$0x1] }
 0x1c0   : > { %1130 = vmatpush3.bf16.msra.mxu0 %v1188_v59 }
 0x26f   : > { %v868_v8 = vpop.f32.mrf.mxu1 }
 0x271   : > { %v1125_v40 = vpop.f32.mrf.mxu1 }
 0x273   : > { %v871_v41 = vpop.f32.mrf.mxu1 }
 0x275   : > { %v1126_v42 = vpop.f32.mrf.mxu1 }
 0x27b   : > { %v808_v44 = vpop.f32.mrf.mxu0 }
 0x27c   : > { %v809_v45 = vadd.f32 %v808_v44, %v758_v43 }
 0x27d   : > { %v1117_v46 = vpop.f32.mrf.mxu0 }
 0x27e   : > { %v874_v48 = vadd.f32 %v868_v8, %v809_v45 }
 0x27f   : > { %v811_v49 = vpop.f32.mrf.mxu0 }
 0x280   : > { %v876_v50 = vadd.f32 %v875_v47, %v874_v48 }
 0x281   : > { %v1118_v51 = vpop.f32.mrf.mxu0 }
 0x282   : > { %v880_v52 = vsel %vm879_vm3, %v876_v50, 0.0 }
 0x283   : > { %881 = vadd.xlane.f32.xlu1 %v880_v52 }
 0x30c   : > { %v882_v53 = vpop.xlane.xlu1 %881 }
 0x30d   : > { %v884_v54 = vmul.f32 0.03125, %v882_v53 }
 0x30f   : > { %v885_v55 = vsub.f32 %v876_v50, %v884_v54 }
 0x311   : > { %v886_v56 = vmul.f32 %v885_v55, %v885_v55 }
 0x313   : > { %v887_v57 = vsel %vm879_vm3, %v886_v56, 0.0 }
 0x314   : > { %888 = vadd.xlane.f32.xlu0 %v887_v57 }
 0x39d   : > { %v889_v60 = vpop.xlane.xlu0 %888 }
 0x39e   : > { %v890_v61 = vmul.f32 0.03125, %v889_v60 }
 0x3a0   : > { %v891_v62 = vadd.f32 1e-05, %v890_v61 }
 0x3a2   : > { %1199 = vrsqrt.f32 %v891_v62 }
 0x3af   : > { %v1200_v63 = vpop.eup %1199 }
 0x3b0   : > { %v893_v1 = vmul.f32 %v1200_v63, %v885_v55 }
 0x3b2   : > { %v894_v4 = vmul.f32 %v893_v1, %v877_v0 }
 0x3b4   : > { %v895_v5 = vadd.f32 %v894_v4, %v878_v2 }
 0x3b6   : > { %v896_v6 = vpack.c.bf16 %v895_v5, %v895_v5 }
 0x3b8   : > { %1132 = vmatmul.mubr.msk.bf16.vlgmr.msra.gmra.mxu0 %vm559_vm1, %v896_v6 }
 0x478   : > { %v951_v10 = vpop.f32.mrf.mxu0 }
 0x479   : > { %v952_v11 = vadd.f32 %v951_v10, %v901_v3 }
 0x47a   : > { %v1133_v12 = vpop.f32.mrf.mxu0 }
 0x47b   : > { %958 = vst.msk [vmem:[%s516_s17] sm:$0x1] %vm957_vm4, %v952_v11 }
 0x47c   : > { %v954_v13 = vpop.f32.mrf.mxu0 }
 0x47d   : > { %1214 = shalt.err (!%p1211_p3)
}
 0x47e   : > { %s1215_s28 = scalar_lea.hbm %s1509_s21, 16  ;;  %s1219_s19 = scalar_lea.hbm %s1564_s15, 32 }
 0x47f   : > { %p1216_p4 = scmp.ne.s32.totalorder %s1509_s21, %s1215_s28  ;;  %p1220_p9 = scmp.lt.s32.totalorder %s1509_s21, %s1564_s15 }
 0x480   : > { %p1221_p10 = scmp.lt.s32.totalorder %s1219_s19, %s1215_s28 }
 0x481   : > { %p1217_p7 = pnand %p1216_p4, %p1391_p5 }
 0x482   : > { %p1222_p11 = por %p1221_p10, %p1220_p9 }
 0x483   : > { %p1218_p8 = pneg %p1217_p7 }
 0x485   : > { %p1223_p12 = pnand %p1222_p11, %p1218_p8 }
 0x487   : > { %1226 = shalt.err (!%p1223_p12)
}
 0x488   : > { %1135 = dma.vmem_to_hbm [thread:$0]  (%p1391_p5), %s1511_s18, 16, %s1509_s21, %s960_s6   ;;  %v1134_v14 = vpop.f32.mrf.mxu0 }
 0x489 PF: > { %p1141_p13 = scmp.ge.s32.totalorder %s1261_s25, 2  ;;  %s984_s4 = sand.u32 1, %s1249_s22  }
 0x48a   : > { %s985_s29 = scalar_lea.sflag [#allocation5], %s984_s4 }
 0x48b   : > { %p1138_p0 = pnand %p1141_p13, %p1395_p6 }
 0x48d   : > { %p1139_p1 = pneg %p1138_p0 }
 0x48f   : > { %1244 = dma.done.wait (%p1139_p1), %s985_s29, 16  }
 0x490   : > { %1246 = vsyncadd (%p1139_p1), %s985_s29, 4294967280  ;;  %s1573_s27 = sld [smem:[#allocation7_spill]]  ;;  %p29_p2 = scmp.ge.s32.totalorder %s1378_s26, 4  }
 0x491   : > { %s1574_s24 = sld [smem:[#allocation8_spill]]  ;;  %s1575_s22 = smov %s1253_s23 }
 0x492   : > { %s1577_s25 = smov %s1378_s26  ;;  %31 = sbr.rel (!%p29_p2) target bundleno = 6 (0x6), region = 121 }
 0x496   : > { %s1576_s23 = smov %s1573_s27 }
 0x497   :  { %989 = vsyncpa [#allocation5], 1 }
 0x498   :  { %991 = vsyncpa [#allocation5 + $0x1], 1 }

// kernel: _lambda_.11
= control target key start
LH: loop header
LB: loop body
LE: loop exit
PB: predicated region body
PF: predicated region fallthrough
CT: control target
= control target key end

     0   :  { %s4110_s0 = inlined_call_operand.vmem [shape: f32[2,16,32], index: 0, kind: input, shape index: {}]   ;;  %s4111_s1 = inlined_call_operand.vmem [shape: f32[2,8,32], index: 1, kind: input, shape index: {}]   ;;  %s4112_s2 = inlined_call_operand.vmem [shape: f32[2,1,8], index: 2, kind: input, shape index: {}]   ;;  %s4113_s3 = inlined_call_operand.vmem [shape: bf16[32,96], index: 3, kind: input, shape index: {}]   ;;  %s4114_s4 = inlined_call_operand.vmem [shape: f32[1,96], index: 4, kind: input, shape index: {}]   ;;  %s4115_s5 = inlined_call_operand.vmem [shape: bf16[32,32], index: 5, kind: input, shape index: {}]   ;;  %s4116_s6 = inlined_call_operand.vmem [shape: f32[1,32], index: 6, kind: input, shape index: {}]   ;;  %s4117_s7 = inlined_call_operand.vmem [shape: f32[1,32], index: 7, kind: input, shape index: {}]   ;;  %s4118_s8 = inlined_call_operand.vmem [shape: f32[1,32], index: 8, kind: input, shape index: {}]   ;;  %s4119_s9 = inlined_call_operand.vmem [shape: bf16[32,32], index: 9, kind: input, shape index: {}]   ;;  %s4120_s10 = inlined_call_operand.vmem [shape: f32[1,32], index: 10, kind: input, shape index: {}]   ;;  %s4121_s11 = inlined_call_operand.vmem [shape: bf16[32,64], index: 11, kind: input, shape index: {}]   ;;  %s4122_s12 = inlined_call_operand.vmem [shape: f32[1,64], index: 12, kind: input, shape index: {}]   ;;  %s4123_s13 = inlined_call_operand.vmem [shape: bf16[32,32], index: 13, kind: input, shape index: {}]   ;;  %s4124_s14 = inlined_call_operand.vmem [shape: f32[1,32], index: 14, kind: input, shape index: {}]   ;;  %s4125_s15 = inlined_call_operand.vmem [shape: f32[1,32], index: 15, kind: input, shape index: {}]   ;;  %s4126_s16 = inlined_call_operand.vmem [shape: f32[1,32], index: 16, kind: input, shape index: {}]   ;;  %s4127_s17 = inlined_call_operand.vmem [shape: bf16[32,64], index: 17, kind: input, shape index: {}]   ;;  %s4128_s18 = inlined_call_operand.vmem [shape: f32[1,64], index: 18, kind: input, shape index: {}]   ;;  %s4129_s19 = inlined_call_operand.vmem [shape: bf16[64,32], index: 19, kind: input, shape index: {}]   ;;  %s4130_s20 = inlined_call_operand.vmem [shape: f32[1,32], index: 20, kind: input, shape index: {}]   ;;  %s4131_s21 = inlined_call_operand.vmem [shape: f32[1,32], index: 21, kind: input, shape index: {}]   ;;  %s4132_s22 = inlined_call_operand.vmem [shape: f32[1,32], index: 22, kind: input, shape index: {}]   ;;  %s4133_s23 = inlined_call_operand.vmem [shape: f32[2,16,32], index: 23, kind: output, shape index: {}]  }
   0x1   :  { %4150 = sst [smem:[#allocation2_spill]] %s4110_s0 }
   0x2   :  { %4151 = sst [smem:[#allocation3_spill]] %s4111_s1 }
   0x3   :  { %4152 = sst [smem:[#allocation4_spill]] %s4112_s2 }
   0x4   :  { %4153 = sst [smem:[#allocation5_spill]] %s4113_s3 }
   0x5   :  { %4154 = sst [smem:[#allocation6_spill]] %s4114_s4  ;;  %s3739_s4 = smov 0  }
   0x6   :  { %4155 = sst [smem:[#allocation7_spill]] %s4115_s5 }
   0x7   :  { %4156 = sst [smem:[#allocation8_spill]] %s4116_s6 }
   0x8   :  { %4157 = sst [smem:[#allocation9_spill]] %s4117_s7 }
   0x9 LB: > { %s3119_s30 = sadd.s32 4294967295, %s3601_s4   ;;  %p3123_p0 = scmp.ge.s32.totalorder %s3601_s4, 1  ;;  %s3601_s4 = sphi %s3739_s4, %s33_s4  }
   0xa   : > { %p654_p1 = scmp.lt.s32.totalorder %s3601_s4, 3 }
   0xc   : > { %p655_p2 = pnand %p3123_p0, %p654_p1 }
   0xd   : > { %s4158_s5 = sld [smem:[#allocation5_spill]] (!%p655_p2)  ;;  %p725_p3 = scmp.lt.s32.totalorder (!%p655_p2), %s3119_s30, 1 }
   0xe   : > { %658 = sbr.rel (%p655_p2) target bundleno = 4695 (0x1257), region = 112  ;;  %s4159_s7 = sld [smem:[#allocation2_spill]] (!%p655_p2) }
   0xf   : > { %s4160_s0 = sld [smem:[#allocation6_spill]] (!%p655_p2)  ;;  %s4143_s24 = smov (!%p655_p2), 96  }
  0x10   : > { %s4141_s25 = smov (!%p655_p2), 88   ;;  %s4142_s1 = smov (!%p655_p2), 80  }
  0x11   : > { %s4148_s26 = smov (!%p655_p2), 120   ;;  %s4146_s6 = smov (!%p655_p2), 112  }
  0x12   : > { %s3610_s27 = smov (!%p655_p2), 64   ;;  %s4139_s29 = smov (!%p655_p2), 72  }
  0x13   : > { %v3503_v0 = vld [vmem:[%s4158_s5 + $0x8] sm:$0xff]   ;;  %v3603_v1 = vmov 0.0   ;;  %v3504_v2 = vld [vmem:[%s4158_s5] sm:$0xff]   ;;  %vm3604_vm0 = vmmov 0   ;;  %s4178_s30 = smov (!%p725_p3, %s3119_s30), 1  ;;  %vm776_vm1 = vcmask 261120  }
  0x14   : > { %3293 = vmatprep.subr.bf16.mxu1 %v3603_v1  ;;  %3297 = vmatprep.mubr.msk.bf16.mxu1 %vm3604_vm0, %v3603_v1  ;;  %s4136_s2 = sshll.u32 %s4178_s30, 4  ;;  %vm827_vm2 = vcmask 64512   ;;  %vm913_vm3 = vcmask 130048   ;;  %s4144_s3 = smov 104   ;;  %vm1657_vm4 = vcmask 195584   ;;  %vm2950_vm5 = vcmask 523264  }
  0x15   : > { %3294 = vmatpush3.bf16.msra.mxu1 %v3503_v0  ;;  %s729_s28 = scalar_lea.vmem %s4159_s7, %s4136_s2  ;;  %v3129_v6 = vld [vmem:[%s4160_s0] ss:$0 sm:$0xff]  ;;  %s3611_s7 = smov 56  }
  0x16   : > { %3295 = vmatprep.subr.bf16.mxu1 %v3603_v1  ;;  %v3765_v3 = vld [vmem:[%s729_s28] sm:$0xff]  ;;  %v3767_v4 = vld [vmem:[%s729_s28 + $0x8] sm:$0xff]  ;;  %s3612_s28 = smov 48   ;;  %s3615_s0 = smov 40  }
  0x17   : > { %v757_v5 = vpack.c.bf16 %v3767_v4, %v3765_v3  ;;  %s4161_s2 = sld [smem:[#allocation7_spill]] }
  0x19   : > { %3296 = vmatpush3.bf16.msra.mxu1 %v3504_v2 }
  0x1c   : > { %3298 = vmatmul.mubr.msk.bf16.vlgmr.msra.gmra.mxu1 %vm776_vm1, %v757_v5 }
  0xdc   : > { %v814_v7 = vpop.f32.mrf.mxu1 }
  0xdd   : > { %v3775_v8 = vadd.f32 %v3129_v6, %v814_v7 }
  0xde   : > { %v3299_v9 = vpop.f32.mrf.mxu1 }
  0xdf   : > { %823 = vrot.lane.b32.xlu1 %v3775_v8, %s4143_s24  ;;  %3305 = vmatprep.mubr.msk.f32.mxu1 %vm827_vm2, %v3775_v8 }
  0xe0   : > { %v817_v10 = vpop.f32.mrf.mxu1 }
  0xe1   : > { %v3781_v11 = vadd.f32 %v3129_v6, %v817_v10 }
  0xe2   : > { %v3300_v12 = vpop.f32.mrf.mxu1 }
  0xe3   : > { %1027 = vrot.lane.b32.xlu1 %v3775_v8, %s4141_s25  ;;  %825 = vrot.lane.b32.xlu0 %v3781_v11, %s4143_s24  ;;  %s4167_s24 = smov 104  }
  0xe7   : > { %1231 = vrot.lane.b32.xlu1 %v3781_v11, %s4142_s1  ;;  %1029 = vrot.lane.b32.xlu0 %v3781_v11, %s4141_s25  ;;  %s4174_s25 = smov 16  }
  0xeb   : > { %1229 = vrot.lane.b32.xlu1 %v3775_v8, %s4142_s1  ;;  %1023 = vrot.lane.b32.xlu0 %v3775_v8, %s4148_s26  ;;  %s3126_s1 = sshll.u32 %s4178_s30, 3 }
  0xef   : > { %1227 = vrot.lane.b32.xlu1 %v3781_v11, %s4146_s6  ;;  %1025 = vrot.lane.b32.xlu0 %v3781_v11, %s4148_s26 }
  0xf3   : > { %1225 = vrot.lane.b32.xlu0 %v3775_v8, %s4146_s6  ;;  %s4163_s6 = sld [smem:[#allocation3_spill]] }
  0xf9   : > { %s733_s26 = scalar_lea.vmem %s4163_s6, %s3126_s1  ;;  %s4164_s1 = sld [smem:[#allocation9_spill]] }
 0x151   : > { %v824_v13 = vpop.permute.xlu1 %823 }
 0x155   : > { %v826_v14 = vpop.permute.xlu0 %825  ;;  %v1028_v15 = vpop.permute.xlu1 %1027 }
 0x156   : > { %3301 = vmatprep.subr.msk.mxu1 %vm827_vm2, %v826_v14 }
 0x157   : > { %3302 = vmatpush3.xpose.msk.msra.mxu1 %vm827_vm2, %v826_v14 }
 0x158   : > { %3303 = vmatprep.subr.msk.mxu1 %vm827_vm2, %v824_v13 }
 0x159   : > { %v1030_v16 = vpop.permute.xlu0 %1029  ;;  %v1232_v17 = vpop.permute.xlu1 %1231 }
 0x15a   : > { %3315 = vmatprep.subr.msk.mxu0 %vm827_vm2, %v1030_v16 }
 0x15b   : > { %3304 = vmatpush3.xpose.msk.msra.mxu1 %vm827_vm2, %v824_v13  ;;  %3316 = vmatpush3.xpose.msk.msra.mxu0 %vm827_vm2, %v1030_v16 }
 0x15c   : > { %3317 = vmatprep.subr.msk.mxu0 %vm827_vm2, %v1028_v15 }
 0x15d   : > { %v1024_v18 = vpop.permute.xlu0 %1023  ;;  %v1230_v20 = vpop.permute.xlu1 %1229 }
 0x15e   : > { %3306 = vmatmul.mubr.msk.f32.vlgmr.msra.gmra.mxu1 %vm827_vm2, %v3781_v11  ;;  %3319 = vmatprep.mubr.msk.f32.mxu0 %vm827_vm2, %v1024_v18 }
 0x15f   : > { %3318 = vmatpush3.xpose.msk.msra.mxu0 %vm827_vm2, %v1028_v15 }
 0x160   : > { %3329 = vmatprep.subr.msk.mxu0 %vm827_vm2, %v1232_v17 }
 0x161   : > { %v1026_v19 = vpop.permute.xlu0 %1025  ;;  %v1228_v22 = vpop.permute.xlu1 %1227 }
 0x162   : > { %3320 = vmatmul.mubr.msk.f32.vlgmr.msra.gmra.mxu0 %vm827_vm2, %v1026_v19 }
 0x163   : > { %3330 = vmatpush3.xpose.msk.msra.mxu0 %vm827_vm2, %v1232_v17 }
 0x164   : > { %3331 = vmatprep.subr.msk.mxu0 %vm827_vm2, %v1230_v20 }
 0x165   : > { %v1226_v21 = vpop.permute.xlu0 %1225 }
 0x166   : > { %3333 = vmatprep.mubr.msk.f32.mxu0 %vm827_vm2, %v1226_v21 }
 0x167   : > { %3332 = vmatpush3.xpose.msk.msra.mxu0 %vm827_vm2, %v1230_v20 }
 0x16a   : > { %3334 = vmatmul.mubr.msk.f32.vlgmr.msra.gmra.mxu0 %vm827_vm2, %v1228_v22 }
 0x21e   : > { %v3307_v23 = vpop.f32.mrf.mxu1 }
 0x21f   : > { %v912_v24 = vmul.f32 0.35355338, %v3307_v23 }
 0x220   : > { %v902_v25 = vpop.f32.mrf.mxu1 }
 0x221   : > { %v911_v26 = vmul.f32 0.35355338, %v902_v25  ;;  %v917_v27 = vsel %vm913_vm3, %v912_v24, -inf }
 0x222   : > { %v3321_v28 = vpop.f32.mrf.mxu0  ;;  %918 = vmax.xlane.f32.xlu1 %v917_v27 }
 0x223   : > { %v914_v29 = vsel %vm913_vm3, %v911_v26, -inf  ;;  %v1115_v32 = vmul.f32 0.35355338, %v3321_v28 }
 0x224   : > { %v1105_v30 = vpop.f32.mrf.mxu0  ;;  %915 = vmax.xlane.f32.xlu0 %v914_v29 }
 0x225   : > { %v1114_v31 = vmul.f32 0.35355338, %v1105_v30  ;;  %v1119_v36 = vsel %vm913_vm3, %v1115_v32, -inf }
 0x227   : > { %v1116_v33 = vsel %vm913_vm3, %v1114_v31, -inf }
 0x228   : > { %1117 = vmax.xlane.f32.xlu0 %v1116_v33 }
 0x22a   : > { %v3335_v34 = vpop.f32.mrf.mxu0 }
 0x22b   : > { %v1317_v35 = vmul.f32 0.35355338, %v3335_v34 }
 0x22c   : > { %1120 = vmax.xlane.f32.xlu0 %v1119_v36  ;;  %v1307_v38 = vpop.f32.mrf.mxu0 }
 0x22d   : > { %v1321_v37 = vsel %vm913_vm3, %v1317_v35, -inf  ;;  %v1316_v39 = vmul.f32 0.35355338, %v1307_v38 }
 0x22f   : > { %v1318_v40 = vsel %vm913_vm3, %v1316_v39, -inf }
 0x230   : > { %1322 = vmax.xlane.f32.xlu0 %v1321_v37 }
 0x233   : > { %938 = vrot.lane.b32.xlu1 %v3781_v11, %s3610_s27 }
 0x237   : > { %1140 = vrot.lane.b32.xlu1 %v3781_v11, %s3611_s7 }
 0x23b   : > { %1138 = vrot.lane.b32.xlu1 %v3775_v8, %s3611_s7  ;;  %s4137_s7 = smov 16  }
 0x246   : > { %936 = vrot.lane.b32.xlu0 %v3775_v8, %s3610_s27  ;;  %s4138_s27 = smov 8  }
 0x24a   : > { %1342 = vrot.lane.b32.xlu0 %v3781_v11, %s3612_s28 }
 0x25f   : > { %1319 = vmax.xlane.f32.xlu1 %v1318_v40 }
 0x270   : > { %1340 = vrot.lane.b32.xlu1 %v3775_v8, %s3612_s28  ;;  %s4162_s28 = sld [smem:[#allocation8_spill]] }
 0x2ab   : > { %v919_v41 = vpop.xlane.xlu1 %918 }
 0x2ac   : > { %v921_v42 = vsub.f32 %v912_v24, %v919_v41 }
 0x2ad   : > { %v916_v43 = vpop.xlane.xlu0 %915 }
 0x2ae   : > { %v924_v44 = vmul.f32 1.442695, %v921_v42  ;;  %v920_v45 = vsub.f32 %v911_v26, %v916_v43 }
 0x2af   : > { %v939_v46 = vpop.permute.xlu1 %938 }
 0x2b0   : > { %3519 = vpow2.f32 %v924_v44  ;;  %v922_v47 = vmul.f32 1.442695, %v920_v45  ;;  %3308 = vmatprep.subr.mxu1 %v939_v46 }
 0x2b1   : > { %3309 = vmatpush3.msra.mxu1 %v939_v46  ;;  %v1118_v48 = vpop.xlane.xlu0 %1117 }
 0x2b2   : > { %3521 = vpow2.f32 %v922_v47  ;;  %v1122_v49 = vsub.f32 %v1114_v31, %v1118_v48 }
 0x2b3   : > { %v1141_v61 = vpop.permute.xlu1 %1140 }
 0x2b4   : > { %v1124_v50 = vmul.f32 1.442695, %v1122_v49 }
 0x2b5   : > { %v1121_v51 = vpop.xlane.xlu0 %1120 }
 0x2b6   : > { %3523 = vpow2.f32 %v1124_v50  ;;  %v1123_v52 = vsub.f32 %v1115_v32, %v1121_v51 }
 0x2b7   : > { %v1139_v9 = vpop.permute.xlu1 %1138 }
 0x2b8   : > { %v1126_v53 = vmul.f32 1.442695, %v1123_v52 }
 0x2b9   : > { %v1323_v54 = vpop.xlane.xlu0 %1322 }
 0x2ba   : > { %3525 = vpow2.f32 %v1126_v53  ;;  %v1325_v55 = vsub.f32 %v1317_v35, %v1323_v54 }
 0x2bc   : > { %v1328_v56 = vmul.f32 1.442695, %v1325_v55 }
 0x2bd   : > { %v3520_v57 = vpop.eup %3519  ;;  %v937_v58 = vpop.permute.xlu0 %936 }
 0x2be   : > { %3527 = vpow2.f32 %v1328_v56  ;;  %3310 = vmatprep.subr.mxu1 %v937_v58  ;;  %v929_v59 = vsel %vm913_vm3, %v3520_v57, 0.0 }
 0x2bf   : > { %v3522_v60 = vpop.eup %3521  ;;  %930 = vadd.xlane.f32.xlu0 %v929_v59  ;;  %3311 = vmatpush3.msra.mxu1 %v937_v58 }
 0x2c0   : > { %3322 = vmatprep.subr.mxu1 %v1141_v61  ;;  %v926_v62 = vsel %vm913_vm3, %v3522_v60, 0.0 }
 0x2c1   : > { %927 = vadd.xlane.f32.xlu1 %v926_v62  ;;  %v1343_v16 = vpop.permute.xlu0 %1342 }
 0x2c3   : > { %v3524_v63 = vpop.eup %3523 }
 0x2c4   : > { %v1128_v0 = vsel %vm913_vm3, %v3524_v63, 0.0 }
 0x2c5   : > { %1129 = vadd.xlane.f32.xlu1 %v1128_v0 }
 0x2c7   : > { %v3526_v2 = vpop.eup %3525 }
 0x2c8   : > { %v1131_v5 = vsel %vm913_vm3, %v3526_v2, 0.0 }
 0x2c9   : > { %1132 = vadd.xlane.f32.xlu0 %v1131_v5 }
 0x2cb   : > { %v3528_v6 = vpop.eup %3527 }
 0x2cc   : > { %v1333_v7 = vsel %vm913_vm3, %v3528_v6, 0.0 }
 0x2cd   : > { %1334 = vadd.xlane.f32.xlu0 %v1333_v7 }
 0x2d6   : > { %1431 = vrot.lane.b32.xlu1 %v3775_v8, %s4139_s29 }
 0x2e3   : > { %1433 = vrot.lane.b32.xlu0 %v3781_v11, %s4139_s29  ;;  %s4140_s29 = smov 24  }
 0x2e7   : > { %1427 = vrot.lane.b32.xlu0 %v3775_v8, %s4144_s3 }
 0x2e8   : > { %v1320_v10 = vpop.xlane.xlu1 %1319 }
 0x2e9   : > { %v1324_v12 = vsub.f32 %v1316_v39, %v1320_v10 }
 0x2eb   : > { %v1326_v13 = vmul.f32 1.442695, %v1324_v12  ;;  %v3506_v12 = vld [vmem:[%s4161_s2] sm:$0xff]  }
 0x2ec   : > { %v1341_v17 = vpop.permute.xlu1 %1340 }
 0x2ed   : > { %3529 = vpow2.f32 %v1326_v13 }
 0x2fa   : > { %v3530_v14 = vpop.eup %3529 }
 0x2fb   : > { %v1330_v15 = vsel %vm913_vm3, %v3530_v14, 0.0 }
 0x2fc   : > { %1331 = vadd.xlane.f32.xlu1 %v1330_v15 }
 0x30d   : > { %1429 = vrot.lane.b32.xlu1 %v3781_v11, %s4144_s3  ;;  %s4170_s3 = smov 80  }
 0x348   : > { %v931_v18 = vpop.xlane.xlu0 %930 }
 0x349   : > { %3531 = vrcp.f32 %v931_v18 }
 0x34a   : > { %v928_v19 = vpop.xlane.xlu1 %927 }
 0x34b   : > { %3533 = vrcp.f32 %v928_v19 }
 0x34e   : > { %v1130_v20 = vpop.xlane.xlu1 %1129 }
 0x34f   : > { %3535 = vrcp.f32 %v1130_v20 }
 0x352   : > { %v1133_v21 = vpop.xlane.xlu0 %1132  ;;  %v1432_v32 = vpop.permute.xlu1 %1431 }
 0x353   : > { %3537 = vrcp.f32 %v1133_v21 }
 0x356   : > { %v3532_v22 = vpop.eup %3531  ;;  %v1335_v29 = vpop.xlane.xlu0 %1334 }
 0x357   : > { %v935_v25 = vmul.f32 %v3532_v22, %v3520_v57  ;;  %3539 = vrcp.f32 %v1335_v29 }
 0x358   : > { %v3534_v23 = vpop.eup %3533 }
 0x359   : > { %v934_v24 = vmul.f32 %v3534_v23, %v3522_v60 }
 0x35a   : > { %v1434_v31 = vpop.permute.xlu0 %1433 }
 0x35b   : > { %3312 = vmatprep.mubr.msk.f32.mxu1 %vm913_vm3, %v934_v24 }
 0x35c   : > { %v3536_v26 = vpop.eup %3535  ;;  %3313 = vmatmul.mubr.msk.f32.vlgmr.msra.gmra.mxu1 %vm913_vm3, %v935_v25 }
 0x35d   : > { %3323 = vmatpush3.msra.mxu1 %v1141_v61  ;;  %v1136_v27 = vmul.f32 %v3536_v26, %v3524_v63 }
 0x35e   : > { %3324 = vmatprep.subr.mxu1 %v1139_v9  ;;  %v1428_v38 = vpop.permute.xlu0 %1427 }
 0x35f   : > { %3325 = vmatpush3.msra.mxu1 %v1139_v9  ;;  %3326 = vmatprep.mubr.msk.f32.mxu1 %vm913_vm3, %v1136_v27 }
 0x360   : > { %v3538_v28 = vpop.eup %3537  ;;  %3336 = vmatprep.subr.mxu1 %v1343_v16 }
 0x361   : > { %v1137_v30 = vmul.f32 %v3538_v28, %v3526_v2 }
 0x363   : > { %3327 = vmatmul.mubr.msk.f32.vlgmr.msra.gmra.mxu1 %vm913_vm3, %v1137_v30 }
 0x364   : > { %3337 = vmatpush3.msra.mxu1 %v1343_v16  ;;  %v3540_v34 = vpop.eup %3539 }
 0x365   : > { %3338 = vmatprep.subr.mxu1 %v1341_v17  ;;  %v1339_v37 = vmul.f32 %v3540_v34, %v3528_v6 }
 0x366   : > { %3339 = vmatpush3.msra.mxu1 %v1341_v17 }
 0x367   : > { %3343 = vmatprep.subr.msk.mxu1 %vm827_vm2, %v1434_v31 }
 0x385   : > { %v1332_v33 = vpop.xlane.xlu1 %1331 }
 0x386   : > { %3541 = vrcp.f32 %v1332_v33 }
 0x389   : > { %v1430_v39 = vpop.permute.xlu1 %1429 }
 0x393   : > { %v3542_v35 = vpop.eup %3541 }
 0x394   : > { %v1338_v36 = vmul.f32 %v3542_v35, %v3530_v14 }
 0x396   : > { %3340 = vmatprep.mubr.msk.f32.mxu1 %vm913_vm3, %v1338_v36 }
 0x397   : > { %3341 = vmatmul.mubr.msk.f32.vlgmr.msra.gmra.mxu1 %vm913_vm3, %v1339_v37 }
 0x398   : > { %3344 = vmatpush3.xpose.msk.msra.mxu1 %vm827_vm2, %v1434_v31  ;;  %3347 = vmatprep.mubr.msk.f32.mxu1 %vm827_vm2, %v1428_v38 }
 0x399   : > { %3345 = vmatprep.subr.msk.mxu1 %vm827_vm2, %v1432_v32 }
 0x39c   : > { %3346 = vmatpush3.xpose.msk.msra.mxu1 %vm827_vm2, %v1432_v32  ;;  %v3157_v32 = vld [vmem:[%s4162_s28] ss:$0 sm:$0xff]  ;;  %s4166_s28 = smov 112  }
 0x39d   : > { %3365 = vmatprep.subr.bf16.mxu1 %v3603_v1 }
 0x39f   : > { %3348 = vmatmul.mubr.msk.f32.vlgmr.msra.gmra.mxu1 %vm827_vm2, %v1430_v39 }
 0x3a0   : > { %3369 = vmatprep.mubr.msk.bf16.mxu1 %vm3604_vm0, %v3603_v1 }
 0x41c   : > { %v3860_v40 = vpop.f32.mrf.mxu1 }
 0x41e   : > { %v3862_v41 = vpop.f32.mrf.mxu1 }
 0x423   : > { %v3328_v42 = vpop.f32.mrf.mxu1 }
 0x425   : > { %v1216_v43 = vpop.f32.mrf.mxu1 }
 0x426   : > { %v3473_v52 = vpack.i.bf16 %v3328_v42, %v1216_v43 }
 0x457   : > { %v3342_v44 = vpop.f32.mrf.mxu1 }
 0x459   : > { %v1418_v45 = vpop.f32.mrf.mxu1 }
 0x45a   : > { %v3478_v53 = vpack.i.bf16 %v3342_v44, %v1418_v45 }
 0x45f   : > { %v3349_v46 = vpop.f32.mrf.mxu1 }
 0x460   : > { %v1519_v47 = vmul.f32 0.35355338, %v3349_v46 }
 0x461   : > { %v1509_v48 = vpop.f32.mrf.mxu1 }
 0x462   : > { %v1518_v49 = vmul.f32 0.35355338, %v1509_v48  ;;  %v1523_v50 = vsel %vm913_vm3, %v1519_v47, -inf }
 0x463   : > { %1524 = vmax.xlane.f32.xlu1 %v1523_v50 }
 0x464   : > { %v1520_v51 = vsel %vm913_vm3, %v1518_v49, -inf }
 0x465   : > { %1521 = vmax.xlane.f32.xlu0 %v1520_v51 }
 0x474   : > { %1544 = vrot.lane.b32.xlu1 %v3781_v11, %s3615_s0 }
 0x478   : > { %3474 = vrot.lane.b32.xlu1 %v3473_v52, %s4138_s27  ;;  %v3508_v52 = vld [vmem:[%s4121_s11] sm:$0xff]  }
 0x47c   : > { %3479 = vrot.lane.b32.xlu1 %v3478_v53, %s4137_s7  ;;  %v3509_v53 = vld [vmem:[%s4119_s9 + $0x8] sm:$0xff]   ;;  %s4165_s7 = smov 120  }
 0x47d   : > { %3366 = vmatpush3.bf16.msra.mxu1 %v3509_v53 }
 0x47e   : > { %3367 = vmatprep.subr.bf16.mxu1 %v3603_v1 }
 0x4ec   : > { %v1525_v54 = vpop.xlane.xlu1 %1524 }
 0x4ed   : > { %v1527_v55 = vsub.f32 %v1519_v47, %v1525_v54  ;;  %v745_v54 = vld [vmem:[%s733_s26] sm:$0xff]  ;;  %s4168_s26 = sld [smem:[#allocation4_spill]] }
 0x4ee   : > { %v1522_v56 = vpop.xlane.xlu0 %1521 }
 0x4ef   : > { %v1530_v57 = vmul.f32 1.442695, %v1527_v55  ;;  %v1526_v58 = vsub.f32 %v1518_v49, %v1522_v56  ;;  %v3510_v55 = vld [vmem:[%s4119_s9] sm:$0xff]   ;;  %v1848_v56 = vpack.c.bf16 %v745_v54, %v745_v54 }
 0x4f0   : > { %v1545_v59 = vpop.permute.xlu1 %1544  ;;  %3368 = vmatpush3.bf16.msra.mxu1 %v3510_v55 }
 0x4f1   : > { %3543 = vpow2.f32 %v1530_v57  ;;  %v1528_v60 = vmul.f32 1.442695, %v1526_v58  ;;  %3350 = vmatprep.subr.mxu0 %v1545_v59 }
 0x4f2   : > { %3351 = vmatpush3.msra.mxu0 %v1545_v59 }
 0x4f3   : > { %3545 = vpow2.f32 %v1528_v60  ;;  %s736_s6 = scalar_lea.vmem %s4168_s26, %s4178_s30 }
 0x4f4   : > { %v3475_v16 = vpop.permute.xlu1 %3474 }
 0x4f5   : > { %v3477_v18 = vunpack.i.h.bf16 %v3475_v16  ;;  %v3476_v19 = vunpack.i.l.bf16 %v3475_v16 }
 0x4f7   : > { %v1654_v23 = vsel %vm827_vm2, %v3860_v40, %v3477_v18  ;;  %v1653_v24 = vsel %vm827_vm2, %v3862_v41, %v3476_v19 }
 0x4f8   : > { %v3480_v17 = vpop.permute.xlu1 %3479 }
 0x4f9   : > { %v3482_v20 = vunpack.i.h.bf16 %v3480_v17  ;;  %v3481_v21 = vunpack.i.l.bf16 %v3480_v17 }
 0x4fb   : > { %v1655_v27 = vsel %vm913_vm3, %v1653_v24, %v3481_v21  ;;  %v1656_v28 = vsel %vm913_vm3, %v1654_v23, %v3482_v20  ;;  %v3163_v21 = vld [vmem:[%s4120_s10] ss:$0 sm:$0xff] }
 0x4fe   : > { %v3544_v11 = vpop.eup %3543 }
 0x4ff   : > { %v1535_v61 = vsel %vm913_vm3, %v3544_v11, 0.0 }
 0x500   : > { %v3546_v62 = vpop.eup %3545  ;;  %1536 = vadd.xlane.f32.xlu0 %v1535_v61 }
 0x501   : > { %v1532_v63 = vsel %vm913_vm3, %v3546_v62, 0.0 }
 0x504   : > { %1533 = vadd.xlane.f32.xlu0 %v1532_v63 }
 0x51a   : > { %1542 = vrot.lane.b32.xlu0 %v3775_v8, %s3615_s0  ;;  %v3505_v8 = vld [vmem:[%s4161_s2 + $0x8] sm:$0xff]   ;;  %s4176_s0 = sshll.u32 %s4178_s30, 4 }
 0x589   : > { %v1537_v0 = vpop.xlane.xlu0 %1536 }
 0x58a   : > { %3547 = vrcp.f32 %v1537_v0  ;;  %v3161_v0 = vld [vmem:[%s4164_s1] ss:$0 sm:$0xff] }
 0x58d   : > { %v1534_v2 = vpop.xlane.xlu0 %1533 }
 0x58e   : > { %3549 = vrcp.f32 %v1534_v2 }
 0x591   : > { %v1543_v5 = vpop.permute.xlu0 %1542 }
 0x592   : > { %3352 = vmatprep.subr.mxu0 %v1543_v5 }
 0x593   : > { %3353 = vmatpush3.msra.mxu0 %v1543_v5 }
 0x594   : > { %3357 = vmatprep.subr.bf16.mxu0 %v3603_v1 }
 0x597   : > { %v3548_v6 = vpop.eup %3547 }
 0x598   : > { %v1541_v10 = vmul.f32 %v3548_v6, %v3544_v11 }
 0x59b   : > { %v3550_v7 = vpop.eup %3549 }
 0x59c   : > { %v1540_v9 = vmul.f32 %v3550_v7, %v3546_v62  ;;  %v3162_v7 = vld [vmem:[%s4118_s8] ss:$0 sm:$0xff] }
 0x59e   : > { %3354 = vmatprep.mubr.msk.f32.mxu0 %vm913_vm3, %v1540_v9 }
 0x59f   : > { %3355 = vmatmul.mubr.msk.f32.vlgmr.msra.gmra.mxu0 %vm913_vm3, %v1541_v10 }
 0x5a0   : > { %3361 = vmatprep.mubr.msk.bf16.mxu0 %vm3604_vm0, %v3603_v1  ;;  %3358 = vmatpush3.bf16.msra.mxu0 %v3505_v8 }
 0x5a1   : > { %3359 = vmatprep.subr.bf16.mxu0 %v3603_v1 }
 0x5a4   : > { %3360 = vmatpush3.bf16.msra.mxu0 %v3506_v12 }
 0x5a5   : > { %3373 = vmatprep.subr.bf16.mxu0 %v3603_v1 }
 0x65f   : > { %v3356_v13 = vpop.f32.mrf.mxu0 }
 0x661   : > { %v1620_v14 = vpop.f32.mrf.mxu0 }
 0x662   : > { %v3483_v15 = vpack.i.bf16 %v3356_v13, %v1620_v14  ;;  %v3167_v13 = vld [vmem:[%s4122_s12] ss:$0 sm:$0xff] }
 0x664   : > { %3484 = vrot.lane.b32.xlu0 %v3483_v15, %s4140_s29  ;;  %s4169_s29 = smov 96  }
 0x6d6   : > { %v3485_v22 = vpop.permute.xlu0 %3484 }
 0x6d7   : > { %v3487_v25 = vunpack.i.h.bf16 %v3485_v22  ;;  %v3486_v26 = vunpack.i.l.bf16 %v3485_v22 }
 0x6d9   : > { %v1659_v29 = vsel %vm1657_vm4, %v1656_v28, %v3487_v25  ;;  %v1658_v30 = vsel %vm1657_vm4, %v1655_v27, %v3486_v26 }
 0x6da   : > { %v1660_v31 = vpack.c.bf16 %v1659_v29, %v1658_v30 }
 0x6dc   : > { %3362 = vmatmul.mubr.msk.bf16.vlgmr.msra.gmra.mxu0 %vm776_vm1, %v1660_v31 }
 0x6dd   : > { %3377 = vmatprep.mubr.msk.bf16.mxu0 %vm3604_vm0, %v3603_v1 }
 0x79c   : > { %v1716_v33 = vpop.f32.mrf.mxu0 }
 0x79d   : > { %v1717_v34 = vadd.f32 %v3157_v32, %v1716_v33 }
 0x79e   : > { %v3363_v35 = vpop.f32.mrf.mxu0 }
 0x79f   : > { %v1723_v36 = vadd.f32 %v1717_v34, %v3765_v3 }
 0x7a0   : > { %v1719_v37 = vpop.f32.mrf.mxu0 }
 0x7a1   : > { %v1720_v38 = vadd.f32 %v3157_v32, %v1719_v37  ;;  %v1727_v39 = vsel %vm776_vm1, %v1723_v36, 0.0 }
 0x7a2   : > { %1728 = vadd.xlane.f32.xlu1 %v1727_v39  ;;  %v3364_v40 = vpop.f32.mrf.mxu0 }
 0x7a3   : > { %v1724_v41 = vadd.f32 %v1720_v38, %v3767_v4  ;;  %v3507_v4 = vld [vmem:[%s4121_s11 + $0x8] sm:$0xff]  }
 0x7a4   : > { %3374 = vmatpush3.bf16.msra.mxu0 %v3507_v4 }
 0x7a5   : > { %v1730_v42 = vsel %vm776_vm1, %v1724_v41, 0.0  ;;  %3375 = vmatprep.subr.bf16.mxu0 %v3603_v1 }
 0x7a6   : > { %1731 = vadd.xlane.f32.xlu0 %v1730_v42 }
 0x7a8   : > { %3376 = vmatpush3.bf16.msra.mxu0 %v3508_v52 }
 0x7ab   : > { %3378 = vmatmul.mubr.msk.bf16.vlgmr.msra.gmra.mxu0 %vm776_vm1, %v1848_v56 }
 0x82b   : > { %v1729_v43 = vpop.xlane.xlu1 %1728 }
 0x82c   : > { %v1734_v44 = vmul.f32 0.03125, %v1729_v43 }
 0x82e   : > { %v1736_v45 = vsub.f32 %v1723_v36, %v1734_v44  ;;  %v3174_v36 = vld [vmem:[%s736_s6] ss:$0 sm:$0xff]  ;;  %s4175_s6 = smov 24  }
 0x82f   : > { %v1732_v46 = vpop.xlane.xlu0 %1731 }
 0x830   : > { %v1735_v47 = vmul.f32 0.03125, %v1732_v46  ;;  %v1738_v48 = vmul.f32 %v1736_v45, %v1736_v45 }
 0x832   : > { %v1737_v49 = vsub.f32 %v1724_v41, %v1735_v47  ;;  %v1740_v3 = vsel %vm776_vm1, %v1738_v48, 0.0 }
 0x833   : > { %1741 = vadd.xlane.f32.xlu0 %v1740_v3 }
 0x834   : > { %v1739_v50 = vmul.f32 %v1737_v49, %v1737_v49 }
 0x836   : > { %v1743_v51 = vsel %vm776_vm1, %v1739_v50, 0.0 }
 0x837   : > { %1744 = vadd.xlane.f32.xlu1 %v1743_v51 }
 0x86b   : > { %v1904_v14 = vpop.f32.mrf.mxu0 }
 0x86c   : > { %v3941_v15 = vadd.f32 %v3167_v13, %v1904_v14 }
 0x86d   : > { %v3379_v16 = vpop.f32.mrf.mxu0 }
 0x86e   : > { %2114 = vrot.lane.b32.xlu0 %v3941_v15, %s4165_s7  ;;  %3381 = vmatprep.subr.msk.mxu1 %vm827_vm2, %v3941_v15 }
 0x86f   : > { %v1907_v17 = vpop.f32.mrf.mxu0 }
 0x871   : > { %v3380_v18 = vpop.f32.mrf.mxu0 }
 0x872   : > { %2311 = vrot.lane.b32.xlu0 %v3941_v15, %s4166_s28 }
 0x8bc   : > { %v1742_v57 = vpop.xlane.xlu0 %1741 }
 0x8bd   : > { %v1746_v58 = vmul.f32 0.03125, %v1742_v57 }
 0x8bf   : > { %v1748_v59 = vadd.f32 1e-05, %v1746_v58 }
 0x8c0   : > { %v1745_v60 = vpop.xlane.xlu1 %1744 }
 0x8c1   : > { %3551 = vrsqrt.f32 %v1748_v59  ;;  %v1747_v11 = vmul.f32 0.03125, %v1745_v60 }
 0x8c3   : > { %v1749_v61 = vadd.f32 1e-05, %v1747_v11 }
 0x8c5   : > { %3553 = vrsqrt.f32 %v1749_v61 }
 0x8ce   : > { %v3552_v62 = vpop.eup %3551 }
 0x8cf   : > { %v1752_v63 = vmul.f32 %v3552_v62, %v1736_v45 }
 0x8d1   : > { %v1760_v6 = vmul.f32 %v3161_v0, %v1752_v63 }
 0x8d2   : > { %v3554_v2 = vpop.eup %3553 }
 0x8d3   : > { %v1753_v5 = vmul.f32 %v3554_v2, %v1737_v49  ;;  %v3931_v10 = vadd.f32 %v3162_v7, %v1760_v6 }
 0x8d5   : > { %v1761_v9 = vmul.f32 %v3161_v0, %v1753_v5 }
 0x8d7   : > { %v3933_v8 = vadd.f32 %v3162_v7, %v1761_v9 }
 0x8d9   : > { %v1785_v12 = vpack.c.bf16 %v3933_v8, %v3931_v10 }
 0x8db   : > { %3370 = vmatmul.mubr.msk.bf16.vlgmr.msra.gmra.mxu1 %vm776_vm1, %v1785_v12 }
 0x8dc   : > { %3382 = vmatpush3.xpose.msk.msra.mxu1 %vm827_vm2, %v3941_v15 }
 0x8e0   : > { %v2115_v19 = vpop.permute.xlu0 %2114 }
 0x8e1   : > { %3391 = vmatprep.subr.msk.mxu0 %vm827_vm2, %v2115_v19 }
 0x8e2   : > { %3392 = vmatpush3.xpose.msk.msra.mxu0 %vm827_vm2, %v2115_v19 }
 0x8e4   : > { %v2312_v20 = vpop.permute.xlu0 %2311 }
 0x8e5   : > { %3401 = vmatprep.subr.msk.mxu0 %vm827_vm2, %v2312_v20 }
 0x99b   : > { %v1841_v22 = vpop.f32.mrf.mxu1 }
 0x99c   : > { %v1842_v23 = vadd.f32 %v3163_v21, %v1841_v22 }
 0x99d   : > { %v3371_v24 = vpop.f32.mrf.mxu1 }
 0x99e   : > { %2110 = vrot.lane.b32.xlu1 %v1842_v23, %s4165_s7  ;;  %3383 = vmatprep.mubr.msk.f32.mxu1 %vm827_vm2, %v1842_v23 }
 0x99f   : > { %v1844_v25 = vpop.f32.mrf.mxu1 }
 0x9a0   : > { %v1845_v26 = vadd.f32 %v3163_v21, %v1844_v25 }
 0x9a1   : > { %v3372_v27 = vpop.f32.mrf.mxu1 }
 0x9a2   : > { %2307 = vrot.lane.b32.xlu1 %v1842_v23, %s4166_s28  ;;  %2309 = vrot.lane.b32.xlu0 %v1845_v26, %s4166_s28  ;;  %s4172_s28 = smov 72  }
 0x9a3   : > { %3384 = vmatmul.mubr.msk.f32.vlgmr.msra.gmra.mxu1 %vm827_vm2, %v1845_v26 }
 0x9a6   : > { %2112 = vrot.lane.b32.xlu1 %v1845_v26, %s4165_s7  ;;  %2504 = vrot.lane.b32.xlu0 %v1842_v23, %s4167_s24  ;;  %s4171_s7 = smov 88  }
 0x9aa   : > { %2508 = vrot.lane.b32.xlu1 %v3941_v15, %s4167_s24 }
 0x9ae   : > { %2506 = vrot.lane.b32.xlu1 %v1845_v26, %s4167_s24  ;;  %s4173_s24 = smov 8  }
 0xa10   : > { %v2111_v28 = vpop.permute.xlu1 %2110 }
 0xa11   : > { %3393 = vmatprep.mubr.msk.f32.mxu0 %vm827_vm2, %v2111_v28 }
 0xa14   : > { %v2308_v29 = vpop.permute.xlu1 %2307  ;;  %v2310_v30 = vpop.permute.xlu0 %2309 }
 0xa18   : > { %v2113_v31 = vpop.permute.xlu1 %2112  ;;  %v2505_v33 = vpop.permute.xlu0 %2504 }
 0xa19   : > { %3394 = vmatmul.mubr.msk.f32.vlgmr.msra.gmra.mxu0 %vm827_vm2, %v2113_v31 }
 0xa1a   : > { %3402 = vmatpush3.xpose.msk.msra.mxu0 %vm827_vm2, %v2312_v20  ;;  %3403 = vmatprep.mubr.msk.f32.mxu0 %vm827_vm2, %v2308_v29 }
 0xa1c   : > { %v2509_v32 = vpop.permute.xlu1 %2508 }
 0xa1d   : > { %3404 = vmatmul.mubr.msk.f32.vlgmr.msra.gmra.mxu0 %vm827_vm2, %v2310_v30  ;;  %3411 = vmatprep.subr.msk.mxu0 %vm827_vm2, %v2509_v32 }
 0xa1e   : > { %3412 = vmatpush3.xpose.msk.msra.mxu0 %vm827_vm2, %v2509_v32  ;;  %3413 = vmatprep.mubr.msk.f32.mxu0 %vm827_vm2, %v2505_v33 }
 0xa1f   : > { %3421 = vmatprep.subr.bf16.mxu0 %v3603_v1 }
 0xa20   : > { %v2507_v34 = vpop.permute.xlu1 %2506 }
 0xa21   : > { %3414 = vmatmul.mubr.msk.f32.vlgmr.msra.gmra.mxu0 %vm827_vm2, %v2507_v34 }
 0xa22   : > { %3425 = vmatprep.mubr.msk.bf16.mxu0 %vm3604_vm0, %v3603_v1 }
 0xa63   : > { %v3385_v35 = vpop.f32.mrf.mxu1 }
 0xa64   : > { %v1995_v37 = vmul.f32 0.35355338, %v3385_v35 }
 0xa65   : > { %v1985_v38 = vpop.f32.mrf.mxu1 }
 0xa66   : > { %v1994_v39 = vmul.f32 0.35355338, %v1985_v38  ;;  %v2003_v40 = vadd.f32 %v3174_v36, %v1995_v37 }
 0xa68   : > { %v2007_v41 = vsel %vm827_vm2, %v2003_v40, -inf  ;;  %v2002_v42 = vadd.f32 %v3174_v36, %v1994_v39 }
 0xa69   : > { %2008 = vmax.xlane.f32.xlu1 %v2007_v41 }
 0xa6a   : > { %v2004_v43 = vsel %vm827_vm2, %v2002_v42, -inf }
 0xa6b   : > { %2005 = vmax.xlane.f32.xlu0 %v2004_v43 }
 0xad9   : > { %v3395_v44 = vpop.f32.mrf.mxu0 }
 0xada   : > { %v2198_v45 = vmul.f32 0.35355338, %v3395_v44 }
 0xadb   : > { %v2188_v46 = vpop.f32.mrf.mxu0 }
 0xadc   : > { %v2197_v47 = vmul.f32 0.35355338, %v2188_v46  ;;  %v2200_v50 = vadd.f32 %v3174_v36, %v2198_v45 }
 0xadd   : > { %v3405_v48 = vpop.f32.mrf.mxu0 }
 0xade   : > { %v2199_v49 = vadd.f32 %v3174_v36, %v2197_v47  ;;  %v2395_v51 = vmul.f32 0.35355338, %v3405_v48  ;;  %v2204_v56 = vsel %vm827_vm2, %v2200_v50, -inf }
 0xadf   : > { %v2385_v3 = vpop.f32.mrf.mxu0 }
 0xae0   : > { %v2394_v4 = vmul.f32 0.35355338, %v2385_v3  ;;  %v2201_v52 = vsel %vm827_vm2, %v2199_v49, -inf  ;;  %v2397_v60 = vadd.f32 %v3174_v36, %v2395_v51 }
 0xae1   : > { %v3415_v53 = vpop.f32.mrf.mxu0  ;;  %2202 = vmax.xlane.f32.xlu0 %v2201_v52 }
 0xae2   : > { %v2396_v54 = vadd.f32 %v3174_v36, %v2394_v4  ;;  %v2592_v57 = vmul.f32 0.35355338, %v3415_v53  ;;  %v2401_v62 = vsel %vm827_vm2, %v2397_v60, -inf }
 0xae3   : > { %v2582_v55 = vpop.f32.mrf.mxu0 }
 0xae4   : > { %v2591_v58 = vmul.f32 0.35355338, %v2582_v55  ;;  %v2398_v59 = vsel %vm827_vm2, %v2396_v54, -inf  ;;  %v2594_v63 = vadd.f32 %v3174_v36, %v2592_v57 }
 0xae5   : > { %2399 = vmax.xlane.f32.xlu1 %v2398_v59  ;;  %2205 = vmax.xlane.f32.xlu0 %v2204_v56 }
 0xae6   : > { %v3988_v11 = vadd.f32 %v3174_v36, %v2591_v58  ;;  %v2598_v0 = vsel %vm827_vm2, %v2594_v63, -inf }
 0xae8   : > { %v2595_v61 = vsel %vm827_vm2, %v3988_v11, -inf }
 0xae9   : > { %2596 = vmax.xlane.f32.xlu1 %v2595_v61  ;;  %2402 = vmax.xlane.f32.xlu0 %v2401_v62 }
 0xaed   : > { %2599 = vmax.xlane.f32.xlu0 %v2598_v0 }
 0xaf2   : > { %v2009_v2 = vpop.xlane.xlu1 %2008 }
 0xaf3   : > { %v2011_v5 = vsub.f32 %v2003_v40, %v2009_v2 }
 0xaf4   : > { %v2006_v7 = vpop.xlane.xlu0 %2005 }
 0xaf5   : > { %v2014_v6 = vmul.f32 1.442695, %v2011_v5  ;;  %v2010_v12 = vsub.f32 %v2002_v42, %v2006_v7 }
 0xaf7   : > { %3555 = vpow2.f32 %v2014_v6  ;;  %v2012_v14 = vmul.f32 1.442695, %v2010_v12 }
 0xaf9   : > { %3557 = vpow2.f32 %v2012_v14 }
 0xafa   : > { %2026 = vrot.lane.b32.xlu1 %v3941_v15, %s4169_s29 }
 0xb04   : > { %v3996_v9 = vpop.eup %3555 }
 0xb05   : > { %v2019_v13 = vsel %vm827_vm2, %v3996_v9, 0.0 }
 0xb06   : > { %2020 = vadd.xlane.f32.xlu0 %v2019_v13  ;;  %v3558_v16 = vpop.eup %3557 }
 0xb07   : > { %v2016_v17 = vsel %vm827_vm2, %v3558_v16, 0.0 }
 0xb1e   : > { %2017 = vadd.xlane.f32.xlu1 %v2016_v17  ;;  %v3511_v17 = vld [vmem:[%s4123_s13 + $0x8] sm:$0xff]  }
 0xb1f   : > { %3422 = vmatpush3.bf16.msra.mxu0 %v3511_v17  ;;  %v3197_v17 = vld [vmem:[%s4126_s16] ss:$0 sm:$0xff] }
 0xb20   : > { %3423 = vmatprep.subr.bf16.mxu0 %v3603_v1 }
 0xb6a   : > { %v2203_v18 = vpop.xlane.xlu0 %2202 }
 0xb6b   : > { %v2207_v19 = vsub.f32 %v2199_v49, %v2203_v18 }
 0xb6d   : > { %v2209_v20 = vmul.f32 1.442695, %v2207_v19 }
 0xb6e   : > { %v2400_v21 = vpop.xlane.xlu1 %2399  ;;  %v2206_v22 = vpop.xlane.xlu0 %2205 }
 0xb6f   : > { %3559 = vpow2.f32 %v2209_v20  ;;  %v2404_v23 = vsub.f32 %v2396_v54, %v2400_v21  ;;  %v2208_v24 = vsub.f32 %v2200_v50, %v2206_v22 }
 0xb71   : > { %v2406_v25 = vmul.f32 1.442695, %v2404_v23  ;;  %v2211_v26 = vmul.f32 1.442695, %v2208_v24  ;;  %v3512_v24 = vld [vmem:[%s4123_s13] sm:$0xff]  }
 0xb72   : > { %v2597_v27 = vpop.xlane.xlu1 %2596  ;;  %v2403_v28 = vpop.xlane.xlu0 %2402  ;;  %3424 = vmatpush3.bf16.msra.mxu0 %v3512_v24  ;;  %v3518_v24 = vld [vmem:[%s4129_s19] sm:$0xff]  }
 0xb73   : > { %3561 = vpow2.f32 %v2406_v25  ;;  %v2405_v29 = vsub.f32 %v2397_v60, %v2403_v28  ;;  %v2601_v45 = vsub.f32 %v3988_v11, %v2597_v27  ;;  %3437 = vmatprep.subr.bf16.mxu0 %v3603_v1 }
 0xb74   : > { %3563 = vpow2.f32 %v2211_v26 }
 0xb75   : > { %v2408_v30 = vmul.f32 1.442695, %v2405_v29  ;;  %v2603_v46 = vmul.f32 1.442695, %v2601_v45 }
 0xb76   : > { %v2027_v31 = vpop.permute.xlu1 %2026  ;;  %v2600_v32 = vpop.xlane.xlu0 %2599 }
 0xb77   : > { %v2602_v33 = vsub.f32 %v2594_v63, %v2600_v32  ;;  %3386 = vmatprep.subr.mxu1 %v2027_v31  ;;  %3565 = vpow2.f32 %v2408_v30 }
 0xb78   : > { %3387 = vmatpush3.msra.mxu1 %v2027_v31 }
 0xb79   : > { %v2605_v34 = vmul.f32 1.442695, %v2602_v33 }
 0xb7b   : > { %3567 = vpow2.f32 %v2605_v34 }
 0xb7c   : > { %v3560_v35 = vpop.eup %3559  ;;  %3569 = vpow2.f32 %v2603_v46 }
 0xb7d   : > { %v2213_v36 = vsel %vm827_vm2, %v3560_v35, 0.0 }
 0xb7e   : > { %2214 = vadd.xlane.f32.xlu1 %v2213_v36 }
 0xb80   : > { %v3562_v37 = vpop.eup %3561 }
 0xb81   : > { %v3564_v38 = vpop.eup %3563  ;;  %v2410_v39 = vsel %vm827_vm2, %v3562_v37, 0.0 }
 0xb82   : > { %2411 = vadd.xlane.f32.xlu1 %v2410_v39  ;;  %v2216_v40 = vsel %vm827_vm2, %v3564_v38, 0.0 }
 0xb83   : > { %2217 = vadd.xlane.f32.xlu0 %v2216_v40 }
 0xb84   : > { %v3566_v41 = vpop.eup %3565 }
 0xb85   : > { %v2413_v42 = vsel %vm827_vm2, %v3566_v41, 0.0 }
 0xb87   : > { %2414 = vadd.xlane.f32.xlu0 %v2413_v42 }
 0xb88   : > { %v3568_v43 = vpop.eup %3567 }
 0xb89   : > { %v2610_v44 = vsel %vm827_vm2, %v3568_v43, 0.0  ;;  %v3570_v49 = vpop.eup %3569 }
 0xb8a   : > { %v2607_v51 = vsel %vm827_vm2, %v3570_v49, 0.0 }
 0xb8b   : > { %2611 = vadd.xlane.f32.xlu0 %v2610_v44  ;;  %v3192_v44 = vld [vmem:[%s4124_s14] ss:$0 sm:$0xff] }
 0xb8f   : > { %v2021_v47 = vpop.xlane.xlu0 %2020 }
 0xb90   : > { %3571 = vrcp.f32 %v2021_v47 }
 0xb93   : > { %2420 = vrot.lane.b32.xlu1 %v3941_v15, %s4170_s3 }
 0xb9d   : > { %v3572_v3 = vpop.eup %3571 }
 0xb9e   : > { %v2025_v52 = vmul.f32 %v3572_v3, %v3996_v9 }
 0xba1   : > { %2223 = vrot.lane.b32.xlu0 %v3941_v15, %s4171_s7 }
 0xba7   : > { %v2018_v48 = vpop.xlane.xlu1 %2017 }
 0xba8   : > { %3573 = vrcp.f32 %v2018_v48 }
 0xbb5   : > { %v3574_v50 = vpop.eup %3573 }
 0xbb6   : > { %v2024_v4 = vmul.f32 %v3574_v50, %v3558_v16 }
 0xbb7   : > { %2608 = vadd.xlane.f32.xlu1 %v2607_v51 }
 0xbb8   : > { %3388 = vmatprep.mubr.msk.f32.mxu1 %vm827_vm2, %v2024_v4 }
 0xbb9   : > { %3389 = vmatmul.mubr.msk.f32.vlgmr.msra.gmra.mxu1 %vm827_vm2, %v2025_v52 }
 0xbc8   : > { %2617 = vrot.lane.b32.xlu1 %v3941_v15, %s4172_s28 }
 0xc07   : > { %v2215_v53 = vpop.xlane.xlu1 %2214 }
 0xc08   : > { %3575 = vrcp.f32 %v2215_v53 }
 0xc0b   : > { %v2412_v54 = vpop.xlane.xlu1 %2411 }
 0xc0c   : > { %3577 = vrcp.f32 %v2412_v54  ;;  %v2218_v55 = vpop.xlane.xlu0 %2217 }
 0xc0d   : > { %3579 = vrcp.f32 %v2218_v55 }
 0xc0f   : > { %v2421_v62 = vpop.permute.xlu1 %2420 }
 0xc10   : > { %v2415_v56 = vpop.xlane.xlu0 %2414 }
 0xc11   : > { %3581 = vrcp.f32 %v2415_v56 }
 0xc14   : > { %v2612_v57 = vpop.xlane.xlu0 %2611 }
 0xc15   : > { %v3576_v58 = vpop.eup %3575  ;;  %3583 = vrcp.f32 %v2612_v57 }
 0xc16   : > { %v2221_v59 = vmul.f32 %v3576_v58, %v3560_v35 }
 0xc18   : > { %v2224_v60 = vpop.permute.xlu0 %2223  ;;  %3398 = vmatprep.mubr.msk.f32.mxu1 %vm827_vm2, %v2221_v59 }
 0xc19   : > { %v3578_v11 = vpop.eup %3577  ;;  %3396 = vmatprep.subr.mxu1 %v2224_v60 }
 0xc1a   : > { %v3580_v61 = vpop.eup %3579  ;;  %3397 = vmatpush3.msra.mxu1 %v2224_v60  ;;  %v2418_v15 = vmul.f32 %v3578_v11, %v3562_v37 }
 0xc1b   : > { %3406 = vmatprep.subr.mxu1 %v2421_v62  ;;  %v2222_v63 = vmul.f32 %v3580_v61, %v3564_v38  ;;  %v3514_v61 = vld [vmem:[%s4127_s17] sm:$0xff]  }
 0xc1d   : > { %3399 = vmatmul.mubr.msk.f32.vlgmr.msra.gmra.mxu1 %vm827_vm2, %v2222_v63 }
 0xc1e   : > { %v3582_v0 = vpop.eup %3581  ;;  %3407 = vmatpush3.msra.mxu1 %v2421_v62  ;;  %3408 = vmatprep.mubr.msk.f32.mxu1 %vm827_vm2, %v2418_v15  ;;  %v3515_v62 = vld [vmem:[%s4129_s19 + $0x18] sm:$0xff]  }
 0xc1f   : > { %v2419_v2 = vmul.f32 %v3582_v0, %v3566_v41 }
 0xc21   : > { %3409 = vmatmul.mubr.msk.f32.vlgmr.msra.gmra.mxu1 %vm827_vm2, %v2419_v2 }
 0xc22   : > { %v3584_v7 = vpop.eup %3583 }
 0xc23   : > { %v2616_v13 = vmul.f32 %v3584_v7, %v3568_v43 }
 0xc40   : > { %v2609_v5 = vpop.xlane.xlu1 %2608 }
 0xc41   : > { %3585 = vrcp.f32 %v2609_v5 }
 0xc44   : > { %v2618_v6 = vpop.permute.xlu1 %2617 }
 0xc45   : > { %3416 = vmatprep.subr.mxu1 %v2618_v6 }
 0xc46   : > { %3417 = vmatpush3.msra.mxu1 %v2618_v6 }
 0xc47   : > { %3429 = vmatprep.subr.bf16.mxu1 %v3603_v1 }
 0xc4e   : > { %v3586_v9 = vpop.eup %3585 }
 0xc4f   : > { %v2615_v12 = vmul.f32 %v3586_v9, %v3570_v49 }
 0xc51   : > { %3418 = vmatprep.mubr.msk.f32.mxu1 %vm827_vm2, %v2615_v12  ;;  %v3196_v12 = vld [vmem:[%s4125_s15] ss:$0 sm:$0xff] }
 0xc52   : > { %3419 = vmatmul.mubr.msk.f32.vlgmr.msra.gmra.mxu1 %vm827_vm2, %v2616_v13 }
 0xc53   : > { %3433 = vmatprep.mubr.msk.bf16.mxu1 %vm3604_vm0, %v3603_v1 }
 0xc79   : > { %v3390_v14 = vpop.f32.mrf.mxu1 }
 0xc7b   : > { %v2101_v16 = vpop.f32.mrf.mxu1 }
 0xcdd   : > { %v3400_v18 = vpop.f32.mrf.mxu1 }
 0xcdf   : > { %v2298_v19 = vpop.f32.mrf.mxu1 }
 0xce0   : > { %v3488_v20 = vpack.i.bf16 %v3400_v18, %v2298_v19 }
 0xce1   : > { %v3410_v21 = vpop.f32.mrf.mxu1 }
 0xce2   : > { %3489 = vrot.lane.b32.xlu0 %v3488_v20, %s4173_s24 }
 0xce3   : > { %v2495_v22 = vpop.f32.mrf.mxu1 }
 0xce4   : > { %v3493_v23 = vpack.i.bf16 %v3410_v21, %v2495_v22  ;;  %v3516_v22 = vld [vmem:[%s4129_s19 + $0x10] sm:$0xff]  }
 0xce6   : > { %3494 = vrot.lane.b32.xlu1 %v3493_v23, %s4174_s25  ;;  %v3517_v23 = vld [vmem:[%s4129_s19 + $0x8] sm:$0xff]   ;;  %s741_s25 = scalar_lea.vmem %s4133_s23, %s4176_s0 }
 0xd12   : > { %v3420_v25 = vpop.f32.mrf.mxu1 }
 0xd14   : > { %v2692_v26 = vpop.f32.mrf.mxu1 }
 0xd15   : > { %v3498_v27 = vpack.i.bf16 %v3420_v25, %v2692_v26  ;;  %v3198_v25 = vld [vmem:[%s4128_s18] ss:$0 sm:$0xff] }
 0xd17   : > { %3499 = vrot.lane.b32.xlu0 %v3498_v27, %s4175_s6 }
 0xd54   : > { %v3490_v28 = vpop.permute.xlu0 %3489 }
 0xd55   : > { %v3492_v30 = vunpack.i.h.bf16 %v3490_v28  ;;  %v3491_v31 = vunpack.i.l.bf16 %v3490_v28 }
 0xd57   : > { %v2726_v35 = vsel %vm827_vm2, %v3390_v14, %v3492_v30  ;;  %v2725_v36 = vsel %vm827_vm2, %v2101_v16, %v3491_v31 }
 0xd58   : > { %v3495_v29 = vpop.permute.xlu1 %3494 }
 0xd59   : > { %v3497_v32 = vunpack.i.h.bf16 %v3495_v29  ;;  %v3496_v33 = vunpack.i.l.bf16 %v3495_v29 }
 0xd5b   : > { %v2728_v39 = vsel %vm913_vm3, %v2726_v35, %v3497_v32  ;;  %v2727_v40 = vsel %vm913_vm3, %v2725_v36, %v3496_v33 }
 0xd89   : > { %v3500_v34 = vpop.permute.xlu0 %3499 }
 0xd8a   : > { %v3502_v37 = vunpack.i.h.bf16 %v3500_v34  ;;  %v3501_v38 = vunpack.i.l.bf16 %v3500_v34 }
 0xd8c   : > { %v2730_v41 = vsel %vm1657_vm4, %v2728_v39, %v3502_v37  ;;  %v2729_v42 = vsel %vm1657_vm4, %v2727_v40, %v3501_v38 }
 0xd8d   : > { %v2731_v43 = vpack.c.bf16 %v2730_v41, %v2729_v42 }
 0xd8f   : > { %3426 = vmatmul.mubr.msk.bf16.vlgmr.msra.gmra.mxu0 %vm776_vm1, %v2731_v43 }
 0xd90   : > { %3445 = vmatprep.mubr.msk.bf16.mxu0 %vm3604_vm0, %v3603_v1  ;;  %3438 = vmatpush3.bf16.msra.mxu0 %v3515_v62 }
 0xd91   : > { %3439 = vmatprep.subr.bf16.mxu0 %v3603_v1 }
 0xd94   : > { %3440 = vmatpush3.bf16.msra.mxu0 %v3516_v22 }
 0xd95   : > { %3441 = vmatprep.subr.bf16.mxu0 %v3603_v1 }
 0xd98   : > { %3442 = vmatpush3.bf16.msra.mxu0 %v3517_v23 }
 0xd99   : > { %3443 = vmatprep.subr.bf16.mxu0 %v3603_v1 }
 0xd9c   : > { %3444 = vmatpush3.bf16.msra.mxu0 %v3518_v24 }
 0xe4f   : > { %v2787_v45 = vpop.f32.mrf.mxu0 }
 0xe50   : > { %v2788_v46 = vadd.f32 %v3192_v44, %v2787_v45 }
 0xe51   : > { %v3427_v47 = vpop.f32.mrf.mxu0 }
 0xe52   : > { %v2794_v48 = vadd.f32 %v2788_v46, %v3931_v10 }
 0xe53   : > { %v2790_v49 = vpop.f32.mrf.mxu0 }
 0xe54   : > { %v2791_v3 = vadd.f32 %v3192_v44, %v2790_v49  ;;  %v2798_v50 = vsel %vm776_vm1, %v2794_v48, 0.0 }
 0xe55   : > { %2799 = vadd.xlane.f32.xlu1 %v2798_v50  ;;  %v3428_v51 = vpop.f32.mrf.mxu0 }
 0xe56   : > { %v2795_v4 = vadd.f32 %v2791_v3, %v3933_v8  ;;  %v3513_v8 = vld [vmem:[%s4127_s17 + $0x8] sm:$0xff]  }
 0xe57   : > { %3430 = vmatpush3.bf16.msra.mxu1 %v3513_v8 }
 0xe58   : > { %v2801_v52 = vsel %vm776_vm1, %v2795_v4, 0.0  ;;  %3431 = vmatprep.subr.bf16.mxu1 %v3603_v1  ;;  %v3202_v1 = vld [vmem:[%s4130_s20] ss:$0 sm:$0xff] }
 0xe59   : > { %2802 = vadd.xlane.f32.xlu0 %v2801_v52 }
 0xe5b   : > { %3432 = vmatpush3.bf16.msra.mxu1 %v3514_v61 }
 0xede   : > { %v2800_v53 = vpop.xlane.xlu1 %2799 }
 0xedf   : > { %v2804_v54 = vmul.f32 0.03125, %v2800_v53 }
 0xee1   : > { %v2806_v55 = vsub.f32 %v2794_v48, %v2804_v54 }
 0xee2   : > { %v2803_v56 = vpop.xlane.xlu0 %2802 }
 0xee3   : > { %v2805_v57 = vmul.f32 0.03125, %v2803_v56  ;;  %v2808_v58 = vmul.f32 %v2806_v55, %v2806_v55 }
 0xee5   : > { %v2807_v59 = vsub.f32 %v2795_v4, %v2805_v57  ;;  %v2810_v10 = vsel %vm776_vm1, %v2808_v58, 0.0 }
 0xee6   : > { %2811 = vadd.xlane.f32.xlu0 %v2810_v10  ;;  %v3208_v10 = vld [vmem:[%s4131_s21] ss:$0 sm:$0xff] }
 0xee7   : > { %v2809_v60 = vmul.f32 %v2807_v59, %v2807_v59 }
 0xee9   : > { %v2813_v11 = vsel %vm776_vm1, %v2809_v60, 0.0 }
 0xeea   : > { %2814 = vadd.xlane.f32.xlu1 %v2813_v11  ;;  %v3209_v11 = vld [vmem:[%s4132_s22] ss:$0 sm:$0xff] }
 0xf6f   : > { %v2812_v15 = vpop.xlane.xlu0 %2811 }
 0xf70   : > { %v2816_v63 = vmul.f32 0.03125, %v2812_v15 }
 0xf72   : > { %v2818_v0 = vadd.f32 1e-05, %v2816_v63 }
 0xf73   : > { %v2815_v2 = vpop.xlane.xlu1 %2814 }
 0xf74   : > { %3587 = vrsqrt.f32 %v2818_v0  ;;  %v2817_v5 = vmul.f32 0.03125, %v2815_v2 }
 0xf76   : > { %v2819_v6 = vadd.f32 1e-05, %v2817_v5 }
 0xf78   : > { %3589 = vrsqrt.f32 %v2819_v6 }
 0xf81   : > { %v3588_v7 = vpop.eup %3587 }
 0xf82   : > { %v2822_v9 = vmul.f32 %v3588_v7, %v2806_v55 }
 0xf84   : > { %v2830_v16 = vmul.f32 %v3196_v12, %v2822_v9 }
 0xf85   : > { %v3590_v13 = vpop.eup %3589 }
 0xf86   : > { %v2823_v14 = vmul.f32 %v3590_v13, %v2807_v59  ;;  %v2838_v19 = vadd.f32 %v3197_v17, %v2830_v16 }
 0xf88   : > { %v2831_v18 = vmul.f32 %v3196_v12, %v2823_v14 }
 0xf8a   : > { %v2839_v20 = vadd.f32 %v3197_v17, %v2831_v18 }
 0xf8c   : > { %v2854_v21 = vpack.c.bf16 %v2839_v20, %v2838_v19 }
 0xf8e   : > { %3434 = vmatmul.mubr.msk.bf16.vlgmr.msra.gmra.mxu1 %vm776_vm1, %v2854_v21 }
0x104e   : > { %v2910_v26 = vpop.f32.mrf.mxu1 }
0x104f   : > { %v2911_v28 = vadd.f32 %v3198_v25, %v2910_v26 }
0x1050   : > { %v3435_v27 = vpop.f32.mrf.mxu1 }
0x1051   : > { %v2917_v32 = vmax.f32 %v2911_v28, 0.0 }
0x1052   : > { %v2913_v29 = vpop.f32.mrf.mxu1 }
0x1053   : > { %v2914_v30 = vadd.f32 %v3198_v25, %v2913_v29 }
0x1054   : > { %v3436_v31 = vpop.f32.mrf.mxu1 }
0x1055   : > { %v2918_v33 = vmax.f32 %v2914_v30, 0.0 }
0x1057   : > { %v2919_v34 = vpack.c.bf16 %v2918_v33, %v2917_v32 }
0x1059   : > { %3446 = vmatmul.mubr.msk.bf16.vlgmr.msra.gmra.mxu0 %vm2950_vm5, %v2919_v34 }
0x1119   : > { %v2988_v35 = vpop.f32.mrf.mxu0 }
0x111a   : > { %v2989_v36 = vadd.f32 %v3202_v1, %v2988_v35 }
0x111b   : > { %v3447_v37 = vpop.f32.mrf.mxu0 }
0x111c   : > { %v2995_v38 = vadd.f32 %v2989_v36, %v2838_v19 }
0x111d   : > { %v2991_v39 = vpop.f32.mrf.mxu0 }
0x111e   : > { %v2992_v40 = vadd.f32 %v3202_v1, %v2991_v39  ;;  %v2999_v41 = vsel %vm776_vm1, %v2995_v38, 0.0 }
0x111f   : > { %3000 = vadd.xlane.f32.xlu0 %v2999_v41  ;;  %v3448_v42 = vpop.f32.mrf.mxu0 }
0x1120   : > { %v2996_v43 = vadd.f32 %v2992_v40, %v2839_v20 }
0x1122   : > { %v3002_v44 = vsel %vm776_vm1, %v2996_v43, 0.0 }
0x1123   : > { %3003 = vadd.xlane.f32.xlu1 %v3002_v44 }
0x11a8   : > { %v3001_v45 = vpop.xlane.xlu0 %3000 }
0x11a9   : > { %v3005_v46 = vmul.f32 0.03125, %v3001_v45 }
0x11ab   : > { %v3007_v47 = vsub.f32 %v2995_v38, %v3005_v46 }
0x11ac   : > { %v3004_v48 = vpop.xlane.xlu1 %3003 }
0x11ad   : > { %v3006_v49 = vmul.f32 0.03125, %v3004_v48  ;;  %v3009_v3 = vmul.f32 %v3007_v47, %v3007_v47 }
0x11af   : > { %v3008_v50 = vsub.f32 %v2996_v43, %v3006_v49  ;;  %v3011_v51 = vsel %vm776_vm1, %v3009_v3, 0.0 }
0x11b0   : > { %3012 = vadd.xlane.f32.xlu0 %v3011_v51 }
0x11b1   : > { %v3010_v4 = vmul.f32 %v3008_v50, %v3008_v50 }
0x11b3   : > { %v3014_v52 = vsel %vm776_vm1, %v3010_v4, 0.0 }
0x11b4   : > { %3015 = vadd.xlane.f32.xlu1 %v3014_v52 }
0x1239   : > { %v3013_v53 = vpop.xlane.xlu0 %3012 }
0x123a   : > { %v3017_v54 = vmul.f32 0.03125, %v3013_v53 }
0x123c   : > { %v3019_v55 = vadd.f32 1e-05, %v3017_v54 }
0x123d   : > { %v3016_v56 = vpop.xlane.xlu1 %3015 }
0x123e   : > { %3591 = vrsqrt.f32 %v3019_v55  ;;  %v3018_v57 = vmul.f32 0.03125, %v3016_v56 }
0x1240   : > { %v3020_v58 = vadd.f32 1e-05, %v3018_v57 }
0x1242   : > { %3593 = vrsqrt.f32 %v3020_v58 }
0x124b   : > { %v3592_v59 = vpop.eup %3591 }
0x124c   : > { %v3023_v60 = vmul.f32 %v3592_v59, %v3007_v47 }
0x124e   : > { %v3031_v8 = vmul.f32 %v3208_v10, %v3023_v60 }
0x124f   : > { %v3594_v61 = vpop.eup %3593 }
0x1250   : > { %v3039_v62 = vadd.f32 %v3209_v11, %v3031_v8  ;;  %v3024_v15 = vmul.f32 %v3594_v61, %v3008_v50 }
0x1252   : > { %3041 = vst.msk [vmem:[%s741_s25] sm:$0xff] %vm776_vm1, %v3039_v62  ;;  %v3032_v63 = vmul.f32 %v3208_v10, %v3024_v15 }
0x1254   : > { %v3040_v0 = vadd.f32 %v3209_v11, %v3032_v63 }
0x1256   : > { %3042 = vst.msk [vmem:[%s741_s25 + $0x8] sm:$0xff] %vm776_vm1, %v3040_v0 }
0x1257 PF: > { %s33_s4 = sadd.s32 1, %s3601_s4  }
0x1258   : > { %p30_p4 = scmp.ge.s32.totalorder %s33_s4, 4  }
0x125a   :  { %32 = sbr.rel (!%p30_p4) target bundleno = 9 (0x9), region = 148 }

</bundles_post_ra>
